<compile_context>
chip_gen: v7x
topology: tpu7x:2x2x1
jax: 0.10.0
libtpu: 0.0.40
codegen_flags: <defaults>
</compile_context>

<pallas_src>
import functools

import jax
import jax.numpy as jnp
from jax.experimental import pallas as pl
from jax.experimental.pallas import tpu as pltpu


def _round_up(x, m):
    return ((x + m - 1) // m) * m


def _blstm_kernel(xT_ref, w_aug_ref, w_lin_ref, b_lin_ref, o_ref,
                  r_ref, c_ref, *, hidden, mxu_dtype, unroll):
    """One batch tile: full LSTM recurrence + final Linear, batch-on-lanes.

    xT_ref:    (T, TB)        input sequence, time on sublanes, batch on lanes
    w_aug_ref: (4H, Hk)       [W_hh^T | W_ih^T | b | 0pad]  (Hk = rounded H+2)
    w_lin_ref: (od_pad, H)    final Linear weight (PyTorch (out, in) layout)
    b_lin_ref: (od_pad, 1)    final Linear bias
    o_ref:     (od_pad, TB)   lane-dense output slab
    r_ref:     (Hk, TB)       scratch: rows [0:H]=h, [H]=x_t, [H+1]=1, rest 0
    c_ref:     (H, TB)        scratch: cell state
    """
    T, TB = xT_ref.shape
    H = hidden
    H4, Hk = w_aug_ref.shape

    # Two independent half-tiles per step expose MXU/EUP overlap.
    n_halves = 2 if (TB % 256 == 0) else 1
    TBh = TB // n_halves

    if mxu_dtype == jnp.float32:
        dot_kw = dict(preferred_element_type=jnp.float32,
                      precision=jax.lax.Precision.HIGHEST)
    else:
        dot_kw = dict(preferred_element_type=jnp.float32)

    # Hoisted once per batch tile.
    w_mx = w_aug_ref[...].astype(mxu_dtype)                    # (4H, Hk)

    # Initialize augmented RHS and cell state: h = 0, c = 0, ones row, pad 0.
    r_ref[...] = jnp.zeros_like(r_ref)
    r_ref[pl.ds(H + 1, 1), :] = jnp.ones((1, TB), jnp.float32)
    c_ref[...] = jnp.zeros_like(c_ref)

    def sig(z):  # sigmoid via tanh: 1 EUP push instead of exp + reciprocal
        return 0.5 * jnp.tanh(0.5 * z) + 0.5

    def step(t, carry):
        # Place x_t into the augmented row, then take a single snapshot load so
        # both half-tiles depend only on that load (independent -> overlappable).
        r_ref[pl.ds(H, 1), :] = xT_ref[pl.ds(t, 1), :]
        r_all = r_ref[...]                                     # (Hk, TB)
        c_all = c_ref[...]                                     # (H, TB)
        for half in range(n_halves):
            lo = half * TBh
            rhs = r_all[:, lo:lo + TBh].astype(mxu_dtype)      # (Hk, TBh)
            # gates^T = W_hh^T h + W_ih^T x_t + b   (blitz order: i, f, g, o)
            gates = jnp.dot(w_mx, rhs, **dot_kw)               # (4H, TBh) f32
            i_g = sig(gates[0 * H:1 * H, :])
            f_g = sig(gates[1 * H:2 * H, :])
            g_g = jnp.tanh(gates[2 * H:3 * H, :])
            o_g = sig(gates[3 * H:4 * H, :])
            c_new = f_g * c_all[:, lo:lo + TBh] + i_g * g_g
            h_new = o_g * jnp.tanh(c_new)
            c_ref[:, pl.ds(lo, TBh)] = c_new
            r_ref[pl.ds(0, H), pl.ds(lo, TBh)] = h_new
        return carry

    jax.lax.fori_loop(0, T, step, 0, unroll=unroll)

    # Final Linear(hidden -> output_dim), still transposed -> lane-dense store.
    h_T = r_ref[pl.ds(0, H), :]                                # (H, TB)
    y = jnp.dot(w_lin_ref[...], h_T,
                preferred_element_type=jnp.float32,
                precision=jax.lax.Precision.HIGHEST) + b_lin_ref[...]
    o_ref[...] = y.astype(o_ref.dtype)                         # (od_pad, TB)


@functools.partial(jax.jit, static_argnames=("tile_b", "mxu_bf16"))
def blstm_forward(x, params, *, tile_b=256, mxu_bf16=False):
    """x: (B, T) float32 (the module reshapes it to (B, T, 1), i.e. input_dim=1).

    params (blitz/PyTorch layout, already-sampled weights):
      w_ih  (1, 4H), w_hh (H, 4H), b (4H,), w_lin (od, H), b_lin (od,)
    Returns (B, od) float32.
    """
    w_ih, w_hh, b, w_lin, b_lin = params
    B, T = x.shape
    H, H4 = w_hh.shape
    od = w_lin.shape[0]
    assert H4 == 4 * H
    assert w_ih.shape == (1, H4), "module forward implies input_dim == 1"

    # Batch tile: lane-dense multiple of 128, small enough to stay vreg-resident.
    B_pad128 = _round_up(B, 128)
    TB = max(128, (min(tile_b, B_pad128) // 128) * 128)
    # Keep >= 2 grid steps when the batch allows it (v7x megacore sharding).
    if B_pad128 >= 256:
        TB = min(TB, max(128, ((B_pad128 // 2) // 128) * 128))
    grid_b = pl.cdiv(B, TB)
    B_pad = grid_b * TB

    Hk = _round_up(H + 2, 8)        # augmented K: H (h) + 1 (x_t) + 1 (ones), padded
    od_pad = _round_up(od, 8)       # sublane-aligned output slab

    # ---- wrapper-side layout plumbing (transpose / zero-pad; math-preserving)
    xT = jnp.pad(x.astype(jnp.float32).T, ((0, 0), (0, B_pad - B)))    # (T, B_pad)
    w_aug = jnp.zeros((H4, Hk), jnp.float32)
    w_aug = w_aug.at[:, :H].set(w_hh.T.astype(jnp.float32))            # W_hh^T
    w_aug = w_aug.at[:, H].set(w_ih[0].astype(jnp.float32))            # W_ih^T col
    w_aug = w_aug.at[:, H + 1].set(b.astype(jnp.float32))              # bias col
    w_lin_p = jnp.zeros((od_pad, H), jnp.float32).at[:od].set(
        w_lin.astype(jnp.float32))                                     # (od_pad, H)
    b_lin_p = jnp.zeros((od_pad, 1), jnp.float32).at[:od, 0].set(
        b_lin.astype(jnp.float32))                                     # (od_pad, 1)

    mxu_dtype = jnp.bfloat16 if mxu_bf16 else jnp.float32
    unroll = True if T <= 16 else 4

    # Advisory cost estimate for XLA scheduling.
    flops = 2 * B_pad * T * H4 * Hk + 10 * B_pad * T * H + 2 * B_pad * od_pad * H
    transcendentals = 5 * B_pad * T * H
    bytes_accessed = 4 * (T * B_pad + od_pad * B_pad + H4 * Hk + od_pad * (H + 1))

    kernel = functools.partial(_blstm_kernel, hidden=H,
                               mxu_dtype=mxu_dtype, unroll=unroll)

    out_T = pl.pallas_call(
        kernel,
        out_shape=jax.ShapeDtypeStruct((od_pad, B_pad), jnp.float32),
        grid_spec=pltpu.PrefetchScalarGridSpec(
            num_scalar_prefetch=0,
            grid=(grid_b,),
            in_specs=[
                pl.BlockSpec((T, TB), lambda i: (0, i)),       # x tile (time, batch)
                pl.BlockSpec((H4, Hk), lambda i: (0, 0)),      # W_aug  (VMEM-resident)
                pl.BlockSpec((od_pad, H), lambda i: (0, 0)),   # W_lin  (VMEM-resident)
                pl.BlockSpec((od_pad, 1), lambda i: (0, 0)),   # b_lin  (VMEM-resident)
            ],
            out_specs=pl.BlockSpec((od_pad, TB), lambda i: (0, i)),
            scratch_shapes=[
                pltpu.VMEM((Hk, TB), jnp.float32),             # r = [h; x_t; 1; pad]
                pltpu.VMEM((H, TB), jnp.float32),              # c
            ],
        ),
        compiler_params=pltpu.CompilerParams(
            dimension_semantics=("parallel",)),
        cost_estimate=pl.CostEstimate(
            flops=flops,
            transcendentals=transcendentals,
            bytes_accessed=bytes_accessed),
    )(xT, w_aug, w_lin_p, b_lin_p)

    return out_T[:od, :B].T                                    # (B, od)


def sample_bayesian_params(key, input_dim, hidden, output_dim):
    """One blitz-style posterior sample: w = mu + softplus(rho) * eps."""
    H4 = 4 * hidden
    shapes = [(input_dim, H4), (hidden, H4), (H4,),
              (output_dim, hidden), (output_dim,)]
    out = []
    for shape in shapes:
        key, k_mu, k_eps = jax.random.split(key, 3)
        mu = 0.2 * jax.random.normal(k_mu, shape, jnp.float32)
        sigma = jax.nn.softplus(jnp.full(shape, -3.0, jnp.float32))  # ~0.049
        eps = jax.random.normal(k_eps, shape, jnp.float32)
        out.append(mu + sigma * eps)
    return tuple(out)   # (w_ih, w_hh, b, w_lin, b_lin)


def blstm_reference(x, params):
    """Plain-JAX reference in the natural (batch, features) layout, exact f32."""
    w_ih, w_hh, b, w_lin, b_lin = params
    B, T = x.shape
    H = w_hh.shape[0]
    hp = jax.lax.Precision.HIGHEST
    h = jnp.zeros((B, H), jnp.float32)
    c = jnp.zeros((B, H), jnp.float32)
    for t in range(T):
        x_t = x[:, t:t + 1]                                    # (B, 1)
        gates = (jnp.dot(x_t, w_ih, precision=hp)
                 + jnp.dot(h, w_hh, precision=hp) + b)         # (B, 4H)
        i_g = jax.nn.sigmoid(gates[:, 0 * H:1 * H])
        f_g = jax.nn.sigmoid(gates[:, 1 * H:2 * H])
        g_g = jnp.tanh(gates[:, 2 * H:3 * H])
        o_g = jax.nn.sigmoid(gates[:, 3 * H:4 * H])
        c = f_g * c + i_g * g_g
        h = o_g * jnp.tanh(c)
    return jnp.dot(h, w_lin.T, precision=hp) + b_lin


if __name__ == "__main__":
    key = jax.random.PRNGKey(0)
    key, kx = jax.random.split(key)

    # Shapes implied by the module: x is (batch, seq); forward reshapes it to
    # (batch, seq, 1) => input_dim = 1.  Small demo: batch=256, seq=8, hidden=32.
    batch, seq, hidden, output_dim = 256, 8, 32, 1
    x = jax.random.normal(kx, (batch, seq), jnp.float32)
    params = sample_bayesian_params(key, 1, hidden, output_dim)

    out = blstm_forward(x, params)   # TB capped to 128 -> two batch tiles (grid exercised)
    out = jax.block_until_ready(out)

    ref = blstm_reference(x, params)
    assert out.shape == (batch, output_dim), out.shape
    err = float(jnp.max(jnp.abs(out - ref)))
    assert jnp.allclose(out, ref, atol=2e-4, rtol=2e-4), err

    print("KERNEL_OK")
</pallas_src>

<mosaic_0001>
module attributes {stable_mosaic.version = 11 : i64} {
  func.func @_blstm_kernel(%arg0: i32, %arg1: memref<8x128xf32, #tpu.memory_space<vmem>>, %arg2: memref<128x40xf32, #tpu.memory_space<vmem>>, %arg3: memref<8x32xf32, #tpu.memory_space<vmem>>, %arg4: memref<8x1xf32, #tpu.memory_space<vmem>>, %arg5: memref<8x128xf32, #tpu.memory_space<vmem>>, %arg6: memref<40x128xf32, #tpu.memory_space<vmem>>, %arg7: memref<32x128xf32, #tpu.memory_space<vmem>>) attributes {dimension_semantics = [#tpu.dimension_semantics<parallel>], iteration_bounds = array<i64: 2>, scalar_prefetch = 0 : i64, scratch_operands = 2 : i64, tpu.core_type = #tpu.core_type<tc>, window_params = [{transform_indices = @transform_0, window_bounds = array<i64: 8, 128>}, {pipeline_mode = #tpu.pipeline_mode<synchronous>, transform_indices = @transform_1, window_bounds = array<i64: 128, 40>}, {pipeline_mode = #tpu.pipeline_mode<synchronous>, transform_indices = @transform_2, window_bounds = array<i64: 8, 32>}, {pipeline_mode = #tpu.pipeline_mode<synchronous>, transform_indices = @transform_3, window_bounds = array<i64: 8, 1>}, {transform_indices = @transform_4, window_bounds = array<i64: 8, 128>}]} {
    %c0 = arith.constant 0 : index
    %c0_0 = arith.constant 0 : index
    %0 = vector.load %arg2[%c0, %c0_0] : memref<128x40xf32, #tpu.memory_space<vmem>>, vector<128x40xf32>
    %cst = arith.constant 0.000000e+00 : f32
    %1 = vector.broadcast %cst : f32 to vector<40x128xf32>
    %c0_1 = arith.constant 0 : index
    %c0_2 = arith.constant 0 : index
    %2 = vector.load %arg6[%c0_1, %c0_2] : memref<40x128xf32, #tpu.memory_space<vmem>>, vector<40x128xf32>
    tpu.vector_store %arg6[%c0_1, %c0_2], %1 {strides = array<i32>} : memref<40x128xf32, #tpu.memory_space<vmem>>, vector<40x128xf32>,
    %cst_3 = arith.constant 1.000000e+00 : f32
    %3 = vector.broadcast %cst_3 : f32 to vector<1x128xf32>
    %c33 = arith.constant 33 : index
    %c0_4 = arith.constant 0 : index
    %4 = vector.load %arg6[%c33, %c0_4] : memref<40x128xf32, #tpu.memory_space<vmem>>, vector<1x128xf32>
    tpu.vector_store %arg6[%c33, %c0_4], %3 {strides = array<i32>} : memref<40x128xf32, #tpu.memory_space<vmem>>, vector<1x128xf32>,
    %cst_5 = arith.constant 0.000000e+00 : f32
    %5 = vector.broadcast %cst_5 : f32 to vector<32x128xf32>
    %c0_6 = arith.constant 0 : index
    %c0_7 = arith.constant 0 : index
    %6 = vector.load %arg7[%c0_6, %c0_7] : memref<32x128xf32, #tpu.memory_space<vmem>>, vector<32x128xf32>
    tpu.vector_store %arg7[%c0_6, %c0_7], %5 {strides = array<i32>} : memref<32x128xf32, #tpu.memory_space<vmem>>, vector<32x128xf32>,
    %c0_i32 = arith.constant 0 : i32
    %7 = arith.index_cast %c0_i32 : i32 to index
    %c0_8 = arith.constant 0 : index
    %8 = vector.load %arg1[%7, %c0_8] : memref<8x128xf32, #tpu.memory_space<vmem>>, vector<1x128xf32>
    %c32 = arith.constant 32 : index
    %c0_9 = arith.constant 0 : index
    %9 = vector.load %arg6[%c32, %c0_9] : memref<40x128xf32, #tpu.memory_space<vmem>>, vector<1x128xf32>
    tpu.vector_store %arg6[%c32, %c0_9], %8 {strides = array<i32>} : memref<40x128xf32, #tpu.memory_space<vmem>>, vector<1x128xf32>,
    %c0_10 = arith.constant 0 : index
    %c0_11 = arith.constant 0 : index
    %10 = vector.load %arg6[%c0_10, %c0_11] : memref<40x128xf32, #tpu.memory_space<vmem>>, vector<40x128xf32>
    %c0_12 = arith.constant 0 : index
    %c0_13 = arith.constant 0 : index
    %11 = vector.load %arg7[%c0_12, %c0_13] : memref<32x128xf32, #tpu.memory_space<vmem>>, vector<32x128xf32>
    %cst_14 = arith.constant dense<0.000000e+00> : vector<128x128xf32>
    %12 = tpu.matmul %0, %10, %cst_14 {dimension_numbers = #tpu.dot_dimension_numbers<[1], [0], [0], [1], [0, 0, 1, 1], [], []>, precision = #tpu.contract_precision<fp32>} : vector<128x40xf32>, vector<40x128xf32>, vector<128x128xf32> -> vector<128x128xf32>
    %13 = vector.extract_strided_slice %12 {offsets = [0, 0], sizes = [32, 128], strides = [1, 1]} : vector<128x128xf32> to vector<32x128xf32>
    %cst_15 = arith.constant 5.000000e-01 : f32
    %14 = vector.broadcast %cst_15 : f32 to vector<32x128xf32>
    %15 = arith.mulf %14, %13 : vector<32x128xf32>
    %16 = math.tanh %15 : vector<32x128xf32>
    %cst_16 = arith.constant 5.000000e-01 : f32
    %17 = vector.broadcast %cst_16 : f32 to vector<32x128xf32>
    %18 = arith.mulf %17, %16 : vector<32x128xf32>
    %cst_17 = arith.constant 5.000000e-01 : f32
    %19 = vector.broadcast %cst_17 : f32 to vector<32x128xf32>
    %20 = arith.addf %18, %19 : vector<32x128xf32>
    %21 = vector.extract_strided_slice %12 {offsets = [32, 0], sizes = [32, 128], strides = [1, 1]} : vector<128x128xf32> to vector<32x128xf32>
    %cst_18 = arith.constant 5.000000e-01 : f32
    %22 = vector.broadcast %cst_18 : f32 to vector<32x128xf32>
    %23 = arith.mulf %22, %21 : vector<32x128xf32>
    %24 = math.tanh %23 : vector<32x128xf32>
    %cst_19 = arith.constant 5.000000e-01 : f32
    %25 = vector.broadcast %cst_19 : f32 to vector<32x128xf32>
    %26 = arith.mulf %25, %24 : vector<32x128xf32>
    %cst_20 = arith.constant 5.000000e-01 : f32
    %27 = vector.broadcast %cst_20 : f32 to vector<32x128xf32>
    %28 = arith.addf %26, %27 : vector<32x128xf32>
    %29 = vector.extract_strided_slice %12 {offsets = [64, 0], sizes = [32, 128], strides = [1, 1]} : vector<128x128xf32> to vector<32x128xf32>
    %30 = math.tanh %29 : vector<32x128xf32>
    %31 = vector.extract_strided_slice %12 {offsets = [96, 0], sizes = [32, 128], strides = [1, 1]} : vector<128x128xf32> to vector<32x128xf32>
    %cst_21 = arith.constant 5.000000e-01 : f32
    %32 = vector.broadcast %cst_21 : f32 to vector<32x128xf32>
    %33 = arith.mulf %32, %31 : vector<32x128xf32>
    %34 = math.tanh %33 : vector<32x128xf32>
    %cst_22 = arith.constant 5.000000e-01 : f32
    %35 = vector.broadcast %cst_22 : f32 to vector<32x128xf32>
    %36 = arith.mulf %35, %34 : vector<32x128xf32>
    %cst_23 = arith.constant 5.000000e-01 : f32
    %37 = vector.broadcast %cst_23 : f32 to vector<32x128xf32>
    %38 = arith.addf %36, %37 : vector<32x128xf32>
    %39 = arith.mulf %28, %11 : vector<32x128xf32>
    %40 = arith.mulf %20, %30 : vector<32x128xf32>
    %41 = arith.addf %39, %40 : vector<32x128xf32>
    %42 = math.tanh %41 : vector<32x128xf32>
    %43 = arith.mulf %38, %42 : vector<32x128xf32>
    %c0_24 = arith.constant 0 : index
    %c0_25 = arith.constant 0 : index
    %44 = vector.load %arg7[%c0_24, %c0_25] : memref<32x128xf32, #tpu.memory_space<vmem>>, vector<32x128xf32>
    tpu.vector_store %arg7[%c0_24, %c0_25], %41 {strides = array<i32>} : memref<32x128xf32, #tpu.memory_space<vmem>>, vector<32x128xf32>,
    %c0_26 = arith.constant 0 : index
    %c0_27 = arith.constant 0 : index
    %45 = vector.load %arg6[%c0_26, %c0_27] : memref<40x128xf32, #tpu.memory_space<vmem>>, vector<32x128xf32>
    tpu.vector_store %arg6[%c0_26, %c0_27], %43 {strides = array<i32>} : memref<40x128xf32, #tpu.memory_space<vmem>>, vector<32x128xf32>,
    %c1_i32 = arith.constant 1 : i32
    %46 = arith.index_cast %c1_i32 : i32 to index
    %c0_28 = arith.constant 0 : index
    %47 = vector.load %arg1[%46, %c0_28] : memref<8x128xf32, #tpu.memory_space<vmem>>, vector<1x128xf32>
    %c32_29 = arith.constant 32 : index
    %c0_30 = arith.constant 0 : index
    %48 = vector.load %arg6[%c32_29, %c0_30] : memref<40x128xf32, #tpu.memory_space<vmem>>, vector<1x128xf32>
    tpu.vector_store %arg6[%c32_29, %c0_30], %47 {strides = array<i32>} : memref<40x128xf32, #tpu.memory_space<vmem>>, vector<1x128xf32>,
    %c0_31 = arith.constant 0 : index
    %c0_32 = arith.constant 0 : index
    %49 = vector.load %arg6[%c0_31, %c0_32] : memref<40x128xf32, #tpu.memory_space<vmem>>, vector<40x128xf32>
    %c0_33 = arith.constant 0 : index
    %c0_34 = arith.constant 0 : index
    %50 = vector.load %arg7[%c0_33, %c0_34] : memref<32x128xf32, #tpu.memory_space<vmem>>, vector<32x128xf32>
    %cst_35 = arith.constant dense<0.000000e+00> : vector<128x128xf32>
    %51 = tpu.matmul %0, %49, %cst_35 {dimension_numbers = #tpu.dot_dimension_numbers<[1], [0], [0], [1], [0, 0, 1, 1], [], []>, precision = #tpu.contract_precision<fp32>} : vector<128x40xf32>, vector<40x128xf32>, vector<128x128xf32> -> vector<128x128xf32>
    %52 = vector.extract_strided_slice %51 {offsets = [0, 0], sizes = [32, 128], strides = [1, 1]} : vector<128x128xf32> to vector<32x128xf32>
    %cst_36 = arith.constant 5.000000e-01 : f32
    %53 = vector.broadcast %cst_36 : f32 to vector<32x128xf32>
    %54 = arith.mulf %53, %52 : vector<32x128xf32>
    %55 = math.tanh %54 : vector<32x128xf32>
    %cst_37 = arith.constant 5.000000e-01 : f32
    %56 = vector.broadcast %cst_37 : f32 to vector<32x128xf32>
    %57 = arith.mulf %56, %55 : vector<32x128xf32>
    %cst_38 = arith.constant 5.000000e-01 : f32
    %58 = vector.broadcast %cst_38 : f32 to vector<32x128xf32>
    %59 = arith.addf %57, %58 : vector<32x128xf32>
    %60 = vector.extract_strided_slice %51 {offsets = [32, 0], sizes = [32, 128], strides = [1, 1]} : vector<128x128xf32> to vector<32x128xf32>
    %cst_39 = arith.constant 5.000000e-01 : f32
    %61 = vector.broadcast %cst_39 : f32 to vector<32x128xf32>
    %62 = arith.mulf %61, %60 : vector<32x128xf32>
    %63 = math.tanh %62 : vector<32x128xf32>
    %cst_40 = arith.constant 5.000000e-01 : f32
    %64 = vector.broadcast %cst_40 : f32 to vector<32x128xf32>
    %65 = arith.mulf %64, %63 : vector<32x128xf32>
    %cst_41 = arith.constant 5.000000e-01 : f32
    %66 = vector.broadcast %cst_41 : f32 to vector<32x128xf32>
    %67 = arith.addf %65, %66 : vector<32x128xf32>
    %68 = vector.extract_strided_slice %51 {offsets = [64, 0], sizes = [32, 128], strides = [1, 1]} : vector<128x128xf32> to vector<32x128xf32>
    %69 = math.tanh %68 : vector<32x128xf32>
    %70 = vector.extract_strided_slice %51 {offsets = [96, 0], sizes = [32, 128], strides = [1, 1]} : vector<128x128xf32> to vector<32x128xf32>
    %cst_42 = arith.constant 5.000000e-01 : f32
    %71 = vector.broadcast %cst_42 : f32 to vector<32x128xf32>
    %72 = arith.mulf %71, %70 : vector<32x128xf32>
    %73 = math.tanh %72 : vector<32x128xf32>
    %cst_43 = arith.constant 5.000000e-01 : f32
    %74 = vector.broadcast %cst_43 : f32 to vector<32x128xf32>
    %75 = arith.mulf %74, %73 : vector<32x128xf32>
    %cst_44 = arith.constant 5.000000e-01 : f32
    %76 = vector.broadcast %cst_44 : f32 to vector<32x128xf32>
    %77 = arith.addf %75, %76 : vector<32x128xf32>
    %78 = arith.mulf %67, %50 : vector<32x128xf32>
    %79 = arith.mulf %59, %69 : vector<32x128xf32>
    %80 = arith.addf %78, %79 : vector<32x128xf32>
    %81 = math.tanh %80 : vector<32x128xf32>
    %82 = arith.mulf %77, %81 : vector<32x128xf32>
    %c0_45 = arith.constant 0 : index
    %c0_46 = arith.constant 0 : index
    %83 = vector.load %arg7[%c0_45, %c0_46] : memref<32x128xf32, #tpu.memory_space<vmem>>, vector<32x128xf32>
    tpu.vector_store %arg7[%c0_45, %c0_46], %80 {strides = array<i32>} : memref<32x128xf32, #tpu.memory_space<vmem>>, vector<32x128xf32>,
    %c0_47 = arith.constant 0 : index
    %c0_48 = arith.constant 0 : index
    %84 = vector.load %arg6[%c0_47, %c0_48] : memref<40x128xf32, #tpu.memory_space<vmem>>, vector<32x128xf32>
    tpu.vector_store %arg6[%c0_47, %c0_48], %82 {strides = array<i32>} : memref<40x128xf32, #tpu.memory_space<vmem>>, vector<32x128xf32>,
    %c2_i32 = arith.constant 2 : i32
    %85 = arith.index_cast %c2_i32 : i32 to index
    %c0_49 = arith.constant 0 : index
    %86 = vector.load %arg1[%85, %c0_49] : memref<8x128xf32, #tpu.memory_space<vmem>>, vector<1x128xf32>
    %c32_50 = arith.constant 32 : index
    %c0_51 = arith.constant 0 : index
    %87 = vector.load %arg6[%c32_50, %c0_51] : memref<40x128xf32, #tpu.memory_space<vmem>>, vector<1x128xf32>
    tpu.vector_store %arg6[%c32_50, %c0_51], %86 {strides = array<i32>} : memref<40x128xf32, #tpu.memory_space<vmem>>, vector<1x128xf32>,
    %c0_52 = arith.constant 0 : index
    %c0_53 = arith.constant 0 : index
    %88 = vector.load %arg6[%c0_52, %c0_53] : memref<40x128xf32, #tpu.memory_space<vmem>>, vector<40x128xf32>
    %c0_54 = arith.constant 0 : index
    %c0_55 = arith.constant 0 : index
    %89 = vector.load %arg7[%c0_54, %c0_55] : memref<32x128xf32, #tpu.memory_space<vmem>>, vector<32x128xf32>
    %cst_56 = arith.constant dense<0.000000e+00> : vector<128x128xf32>
    %90 = tpu.matmul %0, %88, %cst_56 {dimension_numbers = #tpu.dot_dimension_numbers<[1], [0], [0], [1], [0, 0, 1, 1], [], []>, precision = #tpu.contract_precision<fp32>} : vector<128x40xf32>, vector<40x128xf32>, vector<128x128xf32> -> vector<128x128xf32>
    %91 = vector.extract_strided_slice %90 {offsets = [0, 0], sizes = [32, 128], strides = [1, 1]} : vector<128x128xf32> to vector<32x128xf32>
    %cst_57 = arith.constant 5.000000e-01 : f32
    %92 = vector.broadcast %cst_57 : f32 to vector<32x128xf32>
    %93 = arith.mulf %92, %91 : vector<32x128xf32>
    %94 = math.tanh %93 : vector<32x128xf32>
    %cst_58 = arith.constant 5.000000e-01 : f32
    %95 = vector.broadcast %cst_58 : f32 to vector<32x128xf32>
    %96 = arith.mulf %95, %94 : vector<32x128xf32>
    %cst_59 = arith.constant 5.000000e-01 : f32
    %97 = vector.broadcast %cst_59 : f32 to vector<32x128xf32>
    %98 = arith.addf %96, %97 : vector<32x128xf32>
    %99 = vector.extract_strided_slice %90 {offsets = [32, 0], sizes = [32, 128], strides = [1, 1]} : vector<128x128xf32> to vector<32x128xf32>
    %cst_60 = arith.constant 5.000000e-01 : f32
    %100 = vector.broadcast %cst_60 : f32 to vector<32x128xf32>
    %101 = arith.mulf %100, %99 : vector<32x128xf32>
    %102 = math.tanh %101 : vector<32x128xf32>
    %cst_61 = arith.constant 5.000000e-01 : f32
    %103 = vector.broadcast %cst_61 : f32 to vector<32x128xf32>
    %104 = arith.mulf %103, %102 : vector<32x128xf32>
    %cst_62 = arith.constant 5.000000e-01 : f32
    %105 = vector.broadcast %cst_62 : f32 to vector<32x128xf32>
    %106 = arith.addf %104, %105 : vector<32x128xf32>
    %107 = vector.extract_strided_slice %90 {offsets = [64, 0], sizes = [32, 128], strides = [1, 1]} : vector<128x128xf32> to vector<32x128xf32>
    %108 = math.tanh %107 : vector<32x128xf32>
    %109 = vector.extract_strided_slice %90 {offsets = [96, 0], sizes = [32, 128], strides = [1, 1]} : vector<128x128xf32> to vector<32x128xf32>
    %cst_63 = arith.constant 5.000000e-01 : f32
    %110 = vector.broadcast %cst_63 : f32 to vector<32x128xf32>
    %111 = arith.mulf %110, %109 : vector<32x128xf32>
    %112 = math.tanh %111 : vector<32x128xf32>
    %cst_64 = arith.constant 5.000000e-01 : f32
    %113 = vector.broadcast %cst_64 : f32 to vector<32x128xf32>
    %114 = arith.mulf %113, %112 : vector<32x128xf32>
    %cst_65 = arith.constant 5.000000e-01 : f32
    %115 = vector.broadcast %cst_65 : f32 to vector<32x128xf32>
    %116 = arith.addf %114, %115 : vector<32x128xf32>
    %117 = arith.mulf %106, %89 : vector<32x128xf32>
    %118 = arith.mulf %98, %108 : vector<32x128xf32>
    %119 = arith.addf %117, %118 : vector<32x128xf32>
    %120 = math.tanh %119 : vector<32x128xf32>
    %121 = arith.mulf %116, %120 : vector<32x128xf32>
    %c0_66 = arith.constant 0 : index
    %c0_67 = arith.constant 0 : index
    %122 = vector.load %arg7[%c0_66, %c0_67] : memref<32x128xf32, #tpu.memory_space<vmem>>, vector<32x128xf32>
    tpu.vector_store %arg7[%c0_66, %c0_67], %119 {strides = array<i32>} : memref<32x128xf32, #tpu.memory_space<vmem>>, vector<32x128xf32>,
    %c0_68 = arith.constant 0 : index
    %c0_69 = arith.constant 0 : index
    %123 = vector.load %arg6[%c0_68, %c0_69] : memref<40x128xf32, #tpu.memory_space<vmem>>, vector<32x128xf32>
    tpu.vector_store %arg6[%c0_68, %c0_69], %121 {strides = array<i32>} : memref<40x128xf32, #tpu.memory_space<vmem>>, vector<32x128xf32>,
    %c3_i32 = arith.constant 3 : i32
    %124 = arith.index_cast %c3_i32 : i32 to index
    %c0_70 = arith.constant 0 : index
    %125 = vector.load %arg1[%124, %c0_70] : memref<8x128xf32, #tpu.memory_space<vmem>>, vector<1x128xf32>
    %c32_71 = arith.constant 32 : index
    %c0_72 = arith.constant 0 : index
    %126 = vector.load %arg6[%c32_71, %c0_72] : memref<40x128xf32, #tpu.memory_space<vmem>>, vector<1x128xf32>
    tpu.vector_store %arg6[%c32_71, %c0_72], %125 {strides = array<i32>} : memref<40x128xf32, #tpu.memory_space<vmem>>, vector<1x128xf32>,
    %c0_73 = arith.constant 0 : index
    %c0_74 = arith.constant 0 : index
    %127 = vector.load %arg6[%c0_73, %c0_74] : memref<40x128xf32, #tpu.memory_space<vmem>>, vector<40x128xf32>
    %c0_75 = arith.constant 0 : index
    %c0_76 = arith.constant 0 : index
    %128 = vector.load %arg7[%c0_75, %c0_76] : memref<32x128xf32, #tpu.memory_space<vmem>>, vector<32x128xf32>
    %cst_77 = arith.constant dense<0.000000e+00> : vector<128x128xf32>
    %129 = tpu.matmul %0, %127, %cst_77 {dimension_numbers = #tpu.dot_dimension_numbers<[1], [0], [0], [1], [0, 0, 1, 1], [], []>, precision = #tpu.contract_precision<fp32>} : vector<128x40xf32>, vector<40x128xf32>, vector<128x128xf32> -> vector<128x128xf32>
    %130 = vector.extract_strided_slice %129 {offsets = [0, 0], sizes = [32, 128], strides = [1, 1]} : vector<128x128xf32> to vector<32x128xf32>
    %cst_78 = arith.constant 5.000000e-01 : f32
    %131 = vector.broadcast %cst_78 : f32 to vector<32x128xf32>
    %132 = arith.mulf %131, %130 : vector<32x128xf32>
    %133 = math.tanh %132 : vector<32x128xf32>
    %cst_79 = arith.constant 5.000000e-01 : f32
    %134 = vector.broadcast %cst_79 : f32 to vector<32x128xf32>
    %135 = arith.mulf %134, %133 : vector<32x128xf32>
    %cst_80 = arith.constant 5.000000e-01 : f32
    %136 = vector.broadcast %cst_80 : f32 to vector<32x128xf32>
    %137 = arith.addf %135, %136 : vector<32x128xf32>
    %138 = vector.extract_strided_slice %129 {offsets = [32, 0], sizes = [32, 128], strides = [1, 1]} : vector<128x128xf32> to vector<32x128xf32>
    %cst_81 = arith.constant 5.000000e-01 : f32
    %139 = vector.broadcast %cst_81 : f32 to vector<32x128xf32>
    %140 = arith.mulf %139, %138 : vector<32x128xf32>
    %141 = math.tanh %140 : vector<32x128xf32>
    %cst_82 = arith.constant 5.000000e-01 : f32
    %142 = vector.broadcast %cst_82 : f32 to vector<32x128xf32>
    %143 = arith.mulf %142, %141 : vector<32x128xf32>
    %cst_83 = arith.constant 5.000000e-01 : f32
    %144 = vector.broadcast %cst_83 : f32 to vector<32x128xf32>
    %145 = arith.addf %143, %144 : vector<32x128xf32>
    %146 = vector.extract_strided_slice %129 {offsets = [64, 0], sizes = [32, 128], strides = [1, 1]} : vector<128x128xf32> to vector<32x128xf32>
    %147 = math.tanh %146 : vector<32x128xf32>
    %148 = vector.extract_strided_slice %129 {offsets = [96, 0], sizes = [32, 128], strides = [1, 1]} : vector<128x128xf32> to vector<32x128xf32>
    %cst_84 = arith.constant 5.000000e-01 : f32
    %149 = vector.broadcast %cst_84 : f32 to vector<32x128xf32>
    %150 = arith.mulf %149, %148 : vector<32x128xf32>
    %151 = math.tanh %150 : vector<32x128xf32>
    %cst_85 = arith.constant 5.000000e-01 : f32
    %152 = vector.broadcast %cst_85 : f32 to vector<32x128xf32>
    %153 = arith.mulf %152, %151 : vector<32x128xf32>
    %cst_86 = arith.constant 5.000000e-01 : f32
    %154 = vector.broadcast %cst_86 : f32 to vector<32x128xf32>
    %155 = arith.addf %153, %154 : vector<32x128xf32>
    %156 = arith.mulf %145, %128 : vector<32x128xf32>
    %157 = arith.mulf %137, %147 : vector<32x128xf32>
    %158 = arith.addf %156, %157 : vector<32x128xf32>
    %159 = math.tanh %158 : vector<32x128xf32>
    %160 = arith.mulf %155, %159 : vector<32x128xf32>
    %c0_87 = arith.constant 0 : index
    %c0_88 = arith.constant 0 : index
    %161 = vector.load %arg7[%c0_87, %c0_88] : memref<32x128xf32, #tpu.memory_space<vmem>>, vector<32x128xf32>
    tpu.vector_store %arg7[%c0_87, %c0_88], %158 {strides = array<i32>} : memref<32x128xf32, #tpu.memory_space<vmem>>, vector<32x128xf32>,
    %c0_89 = arith.constant 0 : index
    %c0_90 = arith.constant 0 : index
    %162 = vector.load %arg6[%c0_89, %c0_90] : memref<40x128xf32, #tpu.memory_space<vmem>>, vector<32x128xf32>
    tpu.vector_store %arg6[%c0_89, %c0_90], %160 {strides = array<i32>} : memref<40x128xf32, #tpu.memory_space<vmem>>, vector<32x128xf32>,
    %c4_i32 = arith.constant 4 : i32
    %163 = arith.index_cast %c4_i32 : i32 to index
    %c0_91 = arith.constant 0 : index
    %164 = vector.load %arg1[%163, %c0_91] : memref<8x128xf32, #tpu.memory_space<vmem>>, vector<1x128xf32>
    %c32_92 = arith.constant 32 : index
    %c0_93 = arith.constant 0 : index
    %165 = vector.load %arg6[%c32_92, %c0_93] : memref<40x128xf32, #tpu.memory_space<vmem>>, vector<1x128xf32>
    tpu.vector_store %arg6[%c32_92, %c0_93], %164 {strides = array<i32>} : memref<40x128xf32, #tpu.memory_space<vmem>>, vector<1x128xf32>,
    %c0_94 = arith.constant 0 : index
    %c0_95 = arith.constant 0 : index
    %166 = vector.load %arg6[%c0_94, %c0_95] : memref<40x128xf32, #tpu.memory_space<vmem>>, vector<40x128xf32>
    %c0_96 = arith.constant 0 : index
    %c0_97 = arith.constant 0 : index
    %167 = vector.load %arg7[%c0_96, %c0_97] : memref<32x128xf32, #tpu.memory_space<vmem>>, vector<32x128xf32>
    %cst_98 = arith.constant dense<0.000000e+00> : vector<128x128xf32>
    %168 = tpu.matmul %0, %166, %cst_98 {dimension_numbers = #tpu.dot_dimension_numbers<[1], [0], [0], [1], [0, 0, 1, 1], [], []>, precision = #tpu.contract_precision<fp32>} : vector<128x40xf32>, vector<40x128xf32>, vector<128x128xf32> -> vector<128x128xf32>
    %169 = vector.extract_strided_slice %168 {offsets = [0, 0], sizes = [32, 128], strides = [1, 1]} : vector<128x128xf32> to vector<32x128xf32>
    %cst_99 = arith.constant 5.000000e-01 : f32
    %170 = vector.broadcast %cst_99 : f32 to vector<32x128xf32>
    %171 = arith.mulf %170, %169 : vector<32x128xf32>
    %172 = math.tanh %171 : vector<32x128xf32>
    %cst_100 = arith.constant 5.000000e-01 : f32
    %173 = vector.broadcast %cst_100 : f32 to vector<32x128xf32>
    %174 = arith.mulf %173, %172 : vector<32x128xf32>
    %cst_101 = arith.constant 5.000000e-01 : f32
    %175 = vector.broadcast %cst_101 : f32 to vector<32x128xf32>
    %176 = arith.addf %174, %175 : vector<32x128xf32>
    %177 = vector.extract_strided_slice %168 {offsets = [32, 0], sizes = [32, 128], strides = [1, 1]} : vector<128x128xf32> to vector<32x128xf32>
    %cst_102 = arith.constant 5.000000e-01 : f32
    %178 = vector.broadcast %cst_102 : f32 to vector<32x128xf32>
    %179 = arith.mulf %178, %177 : vector<32x128xf32>
    %180 = math.tanh %179 : vector<32x128xf32>
    %cst_103 = arith.constant 5.000000e-01 : f32
    %181 = vector.broadcast %cst_103 : f32 to vector<32x128xf32>
    %182 = arith.mulf %181, %180 : vector<32x128xf32>
    %cst_104 = arith.constant 5.000000e-01 : f32
    %183 = vector.broadcast %cst_104 : f32 to vector<32x128xf32>
    %184 = arith.addf %182, %183 : vector<32x128xf32>
    %185 = vector.extract_strided_slice %168 {offsets = [64, 0], sizes = [32, 128], strides = [1, 1]} : vector<128x128xf32> to vector<32x128xf32>
    %186 = math.tanh %185 : vector<32x128xf32>
    %187 = vector.extract_strided_slice %168 {offsets = [96, 0], sizes = [32, 128], strides = [1, 1]} : vector<128x128xf32> to vector<32x128xf32>
    %cst_105 = arith.constant 5.000000e-01 : f32
    %188 = vector.broadcast %cst_105 : f32 to vector<32x128xf32>
    %189 = arith.mulf %188, %187 : vector<32x128xf32>
    %190 = math.tanh %189 : vector<32x128xf32>
    %cst_106 = arith.constant 5.000000e-01 : f32
    %191 = vector.broadcast %cst_106 : f32 to vector<32x128xf32>
    %192 = arith.mulf %191, %190 : vector<32x128xf32>
    %cst_107 = arith.constant 5.000000e-01 : f32
    %193 = vector.broadcast %cst_107 : f32 to vector<32x128xf32>
    %194 = arith.addf %192, %193 : vector<32x128xf32>
    %195 = arith.mulf %184, %167 : vector<32x128xf32>
    %196 = arith.mulf %176, %186 : vector<32x128xf32>
    %197 = arith.addf %195, %196 : vector<32x128xf32>
    %198 = math.tanh %197 : vector<32x128xf32>
    %199 = arith.mulf %194, %198 : vector<32x128xf32>
    %c0_108 = arith.constant 0 : index
    %c0_109 = arith.constant 0 : index
    %200 = vector.load %arg7[%c0_108, %c0_109] : memref<32x128xf32, #tpu.memory_space<vmem>>, vector<32x128xf32>
    tpu.vector_store %arg7[%c0_108, %c0_109], %197 {strides = array<i32>} : memref<32x128xf32, #tpu.memory_space<vmem>>, vector<32x128xf32>,
    %c0_110 = arith.constant 0 : index
    %c0_111 = arith.constant 0 : index
    %201 = vector.load %arg6[%c0_110, %c0_111] : memref<40x128xf32, #tpu.memory_space<vmem>>, vector<32x128xf32>
    tpu.vector_store %arg6[%c0_110, %c0_111], %199 {strides = array<i32>} : memref<40x128xf32, #tpu.memory_space<vmem>>, vector<32x128xf32>,
    %c5_i32 = arith.constant 5 : i32
    %202 = arith.index_cast %c5_i32 : i32 to index
    %c0_112 = arith.constant 0 : index
    %203 = vector.load %arg1[%202, %c0_112] : memref<8x128xf32, #tpu.memory_space<vmem>>, vector<1x128xf32>
    %c32_113 = arith.constant 32 : index
    %c0_114 = arith.constant 0 : index
    %204 = vector.load %arg6[%c32_113, %c0_114] : memref<40x128xf32, #tpu.memory_space<vmem>>, vector<1x128xf32>
    tpu.vector_store %arg6[%c32_113, %c0_114], %203 {strides = array<i32>} : memref<40x128xf32, #tpu.memory_space<vmem>>, vector<1x128xf32>,
    %c0_115 = arith.constant 0 : index
    %c0_116 = arith.constant 0 : index
    %205 = vector.load %arg6[%c0_115, %c0_116] : memref<40x128xf32, #tpu.memory_space<vmem>>, vector<40x128xf32>
    %c0_117 = arith.constant 0 : index
    %c0_118 = arith.constant 0 : index
    %206 = vector.load %arg7[%c0_117, %c0_118] : memref<32x128xf32, #tpu.memory_space<vmem>>, vector<32x128xf32>
    %cst_119 = arith.constant dense<0.000000e+00> : vector<128x128xf32>
    %207 = tpu.matmul %0, %205, %cst_119 {dimension_numbers = #tpu.dot_dimension_numbers<[1], [0], [0], [1], [0, 0, 1, 1], [], []>, precision = #tpu.contract_precision<fp32>} : vector<128x40xf32>, vector<40x128xf32>, vector<128x128xf32> -> vector<128x128xf32>
    %208 = vector.extract_strided_slice %207 {offsets = [0, 0], sizes = [32, 128], strides = [1, 1]} : vector<128x128xf32> to vector<32x128xf32>
    %cst_120 = arith.constant 5.000000e-01 : f32
    %209 = vector.broadcast %cst_120 : f32 to vector<32x128xf32>
    %210 = arith.mulf %209, %208 : vector<32x128xf32>
    %211 = math.tanh %210 : vector<32x128xf32>
    %cst_121 = arith.constant 5.000000e-01 : f32
    %212 = vector.broadcast %cst_121 : f32 to vector<32x128xf32>
    %213 = arith.mulf %212, %211 : vector<32x128xf32>
    %cst_122 = arith.constant 5.000000e-01 : f32
    %214 = vector.broadcast %cst_122 : f32 to vector<32x128xf32>
    %215 = arith.addf %213, %214 : vector<32x128xf32>
    %216 = vector.extract_strided_slice %207 {offsets = [32, 0], sizes = [32, 128], strides = [1, 1]} : vector<128x128xf32> to vector<32x128xf32>
    %cst_123 = arith.constant 5.000000e-01 : f32
    %217 = vector.broadcast %cst_123 : f32 to vector<32x128xf32>
    %218 = arith.mulf %217, %216 : vector<32x128xf32>
    %219 = math.tanh %218 : vector<32x128xf32>
    %cst_124 = arith.constant 5.000000e-01 : f32
    %220 = vector.broadcast %cst_124 : f32 to vector<32x128xf32>
    %221 = arith.mulf %220, %219 : vector<32x128xf32>
    %cst_125 = arith.constant 5.000000e-01 : f32
    %222 = vector.broadcast %cst_125 : f32 to vector<32x128xf32>
    %223 = arith.addf %221, %222 : vector<32x128xf32>
    %224 = vector.extract_strided_slice %207 {offsets = [64, 0], sizes = [32, 128], strides = [1, 1]} : vector<128x128xf32> to vector<32x128xf32>
    %225 = math.tanh %224 : vector<32x128xf32>
    %226 = vector.extract_strided_slice %207 {offsets = [96, 0], sizes = [32, 128], strides = [1, 1]} : vector<128x128xf32> to vector<32x128xf32>
    %cst_126 = arith.constant 5.000000e-01 : f32
    %227 = vector.broadcast %cst_126 : f32 to vector<32x128xf32>
    %228 = arith.mulf %227, %226 : vector<32x128xf32>
    %229 = math.tanh %228 : vector<32x128xf32>
    %cst_127 = arith.constant 5.000000e-01 : f32
    %230 = vector.broadcast %cst_127 : f32 to vector<32x128xf32>
    %231 = arith.mulf %230, %229 : vector<32x128xf32>
    %cst_128 = arith.constant 5.000000e-01 : f32
    %232 = vector.broadcast %cst_128 : f32 to vector<32x128xf32>
    %233 = arith.addf %231, %232 : vector<32x128xf32>
    %234 = arith.mulf %223, %206 : vector<32x128xf32>
    %235 = arith.mulf %215, %225 : vector<32x128xf32>
    %236 = arith.addf %234, %235 : vector<32x128xf32>
    %237 = math.tanh %236 : vector<32x128xf32>
    %238 = arith.mulf %233, %237 : vector<32x128xf32>
    %c0_129 = arith.constant 0 : index
    %c0_130 = arith.constant 0 : index
    %239 = vector.load %arg7[%c0_129, %c0_130] : memref<32x128xf32, #tpu.memory_space<vmem>>, vector<32x128xf32>
    tpu.vector_store %arg7[%c0_129, %c0_130], %236 {strides = array<i32>} : memref<32x128xf32, #tpu.memory_space<vmem>>, vector<32x128xf32>,
    %c0_131 = arith.constant 0 : index
    %c0_132 = arith.constant 0 : index
    %240 = vector.load %arg6[%c0_131, %c0_132] : memref<40x128xf32, #tpu.memory_space<vmem>>, vector<32x128xf32>
    tpu.vector_store %arg6[%c0_131, %c0_132], %238 {strides = array<i32>} : memref<40x128xf32, #tpu.memory_space<vmem>>, vector<32x128xf32>,
    %c6_i32 = arith.constant 6 : i32
    %241 = arith.index_cast %c6_i32 : i32 to index
    %c0_133 = arith.constant 0 : index
    %242 = vector.load %arg1[%241, %c0_133] : memref<8x128xf32, #tpu.memory_space<vmem>>, vector<1x128xf32>
    %c32_134 = arith.constant 32 : index
    %c0_135 = arith.constant 0 : index
    %243 = vector.load %arg6[%c32_134, %c0_135] : memref<40x128xf32, #tpu.memory_space<vmem>>, vector<1x128xf32>
    tpu.vector_store %arg6[%c32_134, %c0_135], %242 {strides = array<i32>} : memref<40x128xf32, #tpu.memory_space<vmem>>, vector<1x128xf32>,
    %c0_136 = arith.constant 0 : index
    %c0_137 = arith.constant 0 : index
    %244 = vector.load %arg6[%c0_136, %c0_137] : memref<40x128xf32, #tpu.memory_space<vmem>>, vector<40x128xf32>
    %c0_138 = arith.constant 0 : index
    %c0_139 = arith.constant 0 : index
    %245 = vector.load %arg7[%c0_138, %c0_139] : memref<32x128xf32, #tpu.memory_space<vmem>>, vector<32x128xf32>
    %cst_140 = arith.constant dense<0.000000e+00> : vector<128x128xf32>
    %246 = tpu.matmul %0, %244, %cst_140 {dimension_numbers = #tpu.dot_dimension_numbers<[1], [0], [0], [1], [0, 0, 1, 1], [], []>, precision = #tpu.contract_precision<fp32>} : vector<128x40xf32>, vector<40x128xf32>, vector<128x128xf32> -> vector<128x128xf32>
    %247 = vector.extract_strided_slice %246 {offsets = [0, 0], sizes = [32, 128], strides = [1, 1]} : vector<128x128xf32> to vector<32x128xf32>
    %cst_141 = arith.constant 5.000000e-01 : f32
    %248 = vector.broadcast %cst_141 : f32 to vector<32x128xf32>
    %249 = arith.mulf %248, %247 : vector<32x128xf32>
    %250 = math.tanh %249 : vector<32x128xf32>
    %cst_142 = arith.constant 5.000000e-01 : f32
    %251 = vector.broadcast %cst_142 : f32 to vector<32x128xf32>
    %252 = arith.mulf %251, %250 : vector<32x128xf32>
    %cst_143 = arith.constant 5.000000e-01 : f32
    %253 = vector.broadcast %cst_143 : f32 to vector<32x128xf32>
    %254 = arith.addf %252, %253 : vector<32x128xf32>
    %255 = vector.extract_strided_slice %246 {offsets = [32, 0], sizes = [32, 128], strides = [1, 1]} : vector<128x128xf32> to vector<32x128xf32>
    %cst_144 = arith.constant 5.000000e-01 : f32
    %256 = vector.broadcast %cst_144 : f32 to vector<32x128xf32>
    %257 = arith.mulf %256, %255 : vector<32x128xf32>
    %258 = math.tanh %257 : vector<32x128xf32>
    %cst_145 = arith.constant 5.000000e-01 : f32
    %259 = vector.broadcast %cst_145 : f32 to vector<32x128xf32>
    %260 = arith.mulf %259, %258 : vector<32x128xf32>
    %cst_146 = arith.constant 5.000000e-01 : f32
    %261 = vector.broadcast %cst_146 : f32 to vector<32x128xf32>
    %262 = arith.addf %260, %261 : vector<32x128xf32>
    %263 = vector.extract_strided_slice %246 {offsets = [64, 0], sizes = [32, 128], strides = [1, 1]} : vector<128x128xf32> to vector<32x128xf32>
    %264 = math.tanh %263 : vector<32x128xf32>
    %265 = vector.extract_strided_slice %246 {offsets = [96, 0], sizes = [32, 128], strides = [1, 1]} : vector<128x128xf32> to vector<32x128xf32>
    %cst_147 = arith.constant 5.000000e-01 : f32
    %266 = vector.broadcast %cst_147 : f32 to vector<32x128xf32>
    %267 = arith.mulf %266, %265 : vector<32x128xf32>
    %268 = math.tanh %267 : vector<32x128xf32>
    %cst_148 = arith.constant 5.000000e-01 : f32
    %269 = vector.broadcast %cst_148 : f32 to vector<32x128xf32>
    %270 = arith.mulf %269, %268 : vector<32x128xf32>
    %cst_149 = arith.constant 5.000000e-01 : f32
    %271 = vector.broadcast %cst_149 : f32 to vector<32x128xf32>
    %272 = arith.addf %270, %271 : vector<32x128xf32>
    %273 = arith.mulf %262, %245 : vector<32x128xf32>
    %274 = arith.mulf %254, %264 : vector<32x128xf32>
    %275 = arith.addf %273, %274 : vector<32x128xf32>
    %276 = math.tanh %275 : vector<32x128xf32>
    %277 = arith.mulf %272, %276 : vector<32x128xf32>
    %c0_150 = arith.constant 0 : index
    %c0_151 = arith.constant 0 : index
    %278 = vector.load %arg7[%c0_150, %c0_151] : memref<32x128xf32, #tpu.memory_space<vmem>>, vector<32x128xf32>
    tpu.vector_store %arg7[%c0_150, %c0_151], %275 {strides = array<i32>} : memref<32x128xf32, #tpu.memory_space<vmem>>, vector<32x128xf32>,
    %c0_152 = arith.constant 0 : index
    %c0_153 = arith.constant 0 : index
    %279 = vector.load %arg6[%c0_152, %c0_153] : memref<40x128xf32, #tpu.memory_space<vmem>>, vector<32x128xf32>
    tpu.vector_store %arg6[%c0_152, %c0_153], %277 {strides = array<i32>} : memref<40x128xf32, #tpu.memory_space<vmem>>, vector<32x128xf32>,
    %c7_i32 = arith.constant 7 : i32
    %280 = arith.index_cast %c7_i32 : i32 to index
    %c0_154 = arith.constant 0 : index
    %281 = vector.load %arg1[%280, %c0_154] : memref<8x128xf32, #tpu.memory_space<vmem>>, vector<1x128xf32>
    %c32_155 = arith.constant 32 : index
    %c0_156 = arith.constant 0 : index
    %282 = vector.load %arg6[%c32_155, %c0_156] : memref<40x128xf32, #tpu.memory_space<vmem>>, vector<1x128xf32>
    tpu.vector_store %arg6[%c32_155, %c0_156], %281 {strides = array<i32>} : memref<40x128xf32, #tpu.memory_space<vmem>>, vector<1x128xf32>,
    %c0_157 = arith.constant 0 : index
    %c0_158 = arith.constant 0 : index
    %283 = vector.load %arg6[%c0_157, %c0_158] : memref<40x128xf32, #tpu.memory_space<vmem>>, vector<40x128xf32>
    %c0_159 = arith.constant 0 : index
    %c0_160 = arith.constant 0 : index
    %284 = vector.load %arg7[%c0_159, %c0_160] : memref<32x128xf32, #tpu.memory_space<vmem>>, vector<32x128xf32>
    %cst_161 = arith.constant dense<0.000000e+00> : vector<128x128xf32>
    %285 = tpu.matmul %0, %283, %cst_161 {dimension_numbers = #tpu.dot_dimension_numbers<[1], [0], [0], [1], [0, 0, 1, 1], [], []>, precision = #tpu.contract_precision<fp32>} : vector<128x40xf32>, vector<40x128xf32>, vector<128x128xf32> -> vector<128x128xf32>
    %286 = vector.extract_strided_slice %285 {offsets = [0, 0], sizes = [32, 128], strides = [1, 1]} : vector<128x128xf32> to vector<32x128xf32>
    %cst_162 = arith.constant 5.000000e-01 : f32
    %287 = vector.broadcast %cst_162 : f32 to vector<32x128xf32>
    %288 = arith.mulf %287, %286 : vector<32x128xf32>
    %289 = math.tanh %288 : vector<32x128xf32>
    %cst_163 = arith.constant 5.000000e-01 : f32
    %290 = vector.broadcast %cst_163 : f32 to vector<32x128xf32>
    %291 = arith.mulf %290, %289 : vector<32x128xf32>
    %cst_164 = arith.constant 5.000000e-01 : f32
    %292 = vector.broadcast %cst_164 : f32 to vector<32x128xf32>
    %293 = arith.addf %291, %292 : vector<32x128xf32>
    %294 = vector.extract_strided_slice %285 {offsets = [32, 0], sizes = [32, 128], strides = [1, 1]} : vector<128x128xf32> to vector<32x128xf32>
    %cst_165 = arith.constant 5.000000e-01 : f32
    %295 = vector.broadcast %cst_165 : f32 to vector<32x128xf32>
    %296 = arith.mulf %295, %294 : vector<32x128xf32>
    %297 = math.tanh %296 : vector<32x128xf32>
    %cst_166 = arith.constant 5.000000e-01 : f32
    %298 = vector.broadcast %cst_166 : f32 to vector<32x128xf32>
    %299 = arith.mulf %298, %297 : vector<32x128xf32>
    %cst_167 = arith.constant 5.000000e-01 : f32
    %300 = vector.broadcast %cst_167 : f32 to vector<32x128xf32>
    %301 = arith.addf %299, %300 : vector<32x128xf32>
    %302 = vector.extract_strided_slice %285 {offsets = [64, 0], sizes = [32, 128], strides = [1, 1]} : vector<128x128xf32> to vector<32x128xf32>
    %303 = math.tanh %302 : vector<32x128xf32>
    %304 = vector.extract_strided_slice %285 {offsets = [96, 0], sizes = [32, 128], strides = [1, 1]} : vector<128x128xf32> to vector<32x128xf32>
    %cst_168 = arith.constant 5.000000e-01 : f32
    %305 = vector.broadcast %cst_168 : f32 to vector<32x128xf32>
    %306 = arith.mulf %305, %304 : vector<32x128xf32>
    %307 = math.tanh %306 : vector<32x128xf32>
    %cst_169 = arith.constant 5.000000e-01 : f32
    %308 = vector.broadcast %cst_169 : f32 to vector<32x128xf32>
    %309 = arith.mulf %308, %307 : vector<32x128xf32>
    %cst_170 = arith.constant 5.000000e-01 : f32
    %310 = vector.broadcast %cst_170 : f32 to vector<32x128xf32>
    %311 = arith.addf %309, %310 : vector<32x128xf32>
    %312 = arith.mulf %301, %284 : vector<32x128xf32>
    %313 = arith.mulf %293, %303 : vector<32x128xf32>
    %314 = arith.addf %312, %313 : vector<32x128xf32>
    %315 = math.tanh %314 : vector<32x128xf32>
    %316 = arith.mulf %311, %315 : vector<32x128xf32>
    %c0_171 = arith.constant 0 : index
    %c0_172 = arith.constant 0 : index
    %317 = vector.load %arg7[%c0_171, %c0_172] : memref<32x128xf32, #tpu.memory_space<vmem>>, vector<32x128xf32>
    tpu.vector_store %arg7[%c0_171, %c0_172], %314 {strides = array<i32>} : memref<32x128xf32, #tpu.memory_space<vmem>>, vector<32x128xf32>,
    %c0_173 = arith.constant 0 : index
    %c0_174 = arith.constant 0 : index
    %318 = vector.load %arg6[%c0_173, %c0_174] : memref<40x128xf32, #tpu.memory_space<vmem>>, vector<32x128xf32>
    tpu.vector_store %arg6[%c0_173, %c0_174], %316 {strides = array<i32>} : memref<40x128xf32, #tpu.memory_space<vmem>>, vector<32x128xf32>,
    %c8_i32 = arith.constant 8 : i32
    %c0_175 = arith.constant 0 : index
    %c0_176 = arith.constant 0 : index
    %319 = vector.load %arg6[%c0_175, %c0_176] : memref<40x128xf32, #tpu.memory_space<vmem>>, vector<32x128xf32>
    %c0_177 = arith.constant 0 : index
    %c0_178 = arith.constant 0 : index
    %320 = vector.load %arg3[%c0_177, %c0_178] : memref<8x32xf32, #tpu.memory_space<vmem>>, vector<8x32xf32>
    %cst_179 = arith.constant dense<0.000000e+00> : vector<8x128xf32>
    %321 = tpu.matmul %320, %319, %cst_179 {dimension_numbers = #tpu.dot_dimension_numbers<[1], [0], [0], [1], [0, 0, 1, 1], [], []>, precision = #tpu.contract_precision<fp32>} : vector<8x32xf32>, vector<32x128xf32>, vector<8x128xf32> -> vector<8x128xf32>
    %c0_180 = arith.constant 0 : index
    %c0_181 = arith.constant 0 : index
    %322 = vector.load %arg4[%c0_180, %c0_181] : memref<8x1xf32, #tpu.memory_space<vmem>>, vector<8x1xf32>
    %323 = vector.broadcast %322 : vector<8x1xf32> to vector<8x128xf32>
    %324 = arith.addf %321, %323 : vector<8x128xf32>
    %c0_182 = arith.constant 0 : index
    %c0_183 = arith.constant 0 : index
    %325 = vector.load %arg5[%c0_182, %c0_183] : memref<8x128xf32, #tpu.memory_space<vmem>>, vector<8x128xf32>
    tpu.vector_store %arg5[%c0_182, %c0_183], %324 {strides = array<i32>} : memref<8x128xf32, #tpu.memory_space<vmem>>, vector<8x128xf32>,
    return
  }
  func.func @transform_0(%arg0: i32) -> (i32, i32) {
    %c0_i32 = arith.constant 0 : i32
    %c0_i32_0 = arith.constant 0 : i32
    return %c0_i32, %arg0 : i32, i32
  }
  func.func @transform_1(%arg0: i32) -> (i32, i32) {
    %c0_i32 = arith.constant 0 : i32
    %c0_i32_0 = arith.constant 0 : i32
    %c0_i32_1 = arith.constant 0 : i32
    return %c0_i32, %c0_i32_0 : i32, i32
  }
  func.func @transform_2(%arg0: i32) -> (i32, i32) {
    %c0_i32 = arith.constant 0 : i32
    %c0_i32_0 = arith.constant 0 : i32
    %c0_i32_1 = arith.constant 0 : i32
    return %c0_i32, %c0_i32_0 : i32, i32
  }
  func.func @transform_3(%arg0: i32) -> (i32, i32) {
    %c0_i32 = arith.constant 0 : i32
    %c0_i32_0 = arith.constant 0 : i32
    %c0_i32_1 = arith.constant 0 : i32
    return %c0_i32, %c0_i32_0 : i32, i32
  }
  func.func @transform_4(%arg0: i32) -> (i32, i32) {
    %c0_i32 = arith.constant 0 : i32
    %c0_i32_0 = arith.constant 0 : i32
    return %c0_i32, %arg0 : i32, i32
  }
}

</mosaic_0001>

<bundles_post_ra>
// kernel: blstm_forward.1
= control target key start
LH: loop header
LB: loop body
LE: loop exit
PB: predicated region body
PF: predicated region fallthrough
CT: control target
= control target key end

     0   :  { %s14888_s15 = smov 0   ;;  %s16442_s0 = inlined_call_operand.vmem [shape: f32[8,256], index: 0, kind: input, shape index: {}]   ;;  %s16443_s1 = inlined_call_operand.vmem [shape: f32[128,40], index: 1, kind: input, shape index: {}]   ;;  %s16444_s2 = inlined_call_operand.vmem [shape: f32[8,32], index: 2, kind: input, shape index: {}]   ;;  %s16445_s3 = inlined_call_operand.vmem [shape: f32[8,1], index: 3, kind: input, shape index: {}]   ;;  %s16446_s4 = inlined_call_operand.vmem [shape: f32[8,256], index: 4, kind: output, shape index: {}]  }
   0x1 LB: > { %s10694_s16 = sadd.s32 4294967295, %s14856_s15   ;;  %p10698_p0 = scmp.ge.s32.totalorder %s14856_s15, 1  ;;  %s14856_s15 = sphi %s14888_s15, %s14_s15  }
   0x2   : > { %p161_p1 = scmp.lt.s32.totalorder %s14856_s15, 3 }
   0x4   : > { %p162_p2 = pnand %p10698_p0, %p161_p1 }
   0x6   : > { %165 = sbr.rel (%p162_p2) target bundleno = 3721 (0xe89), region = 36 }
   0xd   : > { %p185_p3 = scmp.lt.s32.totalorder %s10694_s16, 1  ;;  %v193_v0 = vld [vmem:[%s16443_s1] sm:$0xff]  ;;  %v16447_v1 = vmov 0.0   ;;  %vm230_vm0 = vcmask 326656   ;;  %v14859_v2 = vmov 1.0   ;;  %v16449_v4 = vmov 0.0|0.0  }
   0xe   : > { %213 = vst [vmem:[#allocation2 + $0x20] sm:$0xff] %v16447_v1  ;;  %v232_v3 = vsel %vm230_vm0, %v193_v0, 0  ;;  %13440 = vmatprep.subr.bf16.mxu0 %v16449_v4  ;;  %v194_v6 = vld [vmem:[%s16443_s1 + $0x8] sm:$0xff]  ;;  %13859 = vmatprep.subr.bf16.mxu1 %v16449_v4  ;;  %v195_v8 = vld [vmem:[%s16443_s1 + $0x10] sm:$0xff]  ;;  %v196_v9 = vld [vmem:[%s16443_s1 + $0x18] sm:$0xff]  ;;  %vm14861_vm1 = vmmov 0  }
   0xf   : > { %s16778_s16 = smov (!%p185_p3, %s10694_s16), 1  ;;  %214 = vst [vmem:[#allocation2 + $0x21] sm:$0x1] %v14859_v2  ;;  %v14912_v5 = vand.u32 4294901760, %v232_v3  ;;  %13442 = vmatpush3.bf16.msra.mxu0 %v16449_v4  ;;  %13862 = vmatpush3.bf16.msra.mxu1 %v16449_v4  ;;  %v197_v11 = vld [vmem:[%s16443_s1 + $0x20] sm:$0xff]  ;;  %v235_v12 = vsel %vm230_vm0, %v194_v6, 0 }
  0x10   : > { %s10699_s19 = sshll.u32 %s16778_s16, 3  ;;  %13444 = vmatprep.subr.bf16.mxu0 %v16449_v4  ;;  %13860 = vmatprep.subr.bf16.mxu1 %v16449_v4  ;;  %v198_v13 = vld [vmem:[%s16443_s1 + $0x28] sm:$0xff]  ;;  %v14942_v15 = vand.u32 4294901760, %v235_v12  ;;  %v238_v16 = vsel %vm230_vm0, %v195_v8, 0  ;;  %v241_v17 = vsel %vm230_vm0, %v196_v9, 0  ;;  %v244_v20 = vsel %vm230_vm0, %v197_v11, 0 }
  0x11   : > { %s14910_s22 = scalar_lea.vmem %s16442_s0, %s10699_s19  ;;  %v14929_v10 = vsub.f32 %v232_v3, %v14912_v5  ;;  %v14947_v18 = vand.u32 4294901760, %v238_v16  ;;  %v14949_v19 = vand.u32 4294901760, %v241_v17  ;;  %v14958_v23 = vand.u32 4294901760, %v244_v20  ;;  %v199_v52 = vld [vmem:[%s16443_s1 + $0x30] sm:$0xff]  ;;  %v200_v53 = vld [vmem:[%s16443_s1 + $0x38] sm:$0xff]  ;;  %v201_v55 = vld [vmem:[%s16443_s1 + $0x40] sm:$0xff]  ;;  %s192_s10 = scalar_lea.vmem %s16446_s4, %s10699_s19 }
  0x12   : > { %v219_v7 = vld [vmem:[%s14910_s22] sm:$0x1]  ;;  %v14956_v22 = vsub.f32 %v235_v12, %v14942_v15  ;;  %v247_v24 = vsel %vm230_vm0, %v198_v13, 0  ;;  %v250_v54 = vsel %vm230_vm0, %v199_v52, 0  ;;  %v253_v56 = vsel %vm230_vm0, %v200_v53, 0  ;;  %v202_v57 = vld [vmem:[%s16443_s1 + $0x48] sm:$0xff] }
  0x13   : > { %220 = vst [vmem:[#allocation2 + $0x20] sm:$0x1] %v219_v7  ;;  %v14940_v14 = vand.u32 4294901760, %v14929_v10  ;;  %13446 = vmatpush3.bf16.msra.mxu0 %v16449_v4  ;;  %13863 = vmatpush3.bf16.msra.mxu1 %v16449_v4  ;;  %v14962_v25 = vsub.f32 %v238_v16, %v14947_v18  ;;  %v14965_v26 = vsub.f32 %v241_v17, %v14949_v19  ;;  %v14967_v27 = vand.u32 4294901760, %v247_v24  ;;  %v203_v61 = vld [vmem:[%s16443_s1 + $0x50] sm:$0xff]  ;;  %v204_v0 = vld [vmem:[%s16443_s1 + $0x58] sm:$0xff] }
  0x14   : > { %v14972_v29 = vand.u32 4294901760, %v14956_v22  ;;  %v14975_v30 = vsub.f32 %v244_v20, %v14958_v23  ;;  %v15052_v58 = vand.u32 4294901760, %v250_v54  ;;  %v256_v59 = vsel %vm230_vm0, %v201_v55, 0  ;;  %v205_v16 = vld [vmem:[%s16443_s1 + $0x60] sm:$0xff]  ;;  %v208_v55 = vld [vmem:[%s16443_s1 + $0x78] sm:$0xff] }
  0x15   : > { %16525 = vst [vmem:[#allocation4_spill] sm:$0xff] %v14940_v14  ;;  %v352_v21 = vsub.f32 %v14929_v10, %v14940_v14  ;;  %16526 = vst [vmem:[#allocation5_spill] sm:$0xff] %v14962_v25  ;;  %v14978_v32 = vand.u32 4294901760, %v14962_v25  ;;  %v14981_v33 = vand.u32 4294901760, %v14965_v26  ;;  %v14984_v34 = vsub.f32 %v247_v24, %v14967_v27 }
  0x16   : > { %16527 = vst [vmem:[#allocation6_spill] sm:$0xff] %v14965_v26  ;;  %16529 = vst [vmem:[#allocation8_spill] sm:$0xff] %v14972_v29  ;;  %v362_v36 = vsub.f32 %v14956_v22, %v14972_v29  ;;  %v14992_v37 = vand.u32 4294901760, %v14975_v30  ;;  %v15056_v60 = vand.u32 4294901760, %v253_v56  ;;  %v259_v62 = vsel %vm230_vm0, %v202_v57, 0 }
  0x17   : > { %v14969_v28 = vand.u32 4294901760, %v352_v21  ;;  %16530 = vst [vmem:[#allocation9_spill] sm:$0xff] %v14975_v30  ;;  %16531 = vst [vmem:[#allocation10_spill] sm:$0xff] %v14978_v32  ;;  %v372_v38 = vsub.f32 %v14962_v25, %v14978_v32  ;;  %v382_v39 = vsub.f32 %v14965_v26, %v14981_v33  ;;  %v14999_v40 = vand.u32 4294901760, %v14984_v34  ;;  %v206_v21 = vld [vmem:[%s16443_s1 + $0x68] sm:$0xff] }
  0x18   : > { %16532 = vst [vmem:[#allocation11_spill] sm:$0xff] %v14981_v33  ;;  %16533 = vst [vmem:[#allocation12_spill] sm:$0xff] %v14984_v34  ;;  %v15002_v41 = vand.u32 4294901760, %v362_v36  ;;  %v392_v42 = vsub.f32 %v14975_v30, %v14992_v37  ;;  %v15066_v63 = vsub.f32 %v250_v54, %v15052_v58  ;;  %v15072_v2 = vsub.f32 %v253_v56, %v15056_v60 }
  0x19   : > { %16528 = vst [vmem:[#allocation7_spill] sm:$0xff] %v14969_v28  ;;  %11751 = vmatprep.mubr.f32.mxu0 %v14969_v28  ;;  %16534 = vst [vmem:[#allocation13_spill] sm:$0xff] %v14992_v37  ;;  %v15011_v44 = vand.u32 4294901760, %v372_v38  ;;  %v15016_v45 = vand.u32 4294901760, %v382_v39  ;;  %v402_v46 = vsub.f32 %v14984_v34, %v14999_v40  ;;  %v15074_v3 = vand.u32 4294901760, %v256_v59 }
  0x1a   : > { %v225_v31 = vld [vmem:[#allocation2 + $0x20] sm:$0xff]  ;;  %16535 = vst [vmem:[#allocation14_spill] sm:$0xff] %v14999_v40  ;;  %v15025_v48 = vand.u32 4294901760, %v392_v42  ;;  %16536 = vst [vmem:[#allocation15_spill] sm:$0xff] %v15066_v63  ;;  %v15078_v6 = vand.u32 4294901760, %v15066_v63  ;;  %v262_v7 = vsel %vm230_vm0, %v203_v61, 0 }
  0x1b   : > { %v14986_v35 = vand.u32 4294901760, %v225_v31  ;;  %v15031_v50 = vand.u32 4294901760, %v402_v46  ;;  %16537 = vst [vmem:[#allocation16_spill] sm:$0xff] %v15072_v2  ;;  %v15081_v8 = vand.u32 4294901760, %v259_v62  ;;  %v15086_v9 = vand.u32 4294901760, %v15072_v2 }
  0x1c   : > { %16538 = vst [vmem:[#allocation17_spill] sm:$0xff] %v15078_v6  ;;  %v265_v11 = vsel %vm230_vm0, %v204_v0, 0  ;;  %v15091_v12 = vsub.f32 %v256_v59, %v15074_v3  ;;  %v412_v13 = vsub.f32 %v15066_v63, %v15078_v6  ;;  %v15106_v24 = vand.u32 4294901760, %v262_v7 }
  0x1d   : > { %11749 = vmatprep.subr.mxu0 %v14986_v35  ;;  %v15007_v43 = vsub.f32 %v225_v31, %v14986_v35  ;;  %13861 = vmatprep.subr.mxu1 %v14986_v35  ;;  %16539 = vst [vmem:[#allocation18_spill] sm:$0xff] %v15086_v9  ;;  %v15099_v17 = vsub.f32 %v259_v62, %v15081_v8  ;;  %v15114_v38 = vand.u32 4294901760, %v265_v11  ;;  %v268_v46 = vsel %vm230_vm0, %v205_v16, 0 }
  0x1e   : > { %11750 = vmatpush3.msra.mxu0 %v14986_v35  ;;  %13864 = vmatpush3.msra.mxu1 %v14986_v35  ;;  %16540 = vst [vmem:[#allocation19_spill] sm:$0xff] %v15091_v12  ;;  %v422_v20 = vsub.f32 %v15072_v2, %v15086_v9  ;;  %v15110_v31 = vand.u32 4294901760, %v15091_v12  ;;  %v15112_v36 = vand.u32 4294901760, %v412_v13  ;;  %v271_v52 = vsel %vm230_vm0, %v206_v21, 0 }
  0x1f   : > { %11752 = vmatmul.mubr.f32.vlgmr.msra.gmra.mrb[0].mxu0 %v15002_v41  ;;  %13448 = vmatprep.subr.bf16.mxu0 %v16449_v4  ;;  %v15021_v47 = vand.u32 4294901760, %v15007_v43  ;;  %16541 = vst [vmem:[#allocation20_spill] sm:$0xff] %v15099_v17  ;;  %v15119_v39 = vand.u32 4294901760, %v15099_v17  ;;  %v15136_v53 = vsub.f32 %v265_v11, %v15114_v38  ;;  %v15150_v59 = vand.u32 4294901760, %v268_v46 }
  0x20   : > { %11754 = vmatprep.mubr.f32.mxu0 %v15011_v44  ;;  %13450 = vmatpush3.bf16.msra.mxu0 %v16449_v4  ;;  %16542 = vst [vmem:[#allocation21_spill] sm:$0xff] %v15110_v31  ;;  %v15121_v42 = vand.u32 4294901760, %v422_v20  ;;  %v277_v13 = vsel %vm230_vm0, %v208_v55, 0  ;;  %vm10151_vm2 = vcmask 261120  }
  0x21   : > { %13452 = vmatprep.subr.bf16.mxu0 %v16449_v4  ;;  %v541_v49 = vsub.f32 %v15007_v43, %v15021_v47  ;;  %16543 = vst [vmem:[#allocation22_spill] sm:$0xff] %v15119_v39  ;;  %11760 = vmatprep.mubr.f32.mxu1 %v15112_v36  ;;  %16546 = vst [vmem:[#allocation25_spill] sm:$0xff] %v15136_v53  ;;  %v442_v54 = vsub.f32 %v15099_v17, %v15119_v39  ;;  %v15154_v61 = vand.u32 4294901760, %v15136_v53 }
  0x22   : > { %16544 = vst [vmem:[#allocation23_spill] sm:$0xff] %v15121_v42  ;;  %11761 = vmatmul.mubr.f32.vlgmr.msra.gmra.mrb[0].mxu1 %v15121_v42  ;;  %v15166_v16 = vsub.f32 %v268_v46, %v15150_v59  ;;  %v15185_v55 = vand.u32 4294901760, %v277_v13 }
  0x23   : > { %11755 = vmatmul.mubr.f32.gmra.mrb[2].mxu0 %v15016_v45  ;;  %v542_v51 = vand.u32 4294901760, %v541_v49  ;;  %v15125_v49 = vsub.f32 %v262_v7, %v15106_v24  ;;  %16549 = vst [vmem:[#allocation28_spill] sm:$0xff] %v15154_v61  ;;  %v15156_v62 = vand.u32 4294901760, %v442_v54  ;;  %v15159_v7 = vand.u32 4294901760, %v271_v52 }
  0x24   : > { %11757 = vmatprep.mubr.f32.mxu0 %v15025_v48  ;;  %13454 = vmatpush3.bf16.msra.mxu0 %v16449_v4  ;;  %16551 = vst [vmem:[#allocation30_spill] sm:$0xff] %v15166_v16  ;;  %v462_v20 = vsub.f32 %v15136_v53, %v15154_v61  ;;  %v15181_v54 = vand.u32 4294901760, %v15166_v16 }
  0x25   : > { %11783 = vmatprep.subr.mxu0 %v542_v51  ;;  %16545 = vst [vmem:[#allocation24_spill] sm:$0xff] %v15125_v49  ;;  %v15146_v56 = vand.u32 4294901760, %v15125_v49  ;;  %16550 = vst [vmem:[#allocation29_spill] sm:$0xff] %v15156_v62  ;;  %v15173_v21 = vsub.f32 %v271_v52, %v15159_v7 }
  0x26   : > { %16554 = vst [vmem:[#allocation33_spill] sm:$0xff] %v15181_v54  ;;  %v15183_v46 = vand.u32 4294901760, %v462_v20  ;;  %v15199_v20 = vsub.f32 %v277_v13, %v15185_v55 }
  0x27   : > { %11758 = vmatmul.mubr.f32.gmra.mrb[4].mxu0 %v15031_v50  ;;  %16547 = vst [vmem:[#allocation26_spill] sm:$0xff] %v15146_v56  ;;  %v452_v11 = vsub.f32 %v15125_v49, %v15146_v56  ;;  %16552 = vst [vmem:[#allocation31_spill] sm:$0xff] %v15173_v21  ;;  %v15188_v1 = vand.u32 4294901760, %v15173_v21 }
  0x28   : > { %11784 = vmatpush3.msra.mxu0 %v542_v51  ;;  %11785 = vmatprep.mubr.f32.mxu0 %v14912_v5  ;;  %v432_v51 = vsub.f32 %v15091_v12, %v15110_v31  ;;  %16555 = vst [vmem:[#allocation34_spill] sm:$0xff] %v15183_v46  ;;  %16558 = vst [vmem:[#allocation37_spill] sm:$0xff] %v15199_v20 }
  0x29   : > { %13456 = vmatprep.subr.bf16.mxu0 %v16449_v4  ;;  %16556 = vst [vmem:[#allocation35_spill] sm:$0xff] %v15188_v1 }
  0x2a   : > { %v15148_v57 = vand.u32 4294901760, %v432_v51  ;;  %v15175_v51 = vand.u32 4294901760, %v452_v11  ;;  %v472_v11 = vsub.f32 %v15166_v16, %v15181_v54 }
  0x2b   : > { %11786 = vmatmul.mubr.f32.vlgmr.msra.gmra.mrb[0].mxu0 %v14942_v15 }
  0x2c   : > { %11788 = vmatprep.mubr.f32.mxu0 %v14947_v18  ;;  %13458 = vmatpush3.bf16.msra.mxu0 %v16449_v4  ;;  %16548 = vst [vmem:[#allocation27_spill] sm:$0xff] %v15148_v57  ;;  %16553 = vst [vmem:[#allocation32_spill] sm:$0xff] %v15175_v51 }
  0x2d   : > { %13460 = vmatprep.subr.bf16.mxu0 %v16449_v4  ;;  %11763 = vmatprep.mubr.f32.mxu1 %v15148_v57 }
  0x2e   : > { %11764 = vmatmul.mubr.f32.gmra.mrb[2].mxu1 %v15156_v62 }
  0x2f   : > { %11789 = vmatmul.mubr.f32.gmra.mrb[2].mxu0 %v14949_v19  ;;  %11766 = vmatprep.mubr.f32.mxu1 %v15175_v51 }
  0x30   : > { %11791 = vmatprep.mubr.f32.mxu0 %v14958_v23  ;;  %13462 = vmatpush3.bf16.msra.mxu0 %v16449_v4 }
  0x31   : > { %11817 = vmatprep.subr.mxu0 %v15007_v43 }
  0x32   : > { %11767 = vmatmul.mubr.f32.gmra.mrb[4].mxu1 %v15183_v46  ;;  %v15210_v46 = vand.u32 4294901760, %v15199_v20 }
  0x33   : > { %11792 = vmatmul.mubr.f32.gmra.mrb[4].mxu0 %v14967_v27 }
  0x34   : > { %11794 = vmatprep.mubr.f32.mxu0 %v15052_v58  ;;  %11818 = vmatpush3.msra.mxu0 %v15007_v43  ;;  %v207_v43 = vld [vmem:[%s16443_s1 + $0x70] sm:$0xff]  ;;  %16560 = vst [vmem:[#allocation39_spill] sm:$0xff] %v15210_v46  ;;  %v502_v57 = vsub.f32 %v15199_v20, %v15210_v46 }
  0x35   : > { %13464 = vmatprep.subr.bf16.mxu0 %v16449_v4  ;;  %v274_v0 = vsel %vm230_vm0, %v207_v43, 0  ;;  %v482_v4 = vsub.f32 %v15173_v21, %v15188_v1 }
  0x36   : > { %v15177_v43 = vand.u32 4294901760, %v274_v0  ;;  %v15224_v42 = vand.u32 4294901760, %v502_v57 }
  0x37   : > { %11795 = vmatmul.mubr.f32.gmra.mrb[6].mxu0 %v15056_v60  ;;  %v15212_v62 = vand.u32 4294901760, %v482_v4  ;;  %v16561_v4 = vmov 0.0|0.0  }
  0x38   : > { %11797 = vmatprep.mubr.f32.mxu0 %v15074_v3  ;;  %v15192_v52 = vsub.f32 %v274_v0, %v15177_v43  ;;  %v15207_v0 = vand.u32 4294901760, %v472_v11 }
  0x3a   : > { %16557 = vst [vmem:[#allocation36_spill] sm:$0xff] %v15192_v52  ;;  %v15205_v51 = vand.u32 4294901760, %v15192_v52  ;;  %11769 = vmatprep.mubr.f32.mxu1 %v15207_v0 }
  0x3b   : > { %11798 = vmatmul.mubr.f32.gmra.mrb[8].mxu0 %v15081_v8  ;;  %11770 = vmatmul.mubr.f32.gmra.mrb[6].mxu1 %v15212_v62 }
  0x3c   : > { %11800 = vmatprep.mubr.f32.mxu0 %v15106_v24  ;;  %16559 = vst [vmem:[#allocation38_spill] sm:$0xff] %v15205_v51  ;;  %v492_v13 = vsub.f32 %v15192_v52, %v15205_v51 }
  0x3e   : > { %v15222_v11 = vand.u32 4294901760, %v492_v13 }
  0x3f   : > { %11801 = vmatmul.mubr.f32.gmra.mrb[10].mxu0 %v15114_v38 }
  0x40   : > { %11803 = vmatprep.mubr.f32.mxu0 %v15150_v59  ;;  %11772 = vmatprep.mubr.f32.mxu1 %v15222_v11 }
  0x41   : > { %11773 = vmatmul.mubr.f32.gmra.mrb[8].mxu1 %v15224_v42 }
  0x42   : > { %11955 = vmatprep.mubr.f32.mxu1 %v14969_v28 }
  0x43   : > { %11804 = vmatmul.mubr.f32.gmra.mrb[12].mxu0 %v15159_v7 }
  0x44   : > { %11806 = vmatprep.mubr.f32.mxu0 %v15177_v43 }
  0x47   : > { %11807 = vmatmul.mubr.f32.gmra.mrb[14].mxu0 %v15185_v55 }
  0x48   : > { %11819 = vmatprep.mubr.f32.mxu0 %v14929_v10 }
  0x4b   : > { %11820 = vmatmul.mubr.f32.vlgmr.msra.gmra.mrb[0].mxu0 %v14956_v22 }
  0x4c   : > { %11822 = vmatprep.mubr.f32.mxu0 %v14962_v25  ;;  %13466 = vmatpush3.bf16.msra.mxu0 %v16561_v4 }
  0x4d   : > { %13468 = vmatprep.subr.bf16.mxu0 %v16561_v4 }
  0x4f   : > { %11823 = vmatmul.mubr.f32.gmra.mrb[2].mxu0 %v14965_v26 }
  0x50   : > { %11825 = vmatprep.mubr.f32.mxu0 %v14975_v30  ;;  %13470 = vmatpush3.bf16.msra.mxu0 %v16561_v4 }
  0x51   : > { %11851 = vmatprep.subr.mxu0 %v14986_v35 }
  0x53   : > { %11826 = vmatmul.mubr.f32.gmra.mrb[4].mxu0 %v14984_v34 }
  0x54   : > { %11828 = vmatprep.mubr.f32.mxu0 %v15066_v63  ;;  %11852 = vmatpush3.msra.mxu0 %v14986_v35 }
  0x55   : > { %13472 = vmatprep.subr.bf16.mxu0 %v16561_v4 }
  0x57   : > { %11829 = vmatmul.mubr.f32.gmra.mrb[6].mxu0 %v15072_v2 }
  0x58   : > { %11831 = vmatprep.mubr.f32.mxu0 %v15091_v12 }
  0x5b   : > { %11832 = vmatmul.mubr.f32.gmra.mrb[8].mxu0 %v15099_v17 }
  0x5c   : > { %11834 = vmatprep.mubr.f32.mxu0 %v15125_v49 }
  0x5f   : > { %11835 = vmatmul.mubr.f32.gmra.mrb[10].mxu0 %v15136_v53 }
  0x60   : > { %11837 = vmatprep.mubr.f32.mxu0 %v15166_v16 }
  0x63   : > { %11838 = vmatmul.mubr.f32.gmra.mrb[12].mxu0 %v15173_v21 }
  0x64   : > { %11840 = vmatprep.mubr.f32.mxu0 %v15192_v52 }
  0x67   : > { %11841 = vmatmul.mubr.f32.gmra.mrb[14].mxu0 %v15199_v20 }
  0x68   : > { %11853 = vmatprep.mubr.f32.mxu0 %v14940_v14 }
  0x6b   : > { %11854 = vmatmul.mubr.f32.vlgmr.msra.gmra.mrb[0].mxu0 %v14972_v29 }
  0x6c   : > { %11856 = vmatprep.mubr.f32.mxu0 %v14978_v32  ;;  %13474 = vmatpush3.bf16.msra.mxu0 %v16561_v4 }
  0x6d   : > { %13476 = vmatprep.subr.bf16.mxu0 %v16561_v4 }
  0x6f   : > { %11857 = vmatmul.mubr.f32.gmra.mrb[2].mxu0 %v14981_v33 }
  0x70   : > { %11859 = vmatprep.mubr.f32.mxu0 %v14992_v37  ;;  %13478 = vmatpush3.bf16.msra.mxu0 %v16561_v4 }
  0x71   : > { %11885 = vmatprep.subr.mxu0 %v15021_v47 }
  0x73   : > { %11860 = vmatmul.mubr.f32.gmra.mrb[4].mxu0 %v14999_v40 }
  0x74   : > { %11862 = vmatprep.mubr.f32.mxu0 %v15078_v6  ;;  %11886 = vmatpush3.msra.mxu0 %v15021_v47 }
  0x75   : > { %13480 = vmatprep.subr.bf16.mxu0 %v16561_v4 }
  0x77   : > { %11863 = vmatmul.mubr.f32.gmra.mrb[6].mxu0 %v15086_v9 }
  0x78   : > { %11865 = vmatprep.mubr.f32.mxu0 %v15110_v31 }
  0x7b   : > { %11866 = vmatmul.mubr.f32.gmra.mrb[8].mxu0 %v15119_v39 }
  0x7c   : > { %11868 = vmatprep.mubr.f32.mxu0 %v15146_v56  ;;  %v1502_v56 = vld [vmem:[%s14910_s22 + $0x1] sm:$0x1] }
  0x7d   : > { %1503 = vst [vmem:[#allocation2 + $0x20] sm:$0x1] %v1502_v56 }
  0x7f   : > { %11869 = vmatmul.mubr.f32.gmra.mrb[10].mxu0 %v15154_v61 }
  0x80   : > { %11871 = vmatprep.mubr.f32.mxu0 %v15181_v54 }
  0x83   : > { %11872 = vmatmul.mubr.f32.gmra.mrb[12].mxu0 %v15188_v1 }
  0x84   : > { %11874 = vmatprep.mubr.f32.mxu0 %v15205_v51 }
  0x87   : > { %11875 = vmatmul.mubr.f32.gmra.mrb[14].mxu0 %v15210_v46 }
  0x88   : > { %11887 = vmatprep.mubr.f32.mxu0 %v14912_v5 }
  0x8b   : > { %11888 = vmatmul.mubr.f32.vlgmr.msra.gmra.mrb[0].mxu0 %v14942_v15 }
  0x8c   : > { %11890 = vmatprep.mubr.f32.mxu0 %v14947_v18  ;;  %13482 = vmatpush3.bf16.msra.mxu0 %v16561_v4 }
  0x8d   : > { %13484 = vmatprep.subr.bf16.mxu0 %v16561_v4 }
  0x8f   : > { %11891 = vmatmul.mubr.f32.gmra.mrb[2].mxu0 %v14949_v19 }
  0x90   : > { %11893 = vmatprep.mubr.f32.mxu0 %v14958_v23  ;;  %13486 = vmatpush3.bf16.msra.mxu0 %v16561_v4 }
  0x91   : > { %11919 = vmatprep.subr.mxu0 %v14986_v35 }
  0x93   : > { %11894 = vmatmul.mubr.f32.gmra.mrb[4].mxu0 %v14967_v27 }
  0x94   : > { %11896 = vmatprep.mubr.f32.mxu0 %v15052_v58  ;;  %11920 = vmatpush3.msra.mxu0 %v14986_v35 }
  0x97   : > { %11897 = vmatmul.mubr.f32.gmra.mrb[6].mxu0 %v15056_v60 }
  0x98   : > { %11899 = vmatprep.mubr.f32.mxu0 %v15074_v3 }
  0x9b   : > { %11900 = vmatmul.mubr.f32.gmra.mrb[8].mxu0 %v15081_v8 }
  0x9c   : > { %11902 = vmatprep.mubr.f32.mxu0 %v15106_v24 }
  0x9f   : > { %11903 = vmatmul.mubr.f32.gmra.mrb[10].mxu0 %v15114_v38 }
  0xa0   : > { %11905 = vmatprep.mubr.f32.mxu0 %v15150_v59 }
  0xa3   : > { %11906 = vmatmul.mubr.f32.gmra.mrb[12].mxu0 %v15159_v7 }
  0xa4   : > { %11908 = vmatprep.mubr.f32.mxu0 %v15177_v43 }
  0xa7   : > { %11909 = vmatmul.mubr.f32.gmra.mrb[14].mxu0 %v15185_v55 }
  0xa8   : > { %11921 = vmatprep.mubr.f32.mxu0 %v14912_v5 }
  0xab   : > { %11922 = vmatmul.mubr.f32.vlgmr.msra.gmra.mrb[0].mxu0 %v14942_v15 }
  0xac   : > { %11924 = vmatprep.mubr.f32.mxu0 %v14947_v18 }
  0xaf   : > { %11925 = vmatmul.mubr.f32.gmra.mrb[2].mxu0 %v14949_v19 }
  0xb0   : > { %11927 = vmatprep.mubr.f32.mxu0 %v14958_v23 }
  0xb3   : > { %11928 = vmatmul.mubr.f32.gmra.mrb[4].mxu0 %v14967_v27 }
  0xb4   : > { %11930 = vmatprep.mubr.f32.mxu0 %v15052_v58 }
  0xb7   : > { %11931 = vmatmul.mubr.f32.gmra.mrb[6].mxu0 %v15056_v60 }
  0xb8   : > { %11933 = vmatprep.mubr.f32.mxu0 %v15074_v3 }
  0xbb   : > { %11934 = vmatmul.mubr.f32.gmra.mrb[8].mxu0 %v15081_v8 }
  0xbc   : > { %11936 = vmatprep.mubr.f32.mxu0 %v15106_v24 }
  0xbf   : > { %11937 = vmatmul.mubr.f32.gmra.mrb[10].mxu0 %v15114_v38 }
  0xc0   : > { %11939 = vmatprep.mubr.f32.mxu0 %v15150_v59 }
  0xc3   : > { %11940 = vmatmul.mubr.f32.gmra.mrb[12].mxu0 %v15159_v7 }
  0xc4   : > { %11942 = vmatprep.mubr.f32.mxu0 %v15177_v43 }
  0xc7   : > { %11943 = vmatmul.mubr.f32.gmra.mrb[14].mxu0 %v15185_v55 }
  0xc8   : > { %12159 = vmatprep.mubr.f32.mxu0 %v14969_v28 }
  0xf5   : > { %v11762_v35 = vpop.f32.mrb[0].mxu1 }
  0xf6   : > { %v415_v47 = vpop.f32.mrb[1].mxu1 }
 0x101   : > { %v11765_v57 = vpop.f32.mrb[2].mxu1 }
 0x102   : > { %v435_v13 = vpop.f32.mrb[3].mxu1 }
 0x105   : > { %v11768_v4 = vpop.f32.mrb[4].mxu1 }
 0x106   : > { %v455_v46 = vpop.f32.mrb[5].mxu1 }
 0x10e   : > { %v11771_v51 = vpop.f32.mrb[6].mxu1 }
 0x10f   : > { %v475_v1 = vpop.f32.mrb[7].mxu1 }
 0x114   : > { %v15312_v54 = vpop.f32.mrb[8].mxu1 }
 0x115   : > { %v15314_v61 = vpop.f32.mrb[9].mxu1 }
 0x17e   : > { %v11923_v39 = vpop.f32.mrb[0].mxu0 }
 0x17f   : > { %v1328_v31 = vpop.f32.mrb[1].mxu0  ;;  %v1423_v6 = vmul.f32 0.5, %v11923_v39 }
 0x180   : > { %v1422_v28 = vmul.f32 0.5, %v1328_v31 }
 0x181   : > { %14530 = vtanh.f32 %v1423_v6 }
 0x182   : > { %v11926_v9 = vpop.f32.mrb[2].mxu0  ;;  %14532 = vtanh.f32 %v1422_v28 }
 0x183   : > { %v1340_v40 = vpop.f32.mrb[3].mxu0  ;;  %v1425_v29 = vmul.f32 0.5, %v11926_v9 }
 0x184   : > { %v1424_v20 = vmul.f32 0.5, %v1340_v40 }
 0x186   : > { %v11929_v37 = vpop.f32.mrb[4].mxu0 }
 0x187   : > { %v1439_v33 = vmul.f32 0.5, %v11929_v37  ;;  %v1352_v32 = vpop.f32.mrb[5].mxu0 }
 0x188   : > { %v1438_v14 = vmul.f32 0.5, %v1352_v32 }
 0x189   : > { %14534 = vtanh.f32 %v1439_v33 }
 0x18a   : > { %14536 = vtanh.f32 %v1438_v14  ;;  %v11932_v52 = vpop.f32.mrb[6].mxu0 }
 0x18b   : > { %v13865_v21 = vadd.f32 %v11932_v52, %v11762_v35  ;;  %v1364_v16 = vpop.f32.mrb[7].mxu0  ;;  %14538 = vtanh.f32 %v1425_v29  ;;  %v14531_v28 = vpop.eup %14530 }
 0x18c   : > { %v13866_v56 = vadd.f32 %v1364_v16, %v415_v47  ;;  %14540 = vtanh.f32 %v1424_v20  ;;  %v14533_v32 = vpop.eup %14532  ;;  %v1431_v20 = vmul.f32 0.5, %v14531_v28 }
 0x18d   : > { %v1441_v53 = vmul.f32 0.5, %v13865_v21  ;;  %v1430_v21 = vmul.f32 0.5, %v14533_v32 }
 0x18e   : > { %v1440_v39 = vmul.f32 0.5, %v13866_v56  ;;  %v11935_v49 = vpop.f32.mrb[8].mxu0 }
 0x18f   : > { %14542 = vtanh.f32 %v1441_v53  ;;  %v13867_v31 = vadd.f32 %v11935_v49, %v11765_v57  ;;  %v1376_v6 = vpop.f32.mrb[9].mxu0 }
 0x190   : > { %14544 = vtanh.f32 %v1440_v39  ;;  %v13868_v37 = vadd.f32 %v1376_v6, %v435_v13  ;;  %v1435_v6 = vadd.f32 0.5, %v1431_v20 }
 0x191   : > { %14546 = vtanh.f32 %v13867_v31 }
 0x192   : > { %14548 = vtanh.f32 %v13868_v37  ;;  %v11938_v33 = vpop.f32.mrb[10].mxu0  ;;  %v1434_v37 = vadd.f32 0.5, %v1430_v21 }
 0x193   : > { %v14535_v14 = vpop.eup %14534  ;;  %v13869_v40 = vadd.f32 %v11938_v33, %v11768_v4  ;;  %v1388_v9 = vpop.f32.mrb[11].mxu0 }
 0x194   : > { %v14537_v52 = vpop.eup %14536  ;;  %v1447_v29 = vmul.f32 0.5, %v14535_v14  ;;  %v13870_v16 = vadd.f32 %v1388_v9, %v455_v46 }
 0x195   : > { %v1446_v35 = vmul.f32 0.5, %v14537_v52  ;;  %14550 = vtanh.f32 %v13869_v40  ;;  %v14539_v53 = vpop.eup %14538 }
 0x196   : > { %14552 = vtanh.f32 %v13870_v16  ;;  %v11941_v49 = vpop.f32.mrb[12].mxu0  ;;  %v14541_v47 = vpop.eup %14540  ;;  %v1451_v57 = vadd.f32 0.5, %v1447_v29  ;;  %v1433_v14 = vmul.f32 0.5, %v14539_v53 }
 0x197   : > { %v13871_v13 = vadd.f32 %v11941_v49, %v11771_v51  ;;  %v1400_v56 = vpop.f32.mrb[13].mxu0  ;;  %v1450_v4 = vadd.f32 0.5, %v1446_v35  ;;  %v1432_v46 = vmul.f32 0.5, %v14541_v47 }
 0x198   : > { %v13872_v39 = vadd.f32 %v1400_v56, %v475_v1  ;;  %v1475_v52 = vmul.f32 0.0, %v1451_v57 }
 0x199   : > { %v14543_v31 = vpop.eup %14542  ;;  %v1459_v33 = vmul.f32 0.5, %v13871_v13  ;;  %v1474_v21 = vmul.f32 0.0, %v1450_v4  ;;  %v1437_v13 = vadd.f32 0.5, %v1433_v14 }
 0x19a   : > { %v14545_v17 = vpop.eup %14544  ;;  %v1449_v28 = vmul.f32 0.5, %v14543_v31  ;;  %v1458_v32 = vmul.f32 0.5, %v13872_v39  ;;  %v11944_v9 = vpop.f32.mrb[14].mxu0 }
 0x19b   : > { %v14547_v40 = vpop.eup %14546  ;;  %v1448_v16 = vmul.f32 0.5, %v14545_v17  ;;  %14554 = vtanh.f32 %v1459_v33  ;;  %v13873_v29 = vadd.f32 %v11944_v9, %v15312_v54  ;;  %v1412_v51 = vpop.f32.mrb[15].mxu0  ;;  %v1436_v17 = vadd.f32 0.5, %v1432_v46 }
 0x19c   : > { %v14549_v49 = vpop.eup %14548  ;;  %v1453_v1 = vadd.f32 0.5, %v1449_v28  ;;  %v1479_v56 = vmul.f32 %v14547_v40, %v1435_v6  ;;  %14556 = vtanh.f32 %v1458_v32  ;;  %v13874_v20 = vadd.f32 %v1412_v51, %v15314_v61 }
 0x19d   : > { %v1452_v35 = vadd.f32 0.5, %v1448_v16  ;;  %v1478_v53 = vmul.f32 %v14549_v49, %v1434_v37  ;;  %v1461_v47 = vmul.f32 0.5, %v13873_v29 }
 0x19e   : > { %v15319_v39 = vadd.f32 %v1479_v56, %v1475_v52  ;;  %v1460_v31 = vmul.f32 0.5, %v13874_v20  ;;  %v1477_v9 = vmul.f32 0.0, %v1453_v1 }
 0x19f   : > { %v14551_v57 = vpop.eup %14550  ;;  %v15321_v33 = vadd.f32 %v1478_v53, %v1474_v21  ;;  %14558 = vtanh.f32 %v1461_v47  ;;  %v1476_v28 = vmul.f32 0.0, %v1452_v35 }
 0x1a0   : > { %v14553_v54 = vpop.eup %14552  ;;  %14560 = vtanh.f32 %v15319_v39  ;;  %v1481_v6 = vmul.f32 %v14551_v57, %v1437_v13  ;;  %v1508_v57 = vld [vmem:[#allocation2 + $0x20] sm:$0xff] }
 0x1a1   : > { %14562 = vtanh.f32 %v15321_v33  ;;  %v1480_v61 = vmul.f32 %v14553_v54, %v1436_v17 }
 0x1a2   : > { %v15325_v37 = vadd.f32 %v1481_v6, %v1477_v9  ;;  %14564 = vtanh.f32 %v1460_v31 }
 0x1a3   : > { %v15327_v4 = vadd.f32 %v1480_v61, %v1476_v28 }
 0x1a4   : > { %14566 = vtanh.f32 %v15325_v37 }
 0x1a5   : > { %16562 = vst [vmem:[#allocation40_spill] sm:$0xff] %v15327_v4  ;;  %v14555_v14 = vpop.eup %14554  ;;  %14568 = vtanh.f32 %v15327_v4 }
 0x1a6   : > { %v14557_v46 = vpop.eup %14556  ;;  %v1467_v32 = vmul.f32 0.5, %v14555_v14 }
 0x1a7   : > { %v1466_v40 = vmul.f32 0.5, %v14557_v46 }
 0x1a8   : > { %v1471_v52 = vadd.f32 0.5, %v1467_v32  ;;  %v15333_v32 = vand.u32 4294901760, %v1508_v57 }
 0x1a9   : > { %v14559_v16 = vpop.eup %14558  ;;  %v1470_v29 = vadd.f32 0.5, %v1466_v40 }
 0x1aa   : > { %v14561_v51 = vpop.eup %14560  ;;  %v1469_v49 = vmul.f32 0.5, %v14559_v16 }
 0x1ab   : > { %v14563_v1 = vpop.eup %14562  ;;  %v1491_v56 = vmul.f32 %v14561_v51, %v1471_v52 }
 0x1ac   : > { %v14565_v20 = vpop.eup %14564  ;;  %v1490_v21 = vmul.f32 %v14563_v1, %v1470_v29  ;;  %v1473_v35 = vadd.f32 0.5, %v1469_v49  ;;  %v1773_v1 = vsub.f32 %v1508_v57, %v15333_v32 }
 0x1ad   : > { %v1468_v53 = vmul.f32 0.5, %v14565_v20  ;;  %v1517_v47 = vand.u32 4294901760, %v1491_v56 }
 0x1ae   : > { %v14567_v13 = vpop.eup %14566  ;;  %v1514_v31 = vand.u32 4294901760, %v1490_v21 }
 0x1af   : > { %v14569_v17 = vpop.eup %14568  ;;  %v1493_v54 = vmul.f32 %v14567_v13, %v1473_v35  ;;  %v1472_v9 = vadd.f32 0.5, %v1468_v53  ;;  %v1752_v6 = vsub.f32 %v1491_v56, %v1517_v47 }
 0x1b0   : > { %v15331_v28 = vpack.c.bf16 %v1517_v47, %v1514_v31  ;;  %v1745_v61 = vsub.f32 %v1490_v21, %v1514_v31 }
 0x1b1   : > { %v1492_v14 = vmul.f32 %v14569_v17, %v1472_v9  ;;  %v1523_v46 = vand.u32 4294901760, %v1493_v54  ;;  %v1753_v40 = vand.u32 4294901760, %v1752_v6  ;;  %v15343_v9 = vand.u32 4294901760, %v1773_v1 }
 0x1b2   : > { %13488 = vmatprep.subr.bf16.mxu1 %v15331_v28  ;;  %v1746_v52 = vand.u32 4294901760, %v1745_v61  ;;  %v13503_v16 = vpack.c.bf16 %v1752_v6, %v1745_v61 }
 0x1b3   : > { %13490 = vmatpush3.bf16.msra.mxu1 %v15331_v28  ;;  %v1520_v29 = vand.u32 4294901760, %v1492_v14  ;;  %v1754_v51 = vsub.f32 %v1752_v6, %v1753_v40  ;;  %v1766_v49 = vsub.f32 %v1493_v54, %v1523_v46 }
 0x1b4   : > { %v1747_v56 = vsub.f32 %v1745_v61, %v1746_v52  ;;  %v15338_v20 = vpack.c.bf16 %v1753_v40, %v1746_v52 }
 0x1b5   : > { %v15340_v21 = vpack.c.bf16 %v1523_v46, %v1520_v29  ;;  %v1755_v35 = vand.u32 4294901760, %v1754_v51  ;;  %v1759_v53 = vsub.f32 %v1492_v14, %v1520_v29  ;;  %v1767_v47 = vand.u32 4294901760, %v1766_v49  ;;  %v16563_v29 = vld [vmem:[#allocation23_spill] sm:$0xff] }
 0x1b6   : > { %v1748_v13 = vand.u32 4294901760, %v1747_v56  ;;  %v1775_v14 = vsub.f32 %v1773_v1, %v15343_v9  ;;  %v16564_v51 = vld [vmem:[#allocation27_spill] sm:$0xff]  ;;  %v16566_v56 = vld [vmem:[#allocation32_spill] sm:$0xff] }
 0x1b7   : > { %13492 = vmatprep.subr.bf16.mxu1 %v15340_v21  ;;  %v1760_v31 = vand.u32 4294901760, %v1759_v53  ;;  %v1768_v17 = vsub.f32 %v1766_v49, %v1767_v47  ;;  %v13507_v4 = vpack.c.bf16 %v1766_v49, %v1759_v53  ;;  %v16565_v49 = vld [vmem:[#allocation29_spill] sm:$0xff] }
 0x1b8   : > { %13494 = vmatpush3.bf16.msra.mxu1 %v15340_v21  ;;  %v13495_v54 = vpack.c.bf16 %v1755_v35, %v1748_v13  ;;  %v1776_v52 = vand.u32 4294901760, %v1775_v14  ;;  %v16567_v35 = vld [vmem:[#allocation34_spill] sm:$0xff]  ;;  %v16573_v13 = vld [vmem:[#allocation36_spill] sm:$0xff] }
 0x1b9   : > { %11953 = vmatprep.subr.mxu1 %v15333_v32  ;;  %v1761_v57 = vsub.f32 %v1759_v53, %v1760_v31  ;;  %v1769_v6 = vand.u32 4294901760, %v1768_v17  ;;  %v15347_v61 = vpack.c.bf16 %v1767_v47, %v1760_v31  ;;  %v16571_v53 = vld [vmem:[#allocation30_spill] sm:$0xff]  ;;  %v16572_v47 = vld [vmem:[#allocation31_spill] sm:$0xff]  ;;  %v16574_v31 = vld [vmem:[#allocation37_spill] sm:$0xff] }
 0x1ba   : > { %v16575_v17 = vld [vmem:[#allocation4_spill] sm:$0xff]  ;;  %v16580_v14 = vld [vmem:[#allocation14_spill] sm:$0xff] }
 0x1bb   : > { %v1762_v46 = vand.u32 4294901760, %v1761_v57  ;;  %v16577_v57 = vld [vmem:[#allocation10_spill] sm:$0xff] }
 0x1bc   : > { %11954 = vmatpush3.msra.mxu1 %v15333_v32 }
 0x1bd   : > { %11956 = vmatmul.mubr.f32.vlgmr.msra.gmra.mrb[10].mxu1 %v15002_v41  ;;  %13496 = vmatprep.subr.bf16.mxu1 %v13495_v54  ;;  %v13499_v40 = vpack.c.bf16 %v1769_v6, %v1762_v46  ;;  %v16578_v6 = vld [vmem:[#allocation11_spill] sm:$0xff]  ;;  %v16579_v46 = vld [vmem:[#allocation13_spill] sm:$0xff] }
 0x1be   : > { %13498 = vmatpush3.bf16.msra.mxu1 %v13495_v54  ;;  %11958 = vmatprep.mubr.f32.mxu1 %v15011_v44  ;;  %v16576_v54 = vld [vmem:[#allocation8_spill] sm:$0xff] }
 0x1bf   : > { %13500 = vmatprep.subr.bf16.mxu1 %v13499_v40 }
 0x1c1   : > { %11959 = vmatmul.mubr.f32.gmra.mrb[12].mxu1 %v15016_v45 }
 0x1c2   : > { %13502 = vmatpush3.bf16.msra.mxu1 %v13499_v40  ;;  %11961 = vmatprep.mubr.f32.mxu1 %v15025_v48  ;;  %v16581_v40 = vld [vmem:[#allocation17_spill] sm:$0xff] }
 0x1c3   : > { %11987 = vmatprep.subr.mxu1 %v1776_v52 }
 0x1c5   : > { %11962 = vmatmul.mubr.f32.gmra.mrb[14].mxu1 %v15031_v50 }
 0x1c6   : > { %11988 = vmatpush3.msra.mxu1 %v1776_v52  ;;  %11964 = vmatprep.mubr.f32.mxu1 %v15112_v36  ;;  %v16583_v52 = vld [vmem:[#allocation21_spill] sm:$0xff] }
 0x1c7   : > { %13504 = vmatprep.subr.bf16.mxu1 %v13503_v16 }
 0x1c9   : > { %11965 = vmatmul.mubr.f32.gmra.mrb[16].mxu1 %v16563_v29 }
 0x1ca   : > { %11967 = vmatprep.mubr.f32.mxu1 %v16564_v51 }
 0x1cd   : > { %11968 = vmatmul.mubr.f32.gmra.mrb[18].mxu1 %v16565_v49 }
 0x1ce   : > { %11970 = vmatprep.mubr.f32.mxu1 %v16566_v56 }
 0x1d1   : > { %11971 = vmatmul.mubr.f32.gmra.mrb[20].mxu1 %v16567_v35 }
 0x1d2   : > { %11973 = vmatprep.mubr.f32.mxu1 %v15207_v0 }
 0x1d5   : > { %11974 = vmatmul.mubr.f32.gmra.mrb[22].mxu1 %v15212_v62 }
 0x1d6   : > { %11976 = vmatprep.mubr.f32.mxu1 %v15222_v11 }
 0x1d9   : > { %11977 = vmatmul.mubr.f32.gmra.mrb[24].mxu1 %v15224_v42 }
 0x1da   : > { %11989 = vmatprep.mubr.f32.mxu1 %v14912_v5 }
 0x1dd   : > { %11990 = vmatmul.mubr.f32.vlgmr.msra.gmra.mrb[10].mxu1 %v14942_v15 }
 0x1de   : > { %13506 = vmatpush3.bf16.msra.mxu1 %v13503_v16  ;;  %11992 = vmatprep.mubr.f32.mxu1 %v14947_v18  ;;  %v16569_v16 = vld [vmem:[#allocation24_spill] sm:$0xff] }
 0x1df   : > { %13508 = vmatprep.subr.bf16.mxu1 %v13507_v4 }
 0x1e1   : > { %11993 = vmatmul.mubr.f32.gmra.mrb[12].mxu1 %v14949_v19 }
 0x1e2   : > { %13510 = vmatpush3.bf16.msra.mxu1 %v13507_v4  ;;  %11995 = vmatprep.mubr.f32.mxu1 %v14958_v23  ;;  %v16568_v4 = vld [vmem:[#allocation20_spill] sm:$0xff] }
 0x1e3   : > { %12021 = vmatprep.subr.mxu1 %v1773_v1 }
 0x1e5   : > { %11996 = vmatmul.mubr.f32.gmra.mrb[14].mxu1 %v14967_v27 }
 0x1e6   : > { %12022 = vmatpush3.msra.mxu1 %v1773_v1  ;;  %11998 = vmatprep.mubr.f32.mxu1 %v15052_v58  ;;  %v16570_v1 = vld [vmem:[#allocation25_spill] sm:$0xff] }
 0x1e7   : > { %13512 = vmatprep.subr.bf16.mxu1 %v15331_v28 }
 0x1e9   : > { %11999 = vmatmul.mubr.f32.gmra.mrb[16].mxu1 %v15056_v60 }
 0x1ea   : > { %12001 = vmatprep.mubr.f32.mxu1 %v15074_v3 }
 0x1ed   : > { %12002 = vmatmul.mubr.f32.gmra.mrb[18].mxu1 %v15081_v8 }
 0x1ee   : > { %12004 = vmatprep.mubr.f32.mxu1 %v15106_v24 }
 0x1f1   : > { %12005 = vmatmul.mubr.f32.gmra.mrb[20].mxu1 %v15114_v38 }
 0x1f2   : > { %12007 = vmatprep.mubr.f32.mxu1 %v15150_v59 }
 0x1f5   : > { %12008 = vmatmul.mubr.f32.gmra.mrb[22].mxu1 %v15159_v7 }
 0x1f6   : > { %12010 = vmatprep.mubr.f32.mxu1 %v15177_v43 }
 0x1f9   : > { %12011 = vmatmul.mubr.f32.gmra.mrb[24].mxu1 %v15185_v55 }
 0x1fa   : > { %12023 = vmatprep.mubr.f32.mxu1 %v14929_v10 }
 0x1fd   : > { %12024 = vmatmul.mubr.f32.vlgmr.msra.gmra.mrb[10].mxu1 %v14956_v22 }
 0x1fe   : > { %13514 = vmatpush3.bf16.msra.mxu1 %v15331_v28  ;;  %12026 = vmatprep.mubr.f32.mxu1 %v14962_v25 }
 0x1ff   : > { %13516 = vmatprep.subr.bf16.mxu1 %v15340_v21 }
 0x201   : > { %12027 = vmatmul.mubr.f32.gmra.mrb[12].mxu1 %v14965_v26 }
 0x202   : > { %13518 = vmatpush3.bf16.msra.mxu1 %v15340_v21  ;;  %12029 = vmatprep.mubr.f32.mxu1 %v14975_v30 }
 0x203   : > { %12055 = vmatprep.subr.mxu1 %v15333_v32 }
 0x205   : > { %12030 = vmatmul.mubr.f32.gmra.mrb[14].mxu1 %v14984_v34 }
 0x206   : > { %12056 = vmatpush3.msra.mxu1 %v15333_v32  ;;  %12032 = vmatprep.mubr.f32.mxu1 %v15066_v63 }
 0x207   : > { %13520 = vmatprep.subr.bf16.mxu1 %v15338_v20 }
 0x209   : > { %12033 = vmatmul.mubr.f32.gmra.mrb[16].mxu1 %v15072_v2 }
 0x20a   : > { %12035 = vmatprep.mubr.f32.mxu1 %v15091_v12 }
 0x20d   : > { %12036 = vmatmul.mubr.f32.gmra.mrb[18].mxu1 %v16568_v4 }
 0x20e   : > { %12038 = vmatprep.mubr.f32.mxu1 %v16569_v16 }
 0x211   : > { %12039 = vmatmul.mubr.f32.gmra.mrb[20].mxu1 %v16570_v1 }
 0x212   : > { %12041 = vmatprep.mubr.f32.mxu1 %v16571_v53 }
 0x215   : > { %12042 = vmatmul.mubr.f32.gmra.mrb[22].mxu1 %v16572_v47 }
 0x216   : > { %12044 = vmatprep.mubr.f32.mxu1 %v16573_v13 }
 0x219   : > { %12045 = vmatmul.mubr.f32.gmra.mrb[24].mxu1 %v16574_v31 }
 0x21a   : > { %12057 = vmatprep.mubr.f32.mxu1 %v16575_v17 }
 0x21d   : > { %12058 = vmatmul.mubr.f32.vlgmr.msra.gmra.mrb[10].mxu1 %v16576_v54  ;;  %v16588_v54 = vld [vmem:[#allocation35_spill] sm:$0xff] }
 0x21e   : > { %13522 = vmatpush3.bf16.msra.mxu1 %v15338_v20  ;;  %12060 = vmatprep.mubr.f32.mxu1 %v16577_v57  ;;  %v16582_v20 = vld [vmem:[#allocation18_spill] sm:$0xff] }
 0x21f   : > { %13524 = vmatprep.subr.bf16.mxu1 %v15347_v61  ;;  %v16584_v57 = vld [vmem:[#allocation22_spill] sm:$0xff] }
 0x221   : > { %12061 = vmatmul.mubr.f32.gmra.mrb[12].mxu1 %v16578_v6  ;;  %v16585_v6 = vld [vmem:[#allocation26_spill] sm:$0xff] }
 0x222   : > { %13526 = vmatpush3.bf16.msra.mxu1 %v15347_v61  ;;  %12063 = vmatprep.mubr.f32.mxu1 %v16579_v46  ;;  %v16586_v61 = vld [vmem:[#allocation28_spill] sm:$0xff]  ;;  %v16587_v46 = vld [vmem:[#allocation33_spill] sm:$0xff] }
 0x223   : > { %12089 = vmatprep.subr.mxu1 %v15343_v9 }
 0x225   : > { %12064 = vmatmul.mubr.f32.gmra.mrb[14].mxu1 %v16580_v14  ;;  %v16589_v14 = vld [vmem:[#allocation38_spill] sm:$0xff] }
 0x226   : > { %12090 = vmatpush3.msra.mxu1 %v15343_v9  ;;  %12066 = vmatprep.mubr.f32.mxu1 %v16581_v40  ;;  %v16590_v9 = vld [vmem:[#allocation39_spill] sm:$0xff] }
 0x227   : > { %13528 = vmatprep.subr.bf16.mxu1 %v15331_v28 }
 0x229   : > { %12067 = vmatmul.mubr.f32.gmra.mrb[16].mxu1 %v16582_v20 }
 0x22a   : > { %12069 = vmatprep.mubr.f32.mxu1 %v16583_v52 }
 0x22d   : > { %12070 = vmatmul.mubr.f32.gmra.mrb[18].mxu1 %v16584_v57 }
 0x22e   : > { %12072 = vmatprep.mubr.f32.mxu1 %v16585_v6 }
 0x231   : > { %12073 = vmatmul.mubr.f32.gmra.mrb[20].mxu1 %v16586_v61 }
 0x232   : > { %12075 = vmatprep.mubr.f32.mxu1 %v16587_v46 }
 0x235   : > { %12076 = vmatmul.mubr.f32.gmra.mrb[22].mxu1 %v16588_v54 }
 0x236   : > { %12078 = vmatprep.mubr.f32.mxu1 %v16589_v14 }
 0x239   : > { %12079 = vmatmul.mubr.f32.gmra.mrb[24].mxu1 %v16590_v9  ;;  %v3970_v9 = vld [vmem:[%s14910_s22 + $0x3] sm:$0x1] }
 0x23a   : > { %12091 = vmatprep.mubr.f32.mxu1 %v14912_v5 }
 0x23d   : > { %12092 = vmatmul.mubr.f32.vlgmr.msra.gmra.mrb[10].mxu1 %v14942_v15 }
 0x23e   : > { %13530 = vmatpush3.bf16.msra.mxu1 %v15331_v28  ;;  %12094 = vmatprep.mubr.f32.mxu1 %v14947_v18  ;;  %v16591_v28 = vld [vmem:[#allocation7_spill] sm:$0xff] }
 0x23f   : > { %13532 = vmatprep.subr.bf16.mxu1 %v15340_v21 }
 0x241   : > { %12095 = vmatmul.mubr.f32.gmra.mrb[12].mxu1 %v14949_v19 }
 0x242   : > { %13534 = vmatpush3.bf16.msra.mxu1 %v15340_v21  ;;  %12097 = vmatprep.mubr.f32.mxu1 %v14958_v23 }
 0x243   : > { %12123 = vmatprep.subr.mxu1 %v15333_v32 }
 0x245   : > { %12098 = vmatmul.mubr.f32.gmra.mrb[14].mxu1 %v14967_v27 }
 0x246   : > { %12100 = vmatprep.mubr.f32.mxu1 %v15052_v58  ;;  %12124 = vmatpush3.msra.mxu1 %v15333_v32  ;;  %v2736_v32 = vld [vmem:[%s14910_s22 + $0x2] sm:$0x1] }
 0x247   : > { %2737 = vst [vmem:[#allocation2 + $0x20] sm:$0x1] %v2736_v32 }
 0x249   : > { %12101 = vmatmul.mubr.f32.gmra.mrb[16].mxu1 %v15056_v60 }
 0x24a   : > { %12103 = vmatprep.mubr.f32.mxu1 %v15074_v3 }
 0x24d   : > { %12104 = vmatmul.mubr.f32.gmra.mrb[18].mxu1 %v15081_v8 }
 0x24e   : > { %12106 = vmatprep.mubr.f32.mxu1 %v15106_v24  ;;  %v15466_v21 = vld [vmem:[#allocation2 + $0x20] sm:$0xff] }
 0x24f   : > { %3971 = vst [vmem:[#allocation2 + $0x20] sm:$0x1] %v3970_v9 }
 0x251   : > { %12107 = vmatmul.mubr.f32.gmra.mrb[20].mxu1 %v15114_v38 }
 0x252   : > { %12109 = vmatprep.mubr.f32.mxu1 %v15150_v59 }
 0x255   : > { %12110 = vmatmul.mubr.f32.gmra.mrb[22].mxu1 %v15159_v7 }
 0x256   : > { %12112 = vmatprep.mubr.f32.mxu1 %v15177_v43 }
 0x259   : > { %12113 = vmatmul.mubr.f32.gmra.mrb[24].mxu1 %v15185_v55 }
 0x25a   : > { %12125 = vmatprep.mubr.f32.mxu1 %v14912_v5 }
 0x25d   : > { %12126 = vmatmul.mubr.f32.vlgmr.msra.gmra.mrb[10].mxu1 %v14942_v15 }
 0x25e   : > { %12128 = vmatprep.mubr.f32.mxu1 %v14947_v18 }
 0x261   : > { %12129 = vmatmul.mubr.f32.gmra.mrb[12].mxu1 %v14949_v19 }
 0x262   : > { %12131 = vmatprep.mubr.f32.mxu1 %v14958_v23 }
 0x265   : > { %12132 = vmatmul.mubr.f32.gmra.mrb[14].mxu1 %v14967_v27 }
 0x266   : > { %12134 = vmatprep.mubr.f32.mxu1 %v15052_v58 }
 0x269   : > { %12135 = vmatmul.mubr.f32.gmra.mrb[16].mxu1 %v15056_v60 }
 0x26a   : > { %12137 = vmatprep.mubr.f32.mxu1 %v15074_v3 }
 0x26d   : > { %12138 = vmatmul.mubr.f32.gmra.mrb[18].mxu1 %v15081_v8 }
 0x26e   : > { %12140 = vmatprep.mubr.f32.mxu1 %v15106_v24 }
 0x271   : > { %12141 = vmatmul.mubr.f32.gmra.mrb[20].mxu1 %v15114_v38 }
 0x272   : > { %12143 = vmatprep.mubr.f32.mxu1 %v15150_v59 }
 0x275   : > { %12144 = vmatmul.mubr.f32.gmra.mrb[22].mxu1 %v15159_v7 }
 0x276   : > { %12146 = vmatprep.mubr.f32.mxu1 %v15177_v43 }
 0x279   : > { %12147 = vmatmul.mubr.f32.gmra.mrb[24].mxu1 %v15185_v55 }
 0x27a   : > { %12363 = vmatprep.mubr.f32.mxu1 %v16591_v28 }
 0x330   : > { %v12127_v14 = vpop.f32.mrb[10].mxu1 }
 0x331   : > { %v2562_v54 = vpop.f32.mrb[11].mxu1  ;;  %v2657_v61 = vmul.f32 0.5, %v12127_v14 }
 0x332   : > { %v2656_v57 = vmul.f32 0.5, %v2562_v54 }
 0x333   : > { %14570 = vtanh.f32 %v2657_v61 }
 0x334   : > { %v12130_v46 = vpop.f32.mrb[12].mxu1  ;;  %14572 = vtanh.f32 %v2656_v57 }
 0x335   : > { %v2574_v6 = vpop.f32.mrb[13].mxu1  ;;  %v2659_v20 = vmul.f32 0.5, %v12130_v46 }
 0x336   : > { %v2658_v31 = vmul.f32 0.5, %v2574_v6 }
 0x338   : > { %v12133_v52 = vpop.f32.mrb[14].mxu1 }
 0x339   : > { %v2673_v40 = vmul.f32 0.5, %v12133_v52  ;;  %v2586_v17 = vpop.f32.mrb[15].mxu1 }
 0x33a   : > { %v2672_v28 = vmul.f32 0.5, %v2586_v17 }
 0x33b   : > { %14574 = vtanh.f32 %v2673_v40 }
 0x33c   : > { %14576 = vtanh.f32 %v2672_v28  ;;  %v12136_v32 = vpop.f32.mrb[16].mxu1 }
 0x33d   : > { %14578 = vtanh.f32 %v2659_v20  ;;  %v2675_v13 = vmul.f32 0.5, %v12136_v32  ;;  %v2598_v9 = vpop.f32.mrb[17].mxu1  ;;  %v14571_v46 = vpop.eup %14570 }
 0x33e   : > { %14580 = vtanh.f32 %v2658_v31  ;;  %v2674_v47 = vmul.f32 0.5, %v2598_v9  ;;  %v14573_v52 = vpop.eup %14572  ;;  %v2665_v40 = vmul.f32 0.5, %v14571_v46 }
 0x33f   : > { %14582 = vtanh.f32 %v2675_v13  ;;  %v2664_v32 = vmul.f32 0.5, %v14573_v52 }
 0x340   : > { %14584 = vtanh.f32 %v2674_v47  ;;  %v12139_v14 = vpop.f32.mrb[18].mxu1  ;;  %v2669_v4 = vadd.f32 0.5, %v2665_v40 }
 0x341   : > { %14586 = vtanh.f32 %v12139_v14  ;;  %v2610_v54 = vpop.f32.mrb[19].mxu1  ;;  %v2668_v34 = vadd.f32 0.5, %v2664_v32 }
 0x342   : > { %14588 = vtanh.f32 %v2610_v54 }
 0x344   : > { %v12142_v61 = vpop.f32.mrb[20].mxu1 }
 0x345   : > { %v14575_v57 = vpop.eup %14574  ;;  %14590 = vtanh.f32 %v12142_v61  ;;  %v2622_v17 = vpop.f32.mrb[21].mxu1 }
 0x346   : > { %v14577_v6 = vpop.eup %14576  ;;  %v2681_v28 = vmul.f32 0.5, %v14575_v57  ;;  %14592 = vtanh.f32 %v2622_v17 }
 0x347   : > { %v14579_v20 = vpop.eup %14578  ;;  %v2680_v31 = vmul.f32 0.5, %v14577_v6 }
 0x348   : > { %v14581_v9 = vpop.eup %14580  ;;  %v2685_v13 = vadd.f32 0.5, %v2681_v28  ;;  %v12145_v47 = vpop.f32.mrb[22].mxu1  ;;  %v2667_v12 = vmul.f32 0.5, %v14579_v20 }
 0x349   : > { %v14583_v53 = vpop.eup %14582  ;;  %v2684_v14 = vadd.f32 0.5, %v2680_v31  ;;  %v2693_v1 = vmul.f32 0.5, %v12145_v47  ;;  %v2634_v54 = vpop.f32.mrb[23].mxu1  ;;  %v2666_v46 = vmul.f32 0.5, %v14581_v9 }
 0x34a   : > { %v14585_v16 = vpop.eup %14584  ;;  %v2683_v2 = vmul.f32 0.5, %v14583_v53  ;;  %v2692_v61 = vmul.f32 0.5, %v2634_v54  ;;  %v2709_v52 = vmul.f32 %v2685_v13, %v15319_v39  ;;  %v2671_v53 = vadd.f32 0.5, %v2667_v12 }
 0x34b   : > { %v14587_v63 = vpop.eup %14586  ;;  %v2682_v57 = vmul.f32 0.5, %v14585_v16  ;;  %14594 = vtanh.f32 %v2693_v1  ;;  %v2708_v31 = vmul.f32 %v2684_v14, %v15321_v33  ;;  %v2670_v16 = vadd.f32 0.5, %v2666_v46  ;;  %v16592_v33 = vld [vmem:[#allocation40_spill] sm:$0xff] }
 0x34c   : > { %v14589_v17 = vpop.eup %14588  ;;  %v2687_v6 = vadd.f32 0.5, %v2683_v2  ;;  %v2713_v28 = vmul.f32 %v14587_v63, %v2669_v4  ;;  %14596 = vtanh.f32 %v2692_v61  ;;  %v12148_v30 = vpop.f32.mrb[24].mxu1 }
 0x34d   : > { %v2686_v47 = vadd.f32 0.5, %v2682_v57  ;;  %v2712_v26 = vmul.f32 %v14589_v17, %v2668_v34  ;;  %v2695_v40 = vmul.f32 0.5, %v12148_v30  ;;  %v2646_v20 = vpop.f32.mrb[25].mxu1 }
 0x34e   : > { %v15471_v54 = vadd.f32 %v2713_v28, %v2709_v52  ;;  %v2694_v32 = vmul.f32 0.5, %v2646_v20  ;;  %v2711_v63 = vmul.f32 %v2687_v6, %v15325_v37 }
 0x34f   : > { %v14591_v9 = vpop.eup %14590  ;;  %v15473_v1 = vadd.f32 %v2712_v26, %v2708_v31  ;;  %14598 = vtanh.f32 %v2695_v40  ;;  %v2710_v4 = vmul.f32 %v2686_v47, %v16592_v33 }
 0x350   : > { %v14593_v39 = vpop.eup %14592  ;;  %14600 = vtanh.f32 %v15471_v54  ;;  %v2715_v2 = vmul.f32 %v14591_v9, %v2671_v53 }
 0x351   : > { %14602 = vtanh.f32 %v15473_v1  ;;  %v2714_v30 = vmul.f32 %v14593_v39, %v2670_v16 }
 0x352   : > { %v15479_v34 = vadd.f32 %v2715_v2, %v2711_v63  ;;  %14604 = vtanh.f32 %v2694_v32 }
 0x353   : > { %v15481_v12 = vadd.f32 %v2714_v30, %v2710_v4 }
 0x354   : > { %14606 = vtanh.f32 %v15479_v34 }
 0x355   : > { %v14595_v26 = vpop.eup %14594  ;;  %14608 = vtanh.f32 %v15481_v12 }
 0x356   : > { %v14597_v13 = vpop.eup %14596  ;;  %v2701_v37 = vmul.f32 0.5, %v14595_v26 }
 0x357   : > { %v2700_v14 = vmul.f32 0.5, %v14597_v13  ;;  %v15488_v13 = vand.u32 4294901760, %v15466_v21 }
 0x358   : > { %v2705_v61 = vadd.f32 0.5, %v2701_v37 }
 0x359   : > { %v14599_v46 = vpop.eup %14598  ;;  %v2704_v57 = vadd.f32 0.5, %v2700_v14 }
 0x35a   : > { %v14601_v17 = vpop.eup %14600  ;;  %v2703_v52 = vmul.f32 0.5, %v14599_v46 }
 0x35b   : > { %v14603_v6 = vpop.eup %14602  ;;  %v2725_v28 = vmul.f32 %v14601_v17, %v2705_v61 }
 0x35c   : > { %v14605_v31 = vpop.eup %14604  ;;  %v2724_v47 = vmul.f32 %v14603_v6, %v2704_v57  ;;  %v2707_v40 = vadd.f32 0.5, %v2703_v52  ;;  %v3007_v52 = vsub.f32 %v15466_v21, %v15488_v13 }
 0x35d   : > { %v2702_v20 = vmul.f32 0.5, %v14605_v31  ;;  %v2751_v53 = vand.u32 4294901760, %v2725_v28 }
 0x35e   : > { %v14607_v32 = vpop.eup %14606  ;;  %v2748_v9 = vand.u32 4294901760, %v2724_v47 }
 0x35f   : > { %v14609_v16 = vpop.eup %14608  ;;  %v2727_v39 = vmul.f32 %v14607_v32, %v2707_v40  ;;  %v2706_v63 = vadd.f32 0.5, %v2702_v20  ;;  %v2986_v2 = vsub.f32 %v2725_v28, %v2751_v53 }
 0x360   : > { %v15485_v33 = vpack.c.bf16 %v2751_v53, %v2748_v9  ;;  %v2979_v4 = vsub.f32 %v2724_v47, %v2748_v9 }
 0x361   : > { %v2726_v30 = vmul.f32 %v14609_v16, %v2706_v63  ;;  %v2757_v26 = vand.u32 4294901760, %v2727_v39  ;;  %v2987_v37 = vand.u32 4294901760, %v2986_v2  ;;  %v15499_v16 = vand.u32 4294901760, %v3007_v52 }
 0x362   : > { %13536 = vmatprep.subr.bf16.mxu0 %v15485_v33  ;;  %v2980_v14 = vand.u32 4294901760, %v2979_v4  ;;  %v13551_v61 = vpack.c.bf16 %v2986_v2, %v2979_v4 }
 0x363   : > { %13538 = vmatpush3.bf16.msra.mxu0 %v15485_v33  ;;  %v2754_v46 = vand.u32 4294901760, %v2726_v30  ;;  %v2988_v57 = vsub.f32 %v2986_v2, %v2987_v37  ;;  %v3000_v17 = vsub.f32 %v2727_v39, %v2757_v26 }
 0x364   : > { %v2981_v6 = vsub.f32 %v2979_v4, %v2980_v14  ;;  %v15494_v28 = vpack.c.bf16 %v2987_v37, %v2980_v14 }
 0x365   : > { %v15496_v31 = vpack.c.bf16 %v2757_v26, %v2754_v46  ;;  %v2989_v47 = vand.u32 4294901760, %v2988_v57  ;;  %v2993_v40 = vsub.f32 %v2726_v30, %v2754_v46  ;;  %v3001_v20 = vand.u32 4294901760, %v3000_v17  ;;  %v16594_v46 = vld [vmem:[#allocation9_spill] sm:$0xff]  ;;  %v16595_v57 = vld [vmem:[#allocation12_spill] sm:$0xff] }
 0x366   : > { %v2982_v53 = vand.u32 4294901760, %v2981_v6  ;;  %v3009_v30 = vsub.f32 %v3007_v52, %v15499_v16  ;;  %v16598_v6 = vld [vmem:[#allocation19_spill] sm:$0xff] }
 0x367   : > { %13540 = vmatprep.subr.bf16.mxu0 %v15496_v31  ;;  %v2994_v32 = vand.u32 4294901760, %v2993_v40  ;;  %v3002_v9 = vsub.f32 %v3000_v17, %v3001_v20  ;;  %v13555_v63 = vpack.c.bf16 %v3000_v17, %v2993_v40  ;;  %v16596_v17 = vld [vmem:[#allocation15_spill] sm:$0xff] }
 0x368   : > { %13542 = vmatpush3.bf16.msra.mxu0 %v15496_v31  ;;  %v13543_v39 = vpack.c.bf16 %v2989_v47, %v2982_v53  ;;  %v3010_v14 = vand.u32 4294901760, %v3009_v30  ;;  %v16599_v47 = vld [vmem:[#allocation20_spill] sm:$0xff]  ;;  %v16602_v53 = vld [vmem:[#allocation30_spill] sm:$0xff]  ;;  %v16610_v30 = vld [vmem:[#allocation13_spill] sm:$0xff] }
 0x369   : > { %12157 = vmatprep.subr.mxu0 %v15488_v13  ;;  %v2995_v21 = vsub.f32 %v2993_v40, %v2994_v32  ;;  %v3003_v2 = vand.u32 4294901760, %v3002_v9  ;;  %v15503_v4 = vpack.c.bf16 %v3001_v20, %v2994_v32  ;;  %v16600_v40 = vld [vmem:[#allocation24_spill] sm:$0xff]  ;;  %v16601_v20 = vld [vmem:[#allocation25_spill] sm:$0xff]  ;;  %v16603_v32 = vld [vmem:[#allocation31_spill] sm:$0xff] }
 0x36a   : > { %v16604_v9 = vld [vmem:[#allocation36_spill] sm:$0xff] }
 0x36b   : > { %v2996_v26 = vand.u32 4294901760, %v2995_v21  ;;  %v16607_v21 = vld [vmem:[#allocation8_spill] sm:$0xff] }
 0x36c   : > { %12158 = vmatpush3.msra.mxu0 %v15488_v13 }
 0x36d   : > { %12160 = vmatmul.mubr.f32.vlgmr.msra.gmra.mrb[16].mxu0 %v15002_v41  ;;  %13544 = vmatprep.subr.bf16.mxu0 %v13543_v39  ;;  %v13547_v37 = vpack.c.bf16 %v3003_v2, %v2996_v26  ;;  %v16608_v2 = vld [vmem:[#allocation10_spill] sm:$0xff]  ;;  %v16609_v26 = vld [vmem:[#allocation11_spill] sm:$0xff] }
 0x36e   : > { %13546 = vmatpush3.bf16.msra.mxu0 %v13543_v39  ;;  %12162 = vmatprep.mubr.f32.mxu0 %v15011_v44  ;;  %v16606_v39 = vld [vmem:[#allocation4_spill] sm:$0xff] }
 0x36f   : > { %13548 = vmatprep.subr.bf16.mxu0 %v13547_v37 }
 0x371   : > { %12163 = vmatmul.mubr.f32.gmra.mrb[18].mxu0 %v15016_v45 }
 0x372   : > { %13550 = vmatpush3.bf16.msra.mxu0 %v13547_v37  ;;  %12165 = vmatprep.mubr.f32.mxu0 %v15025_v48  ;;  %v16611_v37 = vld [vmem:[#allocation14_spill] sm:$0xff] }
 0x373   : > { %12191 = vmatprep.subr.mxu0 %v3010_v14 }
 0x375   : > { %12166 = vmatmul.mubr.f32.gmra.mrb[20].mxu0 %v15031_v50 }
 0x376   : > { %12192 = vmatpush3.msra.mxu0 %v3010_v14  ;;  %12168 = vmatprep.mubr.f32.mxu0 %v15112_v36  ;;  %v16612_v14 = vld [vmem:[#allocation17_spill] sm:$0xff] }
 0x377   : > { %13552 = vmatprep.subr.bf16.mxu0 %v13551_v61 }
 0x379   : > { %12169 = vmatmul.mubr.f32.gmra.mrb[22].mxu0 %v16563_v29 }
 0x37a   : > { %12171 = vmatprep.mubr.f32.mxu0 %v16564_v51 }
 0x37d   : > { %12172 = vmatmul.mubr.f32.gmra.mrb[24].mxu0 %v16565_v49 }
 0x37e   : > { %12174 = vmatprep.mubr.f32.mxu0 %v16566_v56 }
 0x381   : > { %12175 = vmatmul.mubr.f32.gmra.mrb[26].mxu0 %v16567_v35 }
 0x382   : > { %12177 = vmatprep.mubr.f32.mxu0 %v15207_v0 }
 0x385   : > { %12178 = vmatmul.mubr.f32.gmra.mrb[28].mxu0 %v15212_v62 }
 0x386   : > { %12180 = vmatprep.mubr.f32.mxu0 %v15222_v11 }
 0x389   : > { %12181 = vmatmul.mubr.f32.gmra.mrb[30].mxu0 %v15224_v42 }
 0x38a   : > { %12193 = vmatprep.mubr.f32.mxu0 %v14912_v5 }
 0x38d   : > { %12194 = vmatmul.mubr.f32.vlgmr.msra.gmra.mrb[16].mxu0 %v14942_v15 }
 0x38e   : > { %13554 = vmatpush3.bf16.msra.mxu0 %v13551_v61  ;;  %12196 = vmatprep.mubr.f32.mxu0 %v14947_v18  ;;  %v16593_v61 = vld [vmem:[#allocation6_spill] sm:$0xff] }
 0x38f   : > { %13556 = vmatprep.subr.bf16.mxu0 %v13555_v63 }
 0x391   : > { %12197 = vmatmul.mubr.f32.gmra.mrb[18].mxu0 %v14949_v19 }
 0x392   : > { %13558 = vmatpush3.bf16.msra.mxu0 %v13555_v63  ;;  %12199 = vmatprep.mubr.f32.mxu0 %v14958_v23  ;;  %v16605_v63 = vld [vmem:[#allocation37_spill] sm:$0xff] }
 0x393   : > { %12225 = vmatprep.subr.mxu0 %v3007_v52 }
 0x395   : > { %12200 = vmatmul.mubr.f32.gmra.mrb[20].mxu0 %v14967_v27 }
 0x396   : > { %12226 = vmatpush3.msra.mxu0 %v3007_v52  ;;  %12202 = vmatprep.mubr.f32.mxu0 %v15052_v58  ;;  %v16597_v52 = vld [vmem:[#allocation16_spill] sm:$0xff] }
 0x397   : > { %13560 = vmatprep.subr.bf16.mxu0 %v15485_v33 }
 0x399   : > { %12203 = vmatmul.mubr.f32.gmra.mrb[22].mxu0 %v15056_v60 }
 0x39a   : > { %12205 = vmatprep.mubr.f32.mxu0 %v15074_v3 }
 0x39d   : > { %12206 = vmatmul.mubr.f32.gmra.mrb[24].mxu0 %v15081_v8 }
 0x39e   : > { %12208 = vmatprep.mubr.f32.mxu0 %v15106_v24 }
 0x3a1   : > { %12209 = vmatmul.mubr.f32.gmra.mrb[26].mxu0 %v15114_v38 }
 0x3a2   : > { %12211 = vmatprep.mubr.f32.mxu0 %v15150_v59 }
 0x3a5   : > { %12212 = vmatmul.mubr.f32.gmra.mrb[28].mxu0 %v15159_v7 }
 0x3a6   : > { %12214 = vmatprep.mubr.f32.mxu0 %v15177_v43 }
 0x3a9   : > { %12215 = vmatmul.mubr.f32.gmra.mrb[30].mxu0 %v15185_v55 }
 0x3aa   : > { %12227 = vmatprep.mubr.f32.mxu0 %v14929_v10 }
 0x3ad   : > { %12228 = vmatmul.mubr.f32.vlgmr.msra.gmra.mrb[16].mxu0 %v14956_v22 }
 0x3ae   : > { %13562 = vmatpush3.bf16.msra.mxu0 %v15485_v33  ;;  %12230 = vmatprep.mubr.f32.mxu0 %v14962_v25 }
 0x3af   : > { %13564 = vmatprep.subr.bf16.mxu0 %v15496_v31 }
 0x3b1   : > { %12231 = vmatmul.mubr.f32.gmra.mrb[18].mxu0 %v16593_v61 }
 0x3b2   : > { %13566 = vmatpush3.bf16.msra.mxu0 %v15496_v31  ;;  %12233 = vmatprep.mubr.f32.mxu0 %v16594_v46 }
 0x3b3   : > { %12259 = vmatprep.subr.mxu0 %v15488_v13 }
 0x3b5   : > { %12234 = vmatmul.mubr.f32.gmra.mrb[20].mxu0 %v16595_v57 }
 0x3b6   : > { %12260 = vmatpush3.msra.mxu0 %v15488_v13  ;;  %12236 = vmatprep.mubr.f32.mxu0 %v16596_v17 }
 0x3b7   : > { %13568 = vmatprep.subr.bf16.mxu0 %v15494_v28 }
 0x3b9   : > { %12237 = vmatmul.mubr.f32.gmra.mrb[22].mxu0 %v16597_v52 }
 0x3ba   : > { %12239 = vmatprep.mubr.f32.mxu0 %v16598_v6 }
 0x3bd   : > { %12240 = vmatmul.mubr.f32.gmra.mrb[24].mxu0 %v16599_v47 }
 0x3be   : > { %12242 = vmatprep.mubr.f32.mxu0 %v16600_v40 }
 0x3c1   : > { %12243 = vmatmul.mubr.f32.gmra.mrb[26].mxu0 %v16601_v20 }
 0x3c2   : > { %12245 = vmatprep.mubr.f32.mxu0 %v16602_v53 }
 0x3c5   : > { %12246 = vmatmul.mubr.f32.gmra.mrb[28].mxu0 %v16603_v32 }
 0x3c6   : > { %12248 = vmatprep.mubr.f32.mxu0 %v16604_v9 }
 0x3c9   : > { %12249 = vmatmul.mubr.f32.gmra.mrb[30].mxu0 %v16605_v63 }
 0x3ca   : > { %12261 = vmatprep.mubr.f32.mxu0 %v16606_v39  ;;  %v16619_v39 = vld [vmem:[#allocation35_spill] sm:$0xff] }
 0x3cd   : > { %12262 = vmatmul.mubr.f32.vlgmr.msra.gmra.mrb[16].mxu0 %v16607_v21  ;;  %v16615_v21 = vld [vmem:[#allocation22_spill] sm:$0xff] }
 0x3ce   : > { %13570 = vmatpush3.bf16.msra.mxu0 %v15494_v28  ;;  %12264 = vmatprep.mubr.f32.mxu0 %v16608_v2  ;;  %v16613_v28 = vld [vmem:[#allocation18_spill] sm:$0xff]  ;;  %v16614_v2 = vld [vmem:[#allocation21_spill] sm:$0xff] }
 0x3cf   : > { %13572 = vmatprep.subr.bf16.mxu0 %v15503_v4 }
 0x3d1   : > { %12265 = vmatmul.mubr.f32.gmra.mrb[18].mxu0 %v16609_v26  ;;  %v16616_v26 = vld [vmem:[#allocation26_spill] sm:$0xff] }
 0x3d2   : > { %13574 = vmatpush3.bf16.msra.mxu0 %v15503_v4  ;;  %12267 = vmatprep.mubr.f32.mxu0 %v16610_v30  ;;  %v16617_v4 = vld [vmem:[#allocation28_spill] sm:$0xff]  ;;  %v16618_v30 = vld [vmem:[#allocation33_spill] sm:$0xff] }
 0x3d3   : > { %12293 = vmatprep.subr.mxu0 %v15499_v16 }
 0x3d5   : > { %12268 = vmatmul.mubr.f32.gmra.mrb[20].mxu0 %v16611_v37  ;;  %v16620_v37 = vld [vmem:[#allocation38_spill] sm:$0xff] }
 0x3d6   : > { %12294 = vmatpush3.msra.mxu0 %v15499_v16  ;;  %12270 = vmatprep.mubr.f32.mxu0 %v16612_v14  ;;  %v16621_v16 = vld [vmem:[#allocation39_spill] sm:$0xff] }
 0x3d7   : > { %13576 = vmatprep.subr.bf16.mxu0 %v15485_v33 }
 0x3d9   : > { %12271 = vmatmul.mubr.f32.gmra.mrb[22].mxu0 %v16613_v28 }
 0x3da   : > { %12273 = vmatprep.mubr.f32.mxu0 %v16614_v2 }
 0x3dd   : > { %12274 = vmatmul.mubr.f32.gmra.mrb[24].mxu0 %v16615_v21 }
 0x3de   : > { %12276 = vmatprep.mubr.f32.mxu0 %v16616_v26 }
 0x3e1   : > { %12277 = vmatmul.mubr.f32.gmra.mrb[26].mxu0 %v16617_v4 }
 0x3e2   : > { %12279 = vmatprep.mubr.f32.mxu0 %v16618_v30 }
 0x3e5   : > { %12280 = vmatmul.mubr.f32.gmra.mrb[28].mxu0 %v16619_v39 }
 0x3e6   : > { %12282 = vmatprep.mubr.f32.mxu0 %v16620_v37 }
 0x3e9   : > { %12283 = vmatmul.mubr.f32.gmra.mrb[30].mxu0 %v16621_v16 }
 0x3ea   : > { %12295 = vmatprep.mubr.f32.mxu0 %v14912_v5 }
 0x3ed   : > { %12296 = vmatmul.mubr.f32.vlgmr.msra.gmra.mrb[16].mxu0 %v14942_v15 }
 0x3ee   : > { %13578 = vmatpush3.bf16.msra.mxu0 %v15485_v33  ;;  %12298 = vmatprep.mubr.f32.mxu0 %v14947_v18  ;;  %v16622_v33 = vld [vmem:[#allocation7_spill] sm:$0xff] }
 0x3ef   : > { %13580 = vmatprep.subr.bf16.mxu0 %v15496_v31 }
 0x3f1   : > { %12299 = vmatmul.mubr.f32.gmra.mrb[18].mxu0 %v14949_v19 }
 0x3f2   : > { %13582 = vmatpush3.bf16.msra.mxu0 %v15496_v31  ;;  %12301 = vmatprep.mubr.f32.mxu0 %v14958_v23  ;;  %v5204_v31 = vld [vmem:[%s14910_s22 + $0x4] sm:$0x1] }
 0x3f3   : > { %12327 = vmatprep.subr.mxu0 %v15488_v13 }
 0x3f5   : > { %12302 = vmatmul.mubr.f32.gmra.mrb[20].mxu0 %v14967_v27 }
 0x3f6   : > { %12304 = vmatprep.mubr.f32.mxu0 %v15052_v58  ;;  %12328 = vmatpush3.msra.mxu0 %v15488_v13  ;;  %v15621_v13 = vld [vmem:[#allocation2 + $0x20] sm:$0xff] }
 0x3f7   : > { %5205 = vst [vmem:[#allocation2 + $0x20] sm:$0x1] %v5204_v31 }
 0x3f9   : > { %12305 = vmatmul.mubr.f32.gmra.mrb[22].mxu0 %v15056_v60 }
 0x3fa   : > { %12307 = vmatprep.mubr.f32.mxu0 %v15074_v3 }
 0x3fd   : > { %12308 = vmatmul.mubr.f32.gmra.mrb[24].mxu0 %v15081_v8 }
 0x3fe   : > { %12310 = vmatprep.mubr.f32.mxu0 %v15106_v24 }
 0x401   : > { %12311 = vmatmul.mubr.f32.gmra.mrb[26].mxu0 %v15114_v38 }
 0x402   : > { %12313 = vmatprep.mubr.f32.mxu0 %v15150_v59 }
 0x405   : > { %12314 = vmatmul.mubr.f32.gmra.mrb[28].mxu0 %v15159_v7 }
 0x406   : > { %12316 = vmatprep.mubr.f32.mxu0 %v15177_v43 }
 0x409   : > { %12317 = vmatmul.mubr.f32.gmra.mrb[30].mxu0 %v15185_v55 }
 0x40a   : > { %12329 = vmatprep.mubr.f32.mxu0 %v14912_v5 }
 0x40d   : > { %12330 = vmatmul.mubr.f32.vlgmr.msra.gmra.mrb[16].mxu0 %v14942_v15 }
 0x40e   : > { %12332 = vmatprep.mubr.f32.mxu0 %v14947_v18 }
 0x411   : > { %12333 = vmatmul.mubr.f32.gmra.mrb[18].mxu0 %v14949_v19 }
 0x412   : > { %12335 = vmatprep.mubr.f32.mxu0 %v14958_v23 }
 0x415   : > { %12336 = vmatmul.mubr.f32.gmra.mrb[20].mxu0 %v14967_v27 }
 0x416   : > { %12338 = vmatprep.mubr.f32.mxu0 %v15052_v58 }
 0x419   : > { %12339 = vmatmul.mubr.f32.gmra.mrb[22].mxu0 %v15056_v60 }
 0x41a   : > { %12341 = vmatprep.mubr.f32.mxu0 %v15074_v3 }
 0x41d   : > { %12342 = vmatmul.mubr.f32.gmra.mrb[24].mxu0 %v15081_v8 }
 0x41e   : > { %12344 = vmatprep.mubr.f32.mxu0 %v15106_v24 }
 0x421   : > { %12345 = vmatmul.mubr.f32.gmra.mrb[26].mxu0 %v15114_v38 }
 0x422   : > { %12347 = vmatprep.mubr.f32.mxu0 %v15150_v59 }
 0x425   : > { %12348 = vmatmul.mubr.f32.gmra.mrb[28].mxu0 %v15159_v7 }
 0x426   : > { %12350 = vmatprep.mubr.f32.mxu0 %v15177_v43 }
 0x429   : > { %12351 = vmatmul.mubr.f32.gmra.mrb[30].mxu0 %v15185_v55 }
 0x42a   : > { %12567 = vmatprep.mubr.f32.mxu0 %v16622_v33 }
 0x4e0   : > { %v12331_v16 = vpop.f32.mrb[16].mxu0 }
 0x4e1   : > { %v3796_v37 = vpop.f32.mrb[17].mxu0  ;;  %v3891_v30 = vmul.f32 0.5, %v12331_v16 }
 0x4e2   : > { %v3890_v26 = vmul.f32 0.5, %v3796_v37 }
 0x4e3   : > { %14610 = vtanh.f32 %v3891_v30 }
 0x4e4   : > { %v12334_v39 = vpop.f32.mrb[18].mxu0  ;;  %14612 = vtanh.f32 %v3890_v26 }
 0x4e5   : > { %v3808_v4 = vpop.f32.mrb[19].mxu0  ;;  %v3893_v2 = vmul.f32 0.5, %v12334_v39 }
 0x4e6   : > { %v3892_v63 = vmul.f32 0.5, %v3808_v4 }
 0x4e8   : > { %v12337_v21 = vpop.f32.mrb[20].mxu0 }
 0x4e9   : > { %v3907_v28 = vmul.f32 0.5, %v12337_v21  ;;  %v3820_v14 = vpop.f32.mrb[21].mxu0 }
 0x4ea   : > { %v3906_v9 = vmul.f32 0.5, %v3820_v14 }
 0x4eb   : > { %14614 = vtanh.f32 %v3907_v28 }
 0x4ec   : > { %14616 = vtanh.f32 %v3906_v9  ;;  %v12340_v33 = vpop.f32.mrb[22].mxu0 }
 0x4ed   : > { %14618 = vtanh.f32 %v3893_v2  ;;  %v3909_v32 = vmul.f32 0.5, %v12340_v33  ;;  %v3832_v31 = vpop.f32.mrb[23].mxu0  ;;  %v14611_v39 = vpop.eup %14610 }
 0x4ee   : > { %14620 = vtanh.f32 %v3892_v63  ;;  %v3908_v53 = vmul.f32 0.5, %v3832_v31  ;;  %v14613_v21 = vpop.eup %14612  ;;  %v3899_v9 = vmul.f32 0.5, %v14611_v39 }
 0x4ef   : > { %14622 = vtanh.f32 %v3909_v32  ;;  %v3898_v33 = vmul.f32 0.5, %v14613_v21 }
 0x4f0   : > { %14624 = vtanh.f32 %v3908_v53  ;;  %v12343_v16 = vpop.f32.mrb[24].mxu0  ;;  %v3903_v6 = vadd.f32 0.5, %v3899_v9 }
 0x4f1   : > { %14626 = vtanh.f32 %v12343_v16  ;;  %v3844_v37 = vpop.f32.mrb[25].mxu0  ;;  %v3902_v46 = vadd.f32 0.5, %v3898_v33 }
 0x4f2   : > { %14628 = vtanh.f32 %v3844_v37 }
 0x4f4   : > { %v12346_v30 = vpop.f32.mrb[26].mxu0 }
 0x4f5   : > { %v14615_v26 = vpop.eup %14614  ;;  %14630 = vtanh.f32 %v12346_v30  ;;  %v3856_v14 = vpop.f32.mrb[27].mxu0 }
 0x4f6   : > { %v14617_v28 = vpop.eup %14616  ;;  %v3915_v4 = vmul.f32 0.5, %v14615_v26  ;;  %14632 = vtanh.f32 %v3856_v14 }
 0x4f7   : > { %v14619_v2 = vpop.eup %14618  ;;  %v3914_v63 = vmul.f32 0.5, %v14617_v28 }
 0x4f8   : > { %v14621_v31 = vpop.eup %14620  ;;  %v3919_v32 = vadd.f32 0.5, %v3915_v4  ;;  %v12349_v53 = vpop.f32.mrb[28].mxu0  ;;  %v3901_v52 = vmul.f32 0.5, %v14619_v2 }
 0x4f9   : > { %v14623_v20 = vpop.eup %14622  ;;  %v3918_v16 = vadd.f32 0.5, %v3914_v63  ;;  %v3927_v40 = vmul.f32 0.5, %v12349_v53  ;;  %v3868_v37 = vpop.f32.mrb[29].mxu0  ;;  %v3900_v39 = vmul.f32 0.5, %v14621_v31 }
 0x4fa   : > { %v14625_v47 = vpop.eup %14624  ;;  %v3917_v17 = vmul.f32 0.5, %v14623_v20  ;;  %v3926_v30 = vmul.f32 0.5, %v3868_v37  ;;  %v3943_v21 = vmul.f32 %v3919_v32, %v15471_v54  ;;  %v3905_v20 = vadd.f32 0.5, %v3901_v52 }
 0x4fb   : > { %v14627_v57 = vpop.eup %14626  ;;  %v3916_v26 = vmul.f32 0.5, %v14625_v47  ;;  %14634 = vtanh.f32 %v3927_v40  ;;  %v3942_v63 = vmul.f32 %v3918_v16, %v15473_v1  ;;  %v3904_v47 = vadd.f32 0.5, %v3900_v39 }
 0x4fc   : > { %v14629_v14 = vpop.eup %14628  ;;  %v3921_v28 = vadd.f32 0.5, %v3917_v17  ;;  %v3947_v4 = vmul.f32 %v14627_v57, %v3903_v6  ;;  %14636 = vtanh.f32 %v3926_v30  ;;  %v12352_v61 = vpop.f32.mrb[30].mxu0 }
 0x4fd   : > { %v3920_v53 = vadd.f32 0.5, %v3916_v26  ;;  %v3946_v25 = vmul.f32 %v14629_v14, %v3902_v46  ;;  %v3929_v9 = vmul.f32 0.5, %v12352_v61  ;;  %v3880_v2 = vpop.f32.mrb[31].mxu0 }
 0x4fe   : > { %v15626_v37 = vadd.f32 %v3947_v4, %v3943_v21  ;;  %v3928_v33 = vmul.f32 0.5, %v3880_v2  ;;  %v3945_v57 = vmul.f32 %v3921_v28, %v15479_v34 }
 0x4ff   : > { %v14631_v31 = vpop.eup %14630  ;;  %v15628_v40 = vadd.f32 %v3946_v25, %v3942_v63  ;;  %14638 = vtanh.f32 %v3929_v9  ;;  %v3944_v1 = vmul.f32 %v3920_v53, %v15481_v12 }
 0x500   : > { %v14633_v54 = vpop.eup %14632  ;;  %14640 = vtanh.f32 %v15626_v37  ;;  %v3949_v17 = vmul.f32 %v14631_v31, %v3905_v20 }
 0x501   : > { %14642 = vtanh.f32 %v15628_v40  ;;  %v3948_v61 = vmul.f32 %v14633_v54, %v3904_v47 }
 0x502   : > { %v15634_v46 = vadd.f32 %v3949_v17, %v3945_v57  ;;  %14644 = vtanh.f32 %v3928_v33 }
 0x503   : > { %v15636_v52 = vadd.f32 %v3948_v61, %v3944_v1 }
 0x504   : > { %14646 = vtanh.f32 %v15634_v46 }
 0x505   : > { %v14635_v25 = vpop.eup %14634  ;;  %14648 = vtanh.f32 %v15636_v52 }
 0x506   : > { %v14637_v6 = vpop.eup %14636  ;;  %v3935_v34 = vmul.f32 0.5, %v14635_v25  ;;  %v15643_v25 = vand.u32 4294901760, %v15621_v13 }
 0x507   : > { %v3934_v32 = vmul.f32 0.5, %v14637_v6 }
 0x508   : > { %v3939_v16 = vadd.f32 0.5, %v3935_v34 }
 0x509   : > { %v14639_v30 = vpop.eup %14638  ;;  %v3938_v39 = vadd.f32 0.5, %v3934_v32 }
 0x50a   : > { %v14641_v12 = vpop.eup %14640  ;;  %v3937_v26 = vmul.f32 0.5, %v14639_v30 }
 0x50b   : > { %v14643_v14 = vpop.eup %14642  ;;  %v3959_v21 = vmul.f32 %v14641_v12, %v3939_v16  ;;  %v4241_v12 = vsub.f32 %v15621_v13, %v15643_v25 }
 0x50c   : > { %v14645_v28 = vpop.eup %14644  ;;  %v3958_v4 = vmul.f32 %v14643_v14, %v3938_v39  ;;  %v3941_v63 = vadd.f32 0.5, %v3937_v26 }
 0x50d   : > { %v3936_v53 = vmul.f32 0.5, %v14645_v28  ;;  %v3985_v9 = vand.u32 4294901760, %v3959_v21 }
 0x50e   : > { %v14647_v2 = vpop.eup %14646  ;;  %v3982_v20 = vand.u32 4294901760, %v3958_v4 }
 0x50f   : > { %v14649_v33 = vpop.eup %14648  ;;  %v3961_v31 = vmul.f32 %v14647_v2, %v3941_v63  ;;  %v3940_v47 = vadd.f32 0.5, %v3936_v53  ;;  %v4220_v54 = vsub.f32 %v3959_v21, %v3985_v9 }
 0x510   : > { %v15640_v57 = vpack.c.bf16 %v3985_v9, %v3982_v20  ;;  %v4213_v17 = vsub.f32 %v3958_v4, %v3982_v20  ;;  %v15654_v20 = vand.u32 4294901760, %v4241_v12 }
 0x511   : > { %v3960_v1 = vmul.f32 %v14649_v33, %v3940_v47  ;;  %v3991_v61 = vand.u32 4294901760, %v3961_v31  ;;  %v4221_v6 = vand.u32 4294901760, %v4220_v54 }
 0x512   : > { %13584 = vmatprep.subr.bf16.mxu1 %v15640_v57  ;;  %v4214_v34 = vand.u32 4294901760, %v4213_v17  ;;  %v13599_v32 = vpack.c.bf16 %v4220_v54, %v4213_v17 }
 0x513   : > { %13586 = vmatpush3.bf16.msra.mxu1 %v15640_v57  ;;  %v3988_v16 = vand.u32 4294901760, %v3960_v1  ;;  %v4222_v30 = vsub.f32 %v4220_v54, %v4221_v6  ;;  %v4234_v39 = vsub.f32 %v3961_v31, %v3991_v61 }
 0x514   : > { %v4215_v26 = vsub.f32 %v4213_v17, %v4214_v34  ;;  %v15649_v14 = vpack.c.bf16 %v4221_v6, %v4214_v34  ;;  %v16623_v34 = vld [vmem:[#allocation5_spill] sm:$0xff] }
 0x515   : > { %v15651_v21 = vpack.c.bf16 %v3991_v61, %v3988_v16  ;;  %v4223_v28 = vand.u32 4294901760, %v4222_v30  ;;  %v4227_v4 = vsub.f32 %v3960_v1, %v3988_v16  ;;  %v4235_v63 = vand.u32 4294901760, %v4234_v39  ;;  %v16625_v16 = vld [vmem:[#allocation9_spill] sm:$0xff]  ;;  %v16626_v30 = vld [vmem:[#allocation12_spill] sm:$0xff] }
 0x516   : > { %v4216_v53 = vand.u32 4294901760, %v4215_v26  ;;  %v4243_v1 = vsub.f32 %v4241_v12, %v15654_v20  ;;  %v16629_v26 = vld [vmem:[#allocation19_spill] sm:$0xff] }
 0x517   : > { %13588 = vmatprep.subr.bf16.mxu1 %v15651_v21  ;;  %v4228_v9 = vand.u32 4294901760, %v4227_v4  ;;  %v4236_v2 = vsub.f32 %v4234_v39, %v4235_v63  ;;  %v13603_v33 = vpack.c.bf16 %v4234_v39, %v4227_v4  ;;  %v16627_v39 = vld [vmem:[#allocation15_spill] sm:$0xff] }
 0x518   : > { %13590 = vmatpush3.bf16.msra.mxu1 %v15651_v21  ;;  %v13591_v31 = vpack.c.bf16 %v4223_v28, %v4216_v53  ;;  %v4244_v6 = vand.u32 4294901760, %v4243_v1  ;;  %v16630_v28 = vld [vmem:[#allocation20_spill] sm:$0xff]  ;;  %v16633_v53 = vld [vmem:[#allocation30_spill] sm:$0xff]  ;;  %v16641_v1 = vld [vmem:[#allocation13_spill] sm:$0xff] }
 0x519   : > { %12361 = vmatprep.subr.mxu1 %v15643_v25  ;;  %v4229_v13 = vsub.f32 %v4227_v4, %v4228_v9  ;;  %v4237_v47 = vand.u32 4294901760, %v4236_v2  ;;  %v15658_v54 = vpack.c.bf16 %v4235_v63, %v4228_v9  ;;  %v16631_v4 = vld [vmem:[#allocation24_spill] sm:$0xff]  ;;  %v16632_v63 = vld [vmem:[#allocation25_spill] sm:$0xff]  ;;  %v16634_v9 = vld [vmem:[#allocation31_spill] sm:$0xff] }
 0x51a   : > { %v16635_v2 = vld [vmem:[#allocation36_spill] sm:$0xff] }
 0x51b   : > { %v4230_v17 = vand.u32 4294901760, %v4229_v13  ;;  %v16638_v13 = vld [vmem:[#allocation8_spill] sm:$0xff] }
 0x51c   : > { %12362 = vmatpush3.msra.mxu1 %v15643_v25 }
 0x51d   : > { %12364 = vmatmul.mubr.f32.vlgmr.msra.gmra.mrb[26].mxu1 %v15002_v41  ;;  %13592 = vmatprep.subr.bf16.mxu1 %v13591_v31  ;;  %v13595_v61 = vpack.c.bf16 %v4237_v47, %v4230_v17  ;;  %v16639_v47 = vld [vmem:[#allocation10_spill] sm:$0xff]  ;;  %v16640_v17 = vld [vmem:[#allocation11_spill] sm:$0xff] }
 0x51e   : > { %13594 = vmatpush3.bf16.msra.mxu1 %v13591_v31  ;;  %12366 = vmatprep.mubr.f32.mxu1 %v15011_v44  ;;  %v16637_v31 = vld [vmem:[#allocation4_spill] sm:$0xff] }
 0x51f   : > { %13596 = vmatprep.subr.bf16.mxu1 %v13595_v61 }
 0x521   : > { %12367 = vmatmul.mubr.f32.gmra.mrb[28].mxu1 %v15016_v45 }
 0x522   : > { %13598 = vmatpush3.bf16.msra.mxu1 %v13595_v61  ;;  %12369 = vmatprep.mubr.f32.mxu1 %v15025_v48  ;;  %v16642_v61 = vld [vmem:[#allocation14_spill] sm:$0xff] }
 0x523   : > { %12395 = vmatprep.subr.mxu1 %v4244_v6 }
 0x525   : > { %12370 = vmatmul.mubr.f32.gmra.mrb[30].mxu1 %v15031_v50 }
 0x526   : > { %12396 = vmatpush3.msra.mxu1 %v4244_v6  ;;  %12372 = vmatprep.mubr.f32.mxu1 %v15112_v36  ;;  %v16643_v6 = vld [vmem:[#allocation17_spill] sm:$0xff] }
 0x527   : > { %13600 = vmatprep.subr.bf16.mxu1 %v13599_v32 }
 0x529   : > { %12373 = vmatmul.mubr.f32.gmra.mrb[32].mxu1 %v16563_v29 }
 0x52a   : > { %12375 = vmatprep.mubr.f32.mxu1 %v16564_v51 }
 0x52d   : > { %12376 = vmatmul.mubr.f32.gmra.mrb[34].mxu1 %v16565_v49 }
 0x52e   : > { %12378 = vmatprep.mubr.f32.mxu1 %v16566_v56 }
 0x531   : > { %12379 = vmatmul.mubr.f32.gmra.mrb[36].mxu1 %v16567_v35 }
 0x532   : > { %12381 = vmatprep.mubr.f32.mxu1 %v15207_v0 }
 0x535   : > { %12382 = vmatmul.mubr.f32.gmra.mrb[38].mxu1 %v15212_v62 }
 0x536   : > { %12384 = vmatprep.mubr.f32.mxu1 %v15222_v11 }
 0x539   : > { %12385 = vmatmul.mubr.f32.gmra.mrb[40].mxu1 %v15224_v42 }
 0x53a   : > { %12397 = vmatprep.mubr.f32.mxu1 %v14912_v5 }
 0x53d   : > { %12398 = vmatmul.mubr.f32.vlgmr.msra.gmra.mrb[26].mxu1 %v14942_v15 }
 0x53e   : > { %13602 = vmatpush3.bf16.msra.mxu1 %v13599_v32  ;;  %12400 = vmatprep.mubr.f32.mxu1 %v14947_v18  ;;  %v16624_v32 = vld [vmem:[#allocation6_spill] sm:$0xff] }
 0x53f   : > { %13604 = vmatprep.subr.bf16.mxu1 %v13603_v33 }
 0x541   : > { %12401 = vmatmul.mubr.f32.gmra.mrb[28].mxu1 %v14949_v19 }
 0x542   : > { %13606 = vmatpush3.bf16.msra.mxu1 %v13603_v33  ;;  %12403 = vmatprep.mubr.f32.mxu1 %v14958_v23  ;;  %v16636_v33 = vld [vmem:[#allocation37_spill] sm:$0xff] }
 0x543   : > { %12429 = vmatprep.subr.mxu1 %v4241_v12 }
 0x545   : > { %12404 = vmatmul.mubr.f32.gmra.mrb[30].mxu1 %v14967_v27 }
 0x546   : > { %12430 = vmatpush3.msra.mxu1 %v4241_v12  ;;  %12406 = vmatprep.mubr.f32.mxu1 %v15052_v58  ;;  %v16628_v12 = vld [vmem:[#allocation16_spill] sm:$0xff] }
 0x547   : > { %13608 = vmatprep.subr.bf16.mxu1 %v15640_v57 }
 0x549   : > { %12407 = vmatmul.mubr.f32.gmra.mrb[32].mxu1 %v15056_v60 }
 0x54a   : > { %12409 = vmatprep.mubr.f32.mxu1 %v15074_v3 }
 0x54d   : > { %12410 = vmatmul.mubr.f32.gmra.mrb[34].mxu1 %v15081_v8 }
 0x54e   : > { %12412 = vmatprep.mubr.f32.mxu1 %v15106_v24 }
 0x551   : > { %12413 = vmatmul.mubr.f32.gmra.mrb[36].mxu1 %v15114_v38 }
 0x552   : > { %12415 = vmatprep.mubr.f32.mxu1 %v15150_v59 }
 0x555   : > { %12416 = vmatmul.mubr.f32.gmra.mrb[38].mxu1 %v15159_v7 }
 0x556   : > { %12418 = vmatprep.mubr.f32.mxu1 %v15177_v43 }
 0x559   : > { %12419 = vmatmul.mubr.f32.gmra.mrb[40].mxu1 %v15185_v55 }
 0x55a   : > { %12431 = vmatprep.mubr.f32.mxu1 %v14929_v10 }
 0x55d   : > { %12432 = vmatmul.mubr.f32.vlgmr.msra.gmra.mrb[26].mxu1 %v14956_v22 }
 0x55e   : > { %13610 = vmatpush3.bf16.msra.mxu1 %v15640_v57  ;;  %12434 = vmatprep.mubr.f32.mxu1 %v16623_v34 }
 0x55f   : > { %13612 = vmatprep.subr.bf16.mxu1 %v15651_v21 }
 0x561   : > { %12435 = vmatmul.mubr.f32.gmra.mrb[28].mxu1 %v16624_v32 }
 0x562   : > { %13614 = vmatpush3.bf16.msra.mxu1 %v15651_v21  ;;  %12437 = vmatprep.mubr.f32.mxu1 %v16625_v16 }
 0x563   : > { %12463 = vmatprep.subr.mxu1 %v15643_v25 }
 0x565   : > { %12438 = vmatmul.mubr.f32.gmra.mrb[30].mxu1 %v16626_v30 }
 0x566   : > { %12464 = vmatpush3.msra.mxu1 %v15643_v25  ;;  %12440 = vmatprep.mubr.f32.mxu1 %v16627_v39 }
 0x567   : > { %13616 = vmatprep.subr.bf16.mxu1 %v15649_v14 }
 0x569   : > { %12441 = vmatmul.mubr.f32.gmra.mrb[32].mxu1 %v16628_v12 }
 0x56a   : > { %12443 = vmatprep.mubr.f32.mxu1 %v16629_v26 }
 0x56d   : > { %12444 = vmatmul.mubr.f32.gmra.mrb[34].mxu1 %v16630_v28 }
 0x56e   : > { %12446 = vmatprep.mubr.f32.mxu1 %v16631_v4 }
 0x571   : > { %12447 = vmatmul.mubr.f32.gmra.mrb[36].mxu1 %v16632_v63 }
 0x572   : > { %12449 = vmatprep.mubr.f32.mxu1 %v16633_v53 }
 0x575   : > { %12450 = vmatmul.mubr.f32.gmra.mrb[38].mxu1 %v16634_v9 }
 0x576   : > { %12452 = vmatprep.mubr.f32.mxu1 %v16635_v2 }
 0x579   : > { %12453 = vmatmul.mubr.f32.gmra.mrb[40].mxu1 %v16636_v33 }
 0x57a   : > { %12465 = vmatprep.mubr.f32.mxu1 %v16637_v31  ;;  %v16650_v31 = vld [vmem:[#allocation35_spill] sm:$0xff] }
 0x57d   : > { %12466 = vmatmul.mubr.f32.vlgmr.msra.gmra.mrb[26].mxu1 %v16638_v13  ;;  %v16646_v13 = vld [vmem:[#allocation22_spill] sm:$0xff] }
 0x57e   : > { %13618 = vmatpush3.bf16.msra.mxu1 %v15649_v14  ;;  %12468 = vmatprep.mubr.f32.mxu1 %v16639_v47  ;;  %v16644_v14 = vld [vmem:[#allocation18_spill] sm:$0xff]  ;;  %v16645_v47 = vld [vmem:[#allocation21_spill] sm:$0xff] }
 0x57f   : > { %13620 = vmatprep.subr.bf16.mxu1 %v15658_v54 }
 0x581   : > { %12469 = vmatmul.mubr.f32.gmra.mrb[28].mxu1 %v16640_v17  ;;  %v16647_v17 = vld [vmem:[#allocation26_spill] sm:$0xff] }
 0x582   : > { %13622 = vmatpush3.bf16.msra.mxu1 %v15658_v54  ;;  %12471 = vmatprep.mubr.f32.mxu1 %v16641_v1  ;;  %v16648_v54 = vld [vmem:[#allocation28_spill] sm:$0xff]  ;;  %v16649_v1 = vld [vmem:[#allocation33_spill] sm:$0xff] }
 0x583   : > { %12497 = vmatprep.subr.mxu1 %v15654_v20 }
 0x585   : > { %12472 = vmatmul.mubr.f32.gmra.mrb[30].mxu1 %v16642_v61  ;;  %v16651_v61 = vld [vmem:[#allocation38_spill] sm:$0xff] }
 0x586   : > { %12498 = vmatpush3.msra.mxu1 %v15654_v20  ;;  %12474 = vmatprep.mubr.f32.mxu1 %v16643_v6  ;;  %v16652_v20 = vld [vmem:[#allocation39_spill] sm:$0xff] }
 0x587   : > { %13624 = vmatprep.subr.bf16.mxu1 %v15640_v57 }
 0x589   : > { %12475 = vmatmul.mubr.f32.gmra.mrb[32].mxu1 %v16644_v14 }
 0x58a   : > { %12477 = vmatprep.mubr.f32.mxu1 %v16645_v47 }
 0x58d   : > { %12478 = vmatmul.mubr.f32.gmra.mrb[34].mxu1 %v16646_v13 }
 0x58e   : > { %12480 = vmatprep.mubr.f32.mxu1 %v16647_v17 }
 0x591   : > { %12481 = vmatmul.mubr.f32.gmra.mrb[36].mxu1 %v16648_v54 }
 0x592   : > { %12483 = vmatprep.mubr.f32.mxu1 %v16649_v1 }
 0x595   : > { %12484 = vmatmul.mubr.f32.gmra.mrb[38].mxu1 %v16650_v31 }
 0x596   : > { %12486 = vmatprep.mubr.f32.mxu1 %v16651_v61 }
 0x599   : > { %12487 = vmatmul.mubr.f32.gmra.mrb[40].mxu1 %v16652_v20 }
 0x59a   : > { %12499 = vmatprep.mubr.f32.mxu1 %v14912_v5 }
 0x59d   : > { %12500 = vmatmul.mubr.f32.vlgmr.msra.gmra.mrb[26].mxu1 %v14942_v15 }
 0x59e   : > { %13626 = vmatpush3.bf16.msra.mxu1 %v15640_v57  ;;  %12502 = vmatprep.mubr.f32.mxu1 %v14947_v18  ;;  %v16653_v57 = vld [vmem:[#allocation7_spill] sm:$0xff] }
 0x59f   : > { %13628 = vmatprep.subr.bf16.mxu1 %v15651_v21 }
 0x5a1   : > { %12503 = vmatmul.mubr.f32.gmra.mrb[28].mxu1 %v14949_v19 }
 0x5a2   : > { %13630 = vmatpush3.bf16.msra.mxu1 %v15651_v21  ;;  %12505 = vmatprep.mubr.f32.mxu1 %v14958_v23  ;;  %v6438_v21 = vld [vmem:[%s14910_s22 + $0x5] sm:$0x1] }
 0x5a3   : > { %12531 = vmatprep.subr.mxu1 %v15643_v25 }
 0x5a5   : > { %12506 = vmatmul.mubr.f32.gmra.mrb[30].mxu1 %v14967_v27 }
 0x5a6   : > { %12508 = vmatprep.mubr.f32.mxu1 %v15052_v58  ;;  %12532 = vmatpush3.msra.mxu1 %v15643_v25  ;;  %v15776_v25 = vld [vmem:[#allocation2 + $0x20] sm:$0xff] }
 0x5a7   : > { %6439 = vst [vmem:[#allocation2 + $0x20] sm:$0x1] %v6438_v21 }
 0x5a9   : > { %12509 = vmatmul.mubr.f32.gmra.mrb[32].mxu1 %v15056_v60 }
 0x5aa   : > { %12511 = vmatprep.mubr.f32.mxu1 %v15074_v3 }
 0x5ad   : > { %12512 = vmatmul.mubr.f32.gmra.mrb[34].mxu1 %v15081_v8 }
 0x5ae   : > { %12514 = vmatprep.mubr.f32.mxu1 %v15106_v24 }
 0x5b1   : > { %12515 = vmatmul.mubr.f32.gmra.mrb[36].mxu1 %v15114_v38 }
 0x5b2   : > { %12517 = vmatprep.mubr.f32.mxu1 %v15150_v59 }
 0x5b5   : > { %12518 = vmatmul.mubr.f32.gmra.mrb[38].mxu1 %v15159_v7 }
 0x5b6   : > { %12520 = vmatprep.mubr.f32.mxu1 %v15177_v43 }
 0x5b9   : > { %12521 = vmatmul.mubr.f32.gmra.mrb[40].mxu1 %v15185_v55 }
 0x5ba   : > { %12533 = vmatprep.mubr.f32.mxu1 %v14912_v5 }
 0x5bd   : > { %12534 = vmatmul.mubr.f32.vlgmr.msra.gmra.mrb[26].mxu1 %v14942_v15 }
 0x5be   : > { %12536 = vmatprep.mubr.f32.mxu1 %v14947_v18 }
 0x5c1   : > { %12537 = vmatmul.mubr.f32.gmra.mrb[28].mxu1 %v14949_v19 }
 0x5c2   : > { %12539 = vmatprep.mubr.f32.mxu1 %v14958_v23 }
 0x5c5   : > { %12540 = vmatmul.mubr.f32.gmra.mrb[30].mxu1 %v14967_v27 }
 0x5c6   : > { %12542 = vmatprep.mubr.f32.mxu1 %v15052_v58 }
 0x5c9   : > { %12543 = vmatmul.mubr.f32.gmra.mrb[32].mxu1 %v15056_v60 }
 0x5ca   : > { %12545 = vmatprep.mubr.f32.mxu1 %v15074_v3 }
 0x5cd   : > { %12546 = vmatmul.mubr.f32.gmra.mrb[34].mxu1 %v15081_v8 }
 0x5ce   : > { %12548 = vmatprep.mubr.f32.mxu1 %v15106_v24 }
 0x5d1   : > { %12549 = vmatmul.mubr.f32.gmra.mrb[36].mxu1 %v15114_v38 }
 0x5d2   : > { %12551 = vmatprep.mubr.f32.mxu1 %v15150_v59 }
 0x5d5   : > { %12552 = vmatmul.mubr.f32.gmra.mrb[38].mxu1 %v15159_v7 }
 0x5d6   : > { %12554 = vmatprep.mubr.f32.mxu1 %v15177_v43 }
 0x5d9   : > { %12555 = vmatmul.mubr.f32.gmra.mrb[40].mxu1 %v15185_v55 }
 0x5da   : > { %12771 = vmatprep.mubr.f32.mxu1 %v16653_v57 }
 0x690   : > { %v12535_v20 = vpop.f32.mrb[26].mxu1 }
 0x691   : > { %v5030_v61 = vpop.f32.mrb[27].mxu1  ;;  %v5125_v1 = vmul.f32 0.5, %v12535_v20 }
 0x692   : > { %v5124_v17 = vmul.f32 0.5, %v5030_v61 }
 0x693   : > { %14650 = vtanh.f32 %v5125_v1 }
 0x694   : > { %v12538_v31 = vpop.f32.mrb[28].mxu1  ;;  %14652 = vtanh.f32 %v5124_v17 }
 0x695   : > { %v5042_v54 = vpop.f32.mrb[29].mxu1  ;;  %v5127_v47 = vmul.f32 0.5, %v12538_v31 }
 0x696   : > { %v5126_v33 = vmul.f32 0.5, %v5042_v54 }
 0x698   : > { %v12541_v13 = vpop.f32.mrb[30].mxu1 }
 0x699   : > { %v5141_v14 = vmul.f32 0.5, %v12541_v13  ;;  %v5054_v6 = vpop.f32.mrb[31].mxu1 }
 0x69a   : > { %v5140_v2 = vmul.f32 0.5, %v5054_v6 }
 0x69b   : > { %14654 = vtanh.f32 %v5141_v14 }
 0x69c   : > { %14656 = vtanh.f32 %v5140_v2  ;;  %v12544_v57 = vpop.f32.mrb[32].mxu1 }
 0x69d   : > { %14658 = vtanh.f32 %v5127_v47  ;;  %v5143_v9 = vmul.f32 0.5, %v12544_v57  ;;  %v5066_v21 = vpop.f32.mrb[33].mxu1  ;;  %v14651_v31 = vpop.eup %14650 }
 0x69e   : > { %14660 = vtanh.f32 %v5126_v33  ;;  %v5142_v53 = vmul.f32 0.5, %v5066_v21  ;;  %v14653_v13 = vpop.eup %14652  ;;  %v5133_v2 = vmul.f32 0.5, %v14651_v31 }
 0x69f   : > { %14662 = vtanh.f32 %v5143_v9  ;;  %v5132_v57 = vmul.f32 0.5, %v14653_v13 }
 0x6a0   : > { %14664 = vtanh.f32 %v5142_v53  ;;  %v12547_v20 = vpop.f32.mrb[34].mxu1  ;;  %v5137_v26 = vadd.f32 0.5, %v5133_v2 }
 0x6a1   : > { %14666 = vtanh.f32 %v12547_v20  ;;  %v5078_v61 = vpop.f32.mrb[35].mxu1  ;;  %v5136_v16 = vadd.f32 0.5, %v5132_v57 }
 0x6a2   : > { %14668 = vtanh.f32 %v5078_v61 }
 0x6a4   : > { %v12550_v1 = vpop.f32.mrb[36].mxu1 }
 0x6a5   : > { %v14655_v17 = vpop.eup %14654  ;;  %14670 = vtanh.f32 %v12550_v1  ;;  %v5090_v6 = vpop.f32.mrb[37].mxu1 }
 0x6a6   : > { %v14657_v14 = vpop.eup %14656  ;;  %v5149_v54 = vmul.f32 0.5, %v14655_v17  ;;  %14672 = vtanh.f32 %v5090_v6 }
 0x6a7   : > { %v14659_v47 = vpop.eup %14658  ;;  %v5148_v33 = vmul.f32 0.5, %v14657_v14 }
 0x6a8   : > { %v14661_v21 = vpop.eup %14660  ;;  %v5153_v9 = vadd.f32 0.5, %v5149_v54  ;;  %v12553_v53 = vpop.f32.mrb[38].mxu1  ;;  %v5135_v12 = vmul.f32 0.5, %v14659_v47 }
 0x6a9   : > { %v14663_v63 = vpop.eup %14662  ;;  %v5152_v20 = vadd.f32 0.5, %v5148_v33  ;;  %v5161_v4 = vmul.f32 0.5, %v12553_v53  ;;  %v5102_v61 = vpop.f32.mrb[39].mxu1  ;;  %v5134_v31 = vmul.f32 0.5, %v14661_v21 }
 0x6aa   : > { %v14665_v28 = vpop.eup %14664  ;;  %v5151_v39 = vmul.f32 0.5, %v14663_v63  ;;  %v5160_v1 = vmul.f32 0.5, %v5102_v61  ;;  %v5177_v13 = vmul.f32 %v5153_v9, %v15626_v37  ;;  %v5139_v63 = vadd.f32 0.5, %v5135_v12 }
 0x6ab   : > { %v14667_v30 = vpop.eup %14666  ;;  %v5150_v17 = vmul.f32 0.5, %v14665_v28  ;;  %14674 = vtanh.f32 %v5161_v4  ;;  %v5176_v33 = vmul.f32 %v5152_v20, %v15628_v40  ;;  %v5138_v28 = vadd.f32 0.5, %v5134_v31 }
 0x6ac   : > { %v14669_v6 = vpop.eup %14668  ;;  %v5155_v14 = vadd.f32 0.5, %v5151_v39  ;;  %v5181_v54 = vmul.f32 %v14667_v30, %v5137_v26  ;;  %14676 = vtanh.f32 %v5160_v1  ;;  %v12556_v32 = vpop.f32.mrb[40].mxu1 }
 0x6ad   : > { %v5154_v53 = vadd.f32 0.5, %v5150_v17  ;;  %v5180_v34 = vmul.f32 %v14669_v6, %v5136_v16  ;;  %v5163_v2 = vmul.f32 0.5, %v12556_v32  ;;  %v5114_v47 = vpop.f32.mrb[41].mxu1 }
 0x6ae   : > { %v15781_v61 = vadd.f32 %v5181_v54, %v5177_v13  ;;  %v5162_v57 = vmul.f32 0.5, %v5114_v47  ;;  %v5179_v30 = vmul.f32 %v5155_v14, %v15634_v46 }
 0x6af   : > { %v14671_v21 = vpop.eup %14670  ;;  %v15783_v4 = vadd.f32 %v5180_v34, %v5176_v33  ;;  %14678 = vtanh.f32 %v5163_v2  ;;  %v5178_v40 = vmul.f32 %v5154_v53, %v15636_v52 }
 0x6b0   : > { %v14673_v37 = vpop.eup %14672  ;;  %14680 = vtanh.f32 %v15781_v61  ;;  %v5183_v39 = vmul.f32 %v14671_v21, %v5139_v63 }
 0x6b1   : > { %14682 = vtanh.f32 %v15783_v4  ;;  %v5182_v32 = vmul.f32 %v14673_v37, %v5138_v28 }
 0x6b2   : > { %v15789_v16 = vadd.f32 %v5183_v39, %v5179_v30  ;;  %14684 = vtanh.f32 %v5162_v57 }
 0x6b3   : > { %v15791_v12 = vadd.f32 %v5182_v32, %v5178_v40 }
 0x6b4   : > { %14686 = vtanh.f32 %v15789_v16 }
 0x6b5   : > { %v14675_v34 = vpop.eup %14674  ;;  %14688 = vtanh.f32 %v15791_v12 }
 0x6b6   : > { %v14677_v26 = vpop.eup %14676  ;;  %v5169_v46 = vmul.f32 0.5, %v14675_v34  ;;  %v15798_v34 = vand.u32 4294901760, %v15776_v25 }
 0x6b7   : > { %v5168_v9 = vmul.f32 0.5, %v14677_v26 }
 0x6b8   : > { %v5173_v20 = vadd.f32 0.5, %v5169_v46 }
 0x6b9   : > { %v14679_v1 = vpop.eup %14678  ;;  %v5172_v31 = vadd.f32 0.5, %v5168_v9 }
 0x6ba   : > { %v14681_v52 = vpop.eup %14680  ;;  %v5171_v17 = vmul.f32 0.5, %v14679_v1 }
 0x6bb   : > { %v14683_v6 = vpop.eup %14682  ;;  %v5193_v13 = vmul.f32 %v14681_v52, %v5173_v20  ;;  %v5475_v52 = vsub.f32 %v15776_v25, %v15798_v34 }
 0x6bc   : > { %v14685_v14 = vpop.eup %14684  ;;  %v5192_v54 = vmul.f32 %v14683_v6, %v5172_v31  ;;  %v5175_v33 = vadd.f32 0.5, %v5171_v17 }
 0x6bd   : > { %v5170_v53 = vmul.f32 0.5, %v14685_v14  ;;  %v5219_v2 = vand.u32 4294901760, %v5193_v13 }
 0x6be   : > { %v14687_v47 = vpop.eup %14686  ;;  %v5216_v63 = vand.u32 4294901760, %v5192_v54 }
 0x6bf   : > { %v14689_v57 = vpop.eup %14688  ;;  %v5195_v21 = vmul.f32 %v14687_v47, %v5175_v33  ;;  %v5174_v28 = vadd.f32 0.5, %v5170_v53  ;;  %v5454_v37 = vsub.f32 %v5193_v13, %v5219_v2 }
 0x6c0   : > { %v15795_v30 = vpack.c.bf16 %v5219_v2, %v5216_v63  ;;  %v5447_v39 = vsub.f32 %v5192_v54, %v5216_v63  ;;  %v15809_v63 = vand.u32 4294901760, %v5475_v52 }
 0x6c1   : > { %v5194_v40 = vmul.f32 %v14689_v57, %v5174_v28  ;;  %v5225_v32 = vand.u32 4294901760, %v5195_v21  ;;  %v5455_v26 = vand.u32 4294901760, %v5454_v37 }
 0x6c2   : > { %13632 = vmatprep.subr.bf16.mxu0 %v15795_v30  ;;  %v5448_v46 = vand.u32 4294901760, %v5447_v39  ;;  %v13647_v9 = vpack.c.bf16 %v5454_v37, %v5447_v39 }
 0x6c3   : > { %13634 = vmatpush3.bf16.msra.mxu0 %v15795_v30  ;;  %v5222_v20 = vand.u32 4294901760, %v5194_v40  ;;  %v5456_v1 = vsub.f32 %v5454_v37, %v5455_v26  ;;  %v5468_v31 = vsub.f32 %v5195_v21, %v5225_v32 }
 0x6c4   : > { %v5449_v17 = vsub.f32 %v5447_v39, %v5448_v46  ;;  %v15804_v6 = vpack.c.bf16 %v5455_v26, %v5448_v46  ;;  %v16654_v46 = vld [vmem:[#allocation5_spill] sm:$0xff] }
 0x6c5   : > { %v15806_v13 = vpack.c.bf16 %v5225_v32, %v5222_v20  ;;  %v5457_v14 = vand.u32 4294901760, %v5456_v1  ;;  %v5461_v54 = vsub.f32 %v5194_v40, %v5222_v20  ;;  %v5469_v33 = vand.u32 4294901760, %v5468_v31  ;;  %v16656_v20 = vld [vmem:[#allocation9_spill] sm:$0xff]  ;;  %v16657_v1 = vld [vmem:[#allocation12_spill] sm:$0xff] }
 0x6c6   : > { %v5450_v53 = vand.u32 4294901760, %v5449_v17  ;;  %v5477_v40 = vsub.f32 %v5475_v52, %v15809_v63  ;;  %v16660_v17 = vld [vmem:[#allocation19_spill] sm:$0xff] }
 0x6c7   : > { %13636 = vmatprep.subr.bf16.mxu0 %v15806_v13  ;;  %v5462_v2 = vand.u32 4294901760, %v5461_v54  ;;  %v5470_v47 = vsub.f32 %v5468_v31, %v5469_v33  ;;  %v13651_v57 = vpack.c.bf16 %v5468_v31, %v5461_v54  ;;  %v16658_v31 = vld [vmem:[#allocation15_spill] sm:$0xff] }
 0x6c8   : > { %13638 = vmatpush3.bf16.msra.mxu0 %v15806_v13  ;;  %v13639_v21 = vpack.c.bf16 %v5457_v14, %v5450_v53  ;;  %v5478_v26 = vand.u32 4294901760, %v5477_v40  ;;  %v16661_v14 = vld [vmem:[#allocation20_spill] sm:$0xff]  ;;  %v16664_v53 = vld [vmem:[#allocation30_spill] sm:$0xff]  ;;  %v16672_v40 = vld [vmem:[#allocation13_spill] sm:$0xff] }
 0x6c9   : > { %12565 = vmatprep.subr.mxu0 %v15798_v34  ;;  %v5463_v25 = vsub.f32 %v5461_v54, %v5462_v2  ;;  %v5471_v28 = vand.u32 4294901760, %v5470_v47  ;;  %v15813_v37 = vpack.c.bf16 %v5469_v33, %v5462_v2  ;;  %v16662_v54 = vld [vmem:[#allocation24_spill] sm:$0xff]  ;;  %v16663_v33 = vld [vmem:[#allocation25_spill] sm:$0xff]  ;;  %v16665_v2 = vld [vmem:[#allocation31_spill] sm:$0xff] }
 0x6ca   : > { %v16666_v47 = vld [vmem:[#allocation36_spill] sm:$0xff] }
 0x6cb   : > { %v5464_v39 = vand.u32 4294901760, %v5463_v25  ;;  %v16669_v25 = vld [vmem:[#allocation8_spill] sm:$0xff] }
 0x6cc   : > { %12566 = vmatpush3.msra.mxu0 %v15798_v34 }
 0x6cd   : > { %12568 = vmatmul.mubr.f32.vlgmr.msra.gmra.mrb[32].mxu0 %v15002_v41  ;;  %13640 = vmatprep.subr.bf16.mxu0 %v13639_v21  ;;  %v13643_v32 = vpack.c.bf16 %v5471_v28, %v5464_v39  ;;  %v16670_v28 = vld [vmem:[#allocation10_spill] sm:$0xff]  ;;  %v16671_v39 = vld [vmem:[#allocation11_spill] sm:$0xff] }
 0x6ce   : > { %13642 = vmatpush3.bf16.msra.mxu0 %v13639_v21  ;;  %12570 = vmatprep.mubr.f32.mxu0 %v15011_v44  ;;  %v16668_v21 = vld [vmem:[#allocation4_spill] sm:$0xff] }
 0x6cf   : > { %13644 = vmatprep.subr.bf16.mxu0 %v13643_v32 }
 0x6d1   : > { %12571 = vmatmul.mubr.f32.gmra.mrb[34].mxu0 %v15016_v45 }
 0x6d2   : > { %13646 = vmatpush3.bf16.msra.mxu0 %v13643_v32  ;;  %12573 = vmatprep.mubr.f32.mxu0 %v15025_v48  ;;  %v16673_v32 = vld [vmem:[#allocation14_spill] sm:$0xff] }
 0x6d3   : > { %12599 = vmatprep.subr.mxu0 %v5478_v26 }
 0x6d5   : > { %12574 = vmatmul.mubr.f32.gmra.mrb[36].mxu0 %v15031_v50 }
 0x6d6   : > { %12600 = vmatpush3.msra.mxu0 %v5478_v26  ;;  %12576 = vmatprep.mubr.f32.mxu0 %v15112_v36  ;;  %v16674_v26 = vld [vmem:[#allocation17_spill] sm:$0xff] }
 0x6d7   : > { %13648 = vmatprep.subr.bf16.mxu0 %v13647_v9 }
 0x6d9   : > { %12577 = vmatmul.mubr.f32.gmra.mrb[38].mxu0 %v16563_v29 }
 0x6da   : > { %12579 = vmatprep.mubr.f32.mxu0 %v16564_v51 }
 0x6dd   : > { %12580 = vmatmul.mubr.f32.gmra.mrb[40].mxu0 %v16565_v49 }
 0x6de   : > { %12582 = vmatprep.mubr.f32.mxu0 %v16566_v56 }
 0x6e1   : > { %12583 = vmatmul.mubr.f32.gmra.mrb[42].mxu0 %v16567_v35 }
 0x6e2   : > { %12585 = vmatprep.mubr.f32.mxu0 %v15207_v0 }
 0x6e5   : > { %12586 = vmatmul.mubr.f32.gmra.mrb[44].mxu0 %v15212_v62 }
 0x6e6   : > { %12588 = vmatprep.mubr.f32.mxu0 %v15222_v11 }
 0x6e9   : > { %12589 = vmatmul.mubr.f32.gmra.mrb[46].mxu0 %v15224_v42 }
 0x6ea   : > { %12601 = vmatprep.mubr.f32.mxu0 %v14912_v5 }
 0x6ed   : > { %12602 = vmatmul.mubr.f32.vlgmr.msra.gmra.mrb[32].mxu0 %v14942_v15 }
 0x6ee   : > { %13650 = vmatpush3.bf16.msra.mxu0 %v13647_v9  ;;  %12604 = vmatprep.mubr.f32.mxu0 %v14947_v18  ;;  %v16655_v9 = vld [vmem:[#allocation6_spill] sm:$0xff] }
 0x6ef   : > { %13652 = vmatprep.subr.bf16.mxu0 %v13651_v57 }
 0x6f1   : > { %12605 = vmatmul.mubr.f32.gmra.mrb[34].mxu0 %v14949_v19 }
 0x6f2   : > { %13654 = vmatpush3.bf16.msra.mxu0 %v13651_v57  ;;  %12607 = vmatprep.mubr.f32.mxu0 %v14958_v23  ;;  %v16667_v57 = vld [vmem:[#allocation37_spill] sm:$0xff] }
 0x6f3   : > { %12633 = vmatprep.subr.mxu0 %v5475_v52 }
 0x6f5   : > { %12608 = vmatmul.mubr.f32.gmra.mrb[36].mxu0 %v14967_v27 }
 0x6f6   : > { %12634 = vmatpush3.msra.mxu0 %v5475_v52  ;;  %12610 = vmatprep.mubr.f32.mxu0 %v15052_v58  ;;  %v16659_v52 = vld [vmem:[#allocation16_spill] sm:$0xff] }
 0x6f7   : > { %13656 = vmatprep.subr.bf16.mxu0 %v15795_v30 }
 0x6f9   : > { %12611 = vmatmul.mubr.f32.gmra.mrb[38].mxu0 %v15056_v60 }
 0x6fa   : > { %12613 = vmatprep.mubr.f32.mxu0 %v15074_v3 }
 0x6fd   : > { %12614 = vmatmul.mubr.f32.gmra.mrb[40].mxu0 %v15081_v8 }
 0x6fe   : > { %12616 = vmatprep.mubr.f32.mxu0 %v15106_v24 }
 0x701   : > { %12617 = vmatmul.mubr.f32.gmra.mrb[42].mxu0 %v15114_v38 }
 0x702   : > { %12619 = vmatprep.mubr.f32.mxu0 %v15150_v59 }
 0x705   : > { %12620 = vmatmul.mubr.f32.gmra.mrb[44].mxu0 %v15159_v7 }
 0x706   : > { %12622 = vmatprep.mubr.f32.mxu0 %v15177_v43 }
 0x709   : > { %12623 = vmatmul.mubr.f32.gmra.mrb[46].mxu0 %v15185_v55 }
 0x70a   : > { %12635 = vmatprep.mubr.f32.mxu0 %v14929_v10 }
 0x70d   : > { %12636 = vmatmul.mubr.f32.vlgmr.msra.gmra.mrb[32].mxu0 %v14956_v22 }
 0x70e   : > { %13658 = vmatpush3.bf16.msra.mxu0 %v15795_v30  ;;  %12638 = vmatprep.mubr.f32.mxu0 %v16654_v46 }
 0x70f   : > { %13660 = vmatprep.subr.bf16.mxu0 %v15806_v13 }
 0x711   : > { %12639 = vmatmul.mubr.f32.gmra.mrb[34].mxu0 %v16655_v9 }
 0x712   : > { %13662 = vmatpush3.bf16.msra.mxu0 %v15806_v13  ;;  %12641 = vmatprep.mubr.f32.mxu0 %v16656_v20 }
 0x713   : > { %12667 = vmatprep.subr.mxu0 %v15798_v34 }
 0x715   : > { %12642 = vmatmul.mubr.f32.gmra.mrb[36].mxu0 %v16657_v1 }
 0x716   : > { %12668 = vmatpush3.msra.mxu0 %v15798_v34  ;;  %12644 = vmatprep.mubr.f32.mxu0 %v16658_v31 }
 0x717   : > { %13664 = vmatprep.subr.bf16.mxu0 %v15804_v6 }
 0x719   : > { %12645 = vmatmul.mubr.f32.gmra.mrb[38].mxu0 %v16659_v52 }
 0x71a   : > { %12647 = vmatprep.mubr.f32.mxu0 %v16660_v17 }
 0x71d   : > { %12648 = vmatmul.mubr.f32.gmra.mrb[40].mxu0 %v16661_v14 }
 0x71e   : > { %12650 = vmatprep.mubr.f32.mxu0 %v16662_v54 }
 0x721   : > { %12651 = vmatmul.mubr.f32.gmra.mrb[42].mxu0 %v16663_v33 }
 0x722   : > { %12653 = vmatprep.mubr.f32.mxu0 %v16664_v53 }
 0x725   : > { %12654 = vmatmul.mubr.f32.gmra.mrb[44].mxu0 %v16665_v2 }
 0x726   : > { %12656 = vmatprep.mubr.f32.mxu0 %v16666_v47 }
 0x729   : > { %12657 = vmatmul.mubr.f32.gmra.mrb[46].mxu0 %v16667_v57 }
 0x72a   : > { %12669 = vmatprep.mubr.f32.mxu0 %v16668_v21  ;;  %v16681_v21 = vld [vmem:[#allocation35_spill] sm:$0xff] }
 0x72d   : > { %12670 = vmatmul.mubr.f32.vlgmr.msra.gmra.mrb[32].mxu0 %v16669_v25  ;;  %v16677_v25 = vld [vmem:[#allocation22_spill] sm:$0xff] }
 0x72e   : > { %13666 = vmatpush3.bf16.msra.mxu0 %v15804_v6  ;;  %12672 = vmatprep.mubr.f32.mxu0 %v16670_v28  ;;  %v16675_v6 = vld [vmem:[#allocation18_spill] sm:$0xff]  ;;  %v16676_v28 = vld [vmem:[#allocation21_spill] sm:$0xff] }
 0x72f   : > { %13668 = vmatprep.subr.bf16.mxu0 %v15813_v37 }
 0x731   : > { %12673 = vmatmul.mubr.f32.gmra.mrb[34].mxu0 %v16671_v39  ;;  %v16678_v39 = vld [vmem:[#allocation26_spill] sm:$0xff] }
 0x732   : > { %13670 = vmatpush3.bf16.msra.mxu0 %v15813_v37  ;;  %12675 = vmatprep.mubr.f32.mxu0 %v16672_v40  ;;  %v16679_v37 = vld [vmem:[#allocation28_spill] sm:$0xff]  ;;  %v16680_v40 = vld [vmem:[#allocation33_spill] sm:$0xff] }
 0x733   : > { %12701 = vmatprep.subr.mxu0 %v15809_v63 }
 0x735   : > { %12676 = vmatmul.mubr.f32.gmra.mrb[36].mxu0 %v16673_v32  ;;  %v16682_v32 = vld [vmem:[#allocation38_spill] sm:$0xff] }
 0x736   : > { %12702 = vmatpush3.msra.mxu0 %v15809_v63  ;;  %12678 = vmatprep.mubr.f32.mxu0 %v16674_v26  ;;  %v16683_v63 = vld [vmem:[#allocation39_spill] sm:$0xff] }
 0x737   : > { %13672 = vmatprep.subr.bf16.mxu0 %v15795_v30 }
 0x739   : > { %12679 = vmatmul.mubr.f32.gmra.mrb[38].mxu0 %v16675_v6 }
 0x73a   : > { %12681 = vmatprep.mubr.f32.mxu0 %v16676_v28 }
 0x73d   : > { %12682 = vmatmul.mubr.f32.gmra.mrb[40].mxu0 %v16677_v25 }
 0x73e   : > { %12684 = vmatprep.mubr.f32.mxu0 %v16678_v39 }
 0x741   : > { %12685 = vmatmul.mubr.f32.gmra.mrb[42].mxu0 %v16679_v37 }
 0x742   : > { %12687 = vmatprep.mubr.f32.mxu0 %v16680_v40 }
 0x745   : > { %12688 = vmatmul.mubr.f32.gmra.mrb[44].mxu0 %v16681_v21 }
 0x746   : > { %12690 = vmatprep.mubr.f32.mxu0 %v16682_v32 }
 0x749   : > { %12691 = vmatmul.mubr.f32.gmra.mrb[46].mxu0 %v16683_v63 }
 0x74a   : > { %12703 = vmatprep.mubr.f32.mxu0 %v14912_v5 }
 0x74d   : > { %12704 = vmatmul.mubr.f32.vlgmr.msra.gmra.mrb[32].mxu0 %v14942_v15 }
 0x74e   : > { %13674 = vmatpush3.bf16.msra.mxu0 %v15795_v30  ;;  %12706 = vmatprep.mubr.f32.mxu0 %v14947_v18  ;;  %v16684_v30 = vld [vmem:[#allocation7_spill] sm:$0xff] }
 0x74f   : > { %13676 = vmatprep.subr.bf16.mxu0 %v15806_v13 }
 0x751   : > { %12707 = vmatmul.mubr.f32.gmra.mrb[34].mxu0 %v14949_v19 }
 0x752   : > { %13678 = vmatpush3.bf16.msra.mxu0 %v15806_v13  ;;  %12709 = vmatprep.mubr.f32.mxu0 %v14958_v23  ;;  %v7672_v13 = vld [vmem:[%s14910_s22 + $0x6] sm:$0x1] }
 0x753   : > { %12735 = vmatprep.subr.mxu0 %v15798_v34 }
 0x755   : > { %12710 = vmatmul.mubr.f32.gmra.mrb[36].mxu0 %v14967_v27 }
 0x756   : > { %12712 = vmatprep.mubr.f32.mxu0 %v15052_v58  ;;  %12736 = vmatpush3.msra.mxu0 %v15798_v34  ;;  %v15931_v34 = vld [vmem:[#allocation2 + $0x20] sm:$0xff] }
 0x757   : > { %7673 = vst [vmem:[#allocation2 + $0x20] sm:$0x1] %v7672_v13 }
 0x759   : > { %12713 = vmatmul.mubr.f32.gmra.mrb[38].mxu0 %v15056_v60 }
 0x75a   : > { %12715 = vmatprep.mubr.f32.mxu0 %v15074_v3 }
 0x75d   : > { %12716 = vmatmul.mubr.f32.gmra.mrb[40].mxu0 %v15081_v8 }
 0x75e   : > { %12718 = vmatprep.mubr.f32.mxu0 %v15106_v24 }
 0x761   : > { %12719 = vmatmul.mubr.f32.gmra.mrb[42].mxu0 %v15114_v38 }
 0x762   : > { %12721 = vmatprep.mubr.f32.mxu0 %v15150_v59 }
 0x765   : > { %12722 = vmatmul.mubr.f32.gmra.mrb[44].mxu0 %v15159_v7 }
 0x766   : > { %12724 = vmatprep.mubr.f32.mxu0 %v15177_v43 }
 0x769   : > { %12725 = vmatmul.mubr.f32.gmra.mrb[46].mxu0 %v15185_v55 }
 0x76a   : > { %12737 = vmatprep.mubr.f32.mxu0 %v14912_v5 }
 0x76d   : > { %12738 = vmatmul.mubr.f32.vlgmr.msra.gmra.mrb[32].mxu0 %v14942_v15 }
 0x76e   : > { %12740 = vmatprep.mubr.f32.mxu0 %v14947_v18 }
 0x771   : > { %12741 = vmatmul.mubr.f32.gmra.mrb[34].mxu0 %v14949_v19 }
 0x772   : > { %12743 = vmatprep.mubr.f32.mxu0 %v14958_v23 }
 0x775   : > { %12744 = vmatmul.mubr.f32.gmra.mrb[36].mxu0 %v14967_v27 }
 0x776   : > { %12746 = vmatprep.mubr.f32.mxu0 %v15052_v58 }
 0x779   : > { %12747 = vmatmul.mubr.f32.gmra.mrb[38].mxu0 %v15056_v60 }
 0x77a   : > { %12749 = vmatprep.mubr.f32.mxu0 %v15074_v3 }
 0x77d   : > { %12750 = vmatmul.mubr.f32.gmra.mrb[40].mxu0 %v15081_v8 }
 0x77e   : > { %12752 = vmatprep.mubr.f32.mxu0 %v15106_v24 }
 0x781   : > { %12753 = vmatmul.mubr.f32.gmra.mrb[42].mxu0 %v15114_v38 }
 0x782   : > { %12755 = vmatprep.mubr.f32.mxu0 %v15150_v59 }
 0x785   : > { %12756 = vmatmul.mubr.f32.gmra.mrb[44].mxu0 %v15159_v7 }
 0x786   : > { %12758 = vmatprep.mubr.f32.mxu0 %v15177_v43 }
 0x789   : > { %12759 = vmatmul.mubr.f32.gmra.mrb[46].mxu0 %v15185_v55 }
 0x78a   : > { %12975 = vmatprep.mubr.f32.mxu0 %v16684_v30 }
 0x840   : > { %v12739_v63 = vpop.f32.mrb[32].mxu0 }
 0x841   : > { %v6264_v32 = vpop.f32.mrb[33].mxu0  ;;  %v6359_v40 = vmul.f32 0.5, %v12739_v63 }
 0x842   : > { %v6358_v39 = vmul.f32 0.5, %v6264_v32 }
 0x843   : > { %14690 = vtanh.f32 %v6359_v40 }
 0x844   : > { %v12742_v21 = vpop.f32.mrb[34].mxu0  ;;  %14692 = vtanh.f32 %v6358_v39 }
 0x845   : > { %v6276_v37 = vpop.f32.mrb[35].mxu0  ;;  %v6361_v28 = vmul.f32 0.5, %v12742_v21 }
 0x846   : > { %v6360_v57 = vmul.f32 0.5, %v6276_v37 }
 0x848   : > { %v12745_v25 = vpop.f32.mrb[36].mxu0 }
 0x849   : > { %v6375_v6 = vmul.f32 0.5, %v12745_v25  ;;  %v6288_v26 = vpop.f32.mrb[37].mxu0 }
 0x84a   : > { %v6374_v47 = vmul.f32 0.5, %v6288_v26 }
 0x84b   : > { %14694 = vtanh.f32 %v6375_v6 }
 0x84c   : > { %14696 = vtanh.f32 %v6374_v47  ;;  %v12748_v30 = vpop.f32.mrb[38].mxu0 }
 0x84d   : > { %14698 = vtanh.f32 %v6361_v28  ;;  %v6377_v2 = vmul.f32 0.5, %v12748_v30  ;;  %v6300_v13 = vpop.f32.mrb[39].mxu0  ;;  %v14691_v21 = vpop.eup %14690 }
 0x84e   : > { %14700 = vtanh.f32 %v6360_v57  ;;  %v6376_v53 = vmul.f32 0.5, %v6300_v13  ;;  %v14693_v25 = vpop.eup %14692  ;;  %v6367_v47 = vmul.f32 0.5, %v14691_v21 }
 0x84f   : > { %14702 = vtanh.f32 %v6377_v2  ;;  %v6366_v30 = vmul.f32 0.5, %v14693_v25 }
 0x850   : > { %14704 = vtanh.f32 %v6376_v53  ;;  %v12751_v63 = vpop.f32.mrb[40].mxu0  ;;  %v6371_v17 = vadd.f32 0.5, %v6367_v47 }
 0x851   : > { %14706 = vtanh.f32 %v12751_v63  ;;  %v6312_v32 = vpop.f32.mrb[41].mxu0  ;;  %v6370_v20 = vadd.f32 0.5, %v6366_v30 }
 0x852   : > { %14708 = vtanh.f32 %v6312_v32 }
 0x854   : > { %v12754_v40 = vpop.f32.mrb[42].mxu0 }
 0x855   : > { %v14695_v39 = vpop.eup %14694  ;;  %14710 = vtanh.f32 %v12754_v40  ;;  %v6324_v26 = vpop.f32.mrb[43].mxu0 }
 0x856   : > { %v14697_v6 = vpop.eup %14696  ;;  %v6383_v37 = vmul.f32 0.5, %v14695_v39  ;;  %14712 = vtanh.f32 %v6324_v26 }
 0x857   : > { %v14699_v28 = vpop.eup %14698  ;;  %v6382_v57 = vmul.f32 0.5, %v14697_v6 }
 0x858   : > { %v14701_v13 = vpop.eup %14700  ;;  %v6387_v2 = vadd.f32 0.5, %v6383_v37  ;;  %v12757_v53 = vpop.f32.mrb[44].mxu0  ;;  %v6369_v52 = vmul.f32 0.5, %v14699_v28 }
 0x859   : > { %v14703_v33 = vpop.eup %14702  ;;  %v6386_v63 = vadd.f32 0.5, %v6382_v57  ;;  %v6395_v54 = vmul.f32 0.5, %v12757_v53  ;;  %v6336_v32 = vpop.f32.mrb[45].mxu0  ;;  %v6368_v21 = vmul.f32 0.5, %v14701_v13 }
 0x85a   : > { %v14705_v14 = vpop.eup %14704  ;;  %v6385_v31 = vmul.f32 0.5, %v14703_v33  ;;  %v6394_v40 = vmul.f32 0.5, %v6336_v32  ;;  %v6411_v25 = vmul.f32 %v6387_v2, %v15781_v61  ;;  %v6373_v33 = vadd.f32 0.5, %v6369_v52 }
 0x85b   : > { %v14707_v1 = vpop.eup %14706  ;;  %v6384_v39 = vmul.f32 0.5, %v14705_v14  ;;  %14714 = vtanh.f32 %v6395_v54  ;;  %v6410_v57 = vmul.f32 %v6386_v63, %v15783_v4  ;;  %v6372_v14 = vadd.f32 0.5, %v6368_v21 }
 0x85c   : > { %v14709_v26 = vpop.eup %14708  ;;  %v6389_v6 = vadd.f32 0.5, %v6385_v31  ;;  %v6415_v37 = vmul.f32 %v14707_v1, %v6371_v17  ;;  %14716 = vtanh.f32 %v6394_v40  ;;  %v12760_v9 = vpop.f32.mrb[46].mxu0 }
 0x85d   : > { %v6388_v53 = vadd.f32 0.5, %v6384_v39  ;;  %v6414_v46 = vmul.f32 %v14709_v26, %v6370_v20  ;;  %v6397_v47 = vmul.f32 0.5, %v12760_v9  ;;  %v6348_v28 = vpop.f32.mrb[47].mxu0 }
 0x85e   : > { %v15936_v32 = vadd.f32 %v6415_v37, %v6411_v25  ;;  %v6396_v30 = vmul.f32 0.5, %v6348_v28  ;;  %v6413_v1 = vmul.f32 %v6389_v6, %v15789_v16 }
 0x85f   : > { %v14711_v13 = vpop.eup %14710  ;;  %v15938_v54 = vadd.f32 %v6414_v46, %v6410_v57  ;;  %14718 = vtanh.f32 %v6397_v47  ;;  %v6412_v4 = vmul.f32 %v6388_v53, %v15791_v12 }
 0x860   : > { %v14713_v61 = vpop.eup %14712  ;;  %14720 = vtanh.f32 %v15936_v32  ;;  %v6417_v31 = vmul.f32 %v14711_v13, %v6373_v33 }
 0x861   : > { %14722 = vtanh.f32 %v15938_v54  ;;  %v6416_v9 = vmul.f32 %v14713_v61, %v6372_v14 }
 0x862   : > { %v15944_v20 = vadd.f32 %v6417_v31, %v6413_v1  ;;  %14724 = vtanh.f32 %v6396_v30 }
 0x863   : > { %v15946_v52 = vadd.f32 %v6416_v9, %v6412_v4 }
 0x864   : > { %14726 = vtanh.f32 %v15944_v20 }
 0x865   : > { %v14715_v46 = vpop.eup %14714  ;;  %14728 = vtanh.f32 %v15946_v52 }
 0x866   : > { %v14717_v17 = vpop.eup %14716  ;;  %v6403_v16 = vmul.f32 0.5, %v14715_v46  ;;  %v15953_v46 = vand.u32 4294901760, %v15931_v34 }
 0x867   : > { %v6402_v2 = vmul.f32 0.5, %v14717_v17 }
 0x868   : > { %v6407_v63 = vadd.f32 0.5, %v6403_v16 }
 0x869   : > { %v14719_v40 = vpop.eup %14718  ;;  %v6406_v21 = vadd.f32 0.5, %v6402_v2 }
 0x86a   : > { %v14721_v12 = vpop.eup %14720  ;;  %v6405_v39 = vmul.f32 0.5, %v14719_v40 }
 0x86b   : > { %v14723_v26 = vpop.eup %14722  ;;  %v6427_v25 = vmul.f32 %v14721_v12, %v6407_v63  ;;  %v6709_v12 = vsub.f32 %v15931_v34, %v15953_v46 }
 0x86c   : > { %v14725_v6 = vpop.eup %14724  ;;  %v6426_v37 = vmul.f32 %v14723_v26, %v6406_v21  ;;  %v6409_v57 = vadd.f32 0.5, %v6405_v39 }
 0x86d   : > { %v6404_v53 = vmul.f32 0.5, %v14725_v6  ;;  %v6453_v47 = vand.u32 4294901760, %v6427_v25 }
 0x86e   : > { %v14727_v28 = vpop.eup %14726  ;;  %v6450_v33 = vand.u32 4294901760, %v6426_v37 }
 0x86f   : > { %v14729_v30 = vpop.eup %14728  ;;  %v6429_v13 = vmul.f32 %v14727_v28, %v6409_v57  ;;  %v6408_v14 = vadd.f32 0.5, %v6404_v53  ;;  %v6688_v61 = vsub.f32 %v6427_v25, %v6453_v47 }
 0x870   : > { %v15950_v1 = vpack.c.bf16 %v6453_v47, %v6450_v33  ;;  %v6681_v31 = vsub.f32 %v6426_v37, %v6450_v33  ;;  %v15964_v33 = vand.u32 4294901760, %v6709_v12 }
 0x871   : > { %v6428_v4 = vmul.f32 %v14729_v30, %v6408_v14  ;;  %v6459_v9 = vand.u32 4294901760, %v6429_v13  ;;  %v6689_v17 = vand.u32 4294901760, %v6688_v61 }
 0x872   : > { %13680 = vmatprep.subr.bf16.mxu1 %v15950_v1  ;;  %v6682_v16 = vand.u32 4294901760, %v6681_v31  ;;  %v13695_v2 = vpack.c.bf16 %v6688_v61, %v6681_v31 }
 0x873   : > { %13682 = vmatpush3.bf16.msra.mxu1 %v15950_v1  ;;  %v6456_v63 = vand.u32 4294901760, %v6428_v4  ;;  %v6690_v40 = vsub.f32 %v6688_v61, %v6689_v17  ;;  %v6702_v21 = vsub.f32 %v6429_v13, %v6459_v9 }
 0x874   : > { %v6683_v39 = vsub.f32 %v6681_v31, %v6682_v16  ;;  %v15959_v26 = vpack.c.bf16 %v6689_v17, %v6682_v16  ;;  %v16685_v16 = vld [vmem:[#allocation5_spill] sm:$0xff] }
 0x875   : > { %v15961_v25 = vpack.c.bf16 %v6459_v9, %v6456_v63  ;;  %v6691_v6 = vand.u32 4294901760, %v6690_v40  ;;  %v6695_v37 = vsub.f32 %v6428_v4, %v6456_v63  ;;  %v6703_v57 = vand.u32 4294901760, %v6702_v21  ;;  %v16687_v63 = vld [vmem:[#allocation9_spill] sm:$0xff]  ;;  %v16688_v40 = vld [vmem:[#allocation12_spill] sm:$0xff] }
 0x876   : > { %v6684_v53 = vand.u32 4294901760, %v6683_v39  ;;  %v6711_v4 = vsub.f32 %v6709_v12, %v15964_v33  ;;  %v16691_v39 = vld [vmem:[#allocation19_spill] sm:$0xff] }
 0x877   : > { %13684 = vmatprep.subr.bf16.mxu1 %v15961_v25  ;;  %v6696_v47 = vand.u32 4294901760, %v6695_v37  ;;  %v6704_v28 = vsub.f32 %v6702_v21, %v6703_v57  ;;  %v13699_v30 = vpack.c.bf16 %v6702_v21, %v6695_v37  ;;  %v16689_v21 = vld [vmem:[#allocation15_spill] sm:$0xff] }
 0x878   : > { %13686 = vmatpush3.bf16.msra.mxu1 %v15961_v25  ;;  %v13687_v13 = vpack.c.bf16 %v6691_v6, %v6684_v53  ;;  %v6712_v17 = vand.u32 4294901760, %v6711_v4  ;;  %v16692_v6 = vld [vmem:[#allocation20_spill] sm:$0xff]  ;;  %v16695_v53 = vld [vmem:[#allocation30_spill] sm:$0xff]  ;;  %v16703_v4 = vld [vmem:[#allocation13_spill] sm:$0xff] }
 0x879   : > { %12769 = vmatprep.subr.mxu1 %v15953_v46  ;;  %v6697_v34 = vsub.f32 %v6695_v37, %v6696_v47  ;;  %v6705_v14 = vand.u32 4294901760, %v6704_v28  ;;  %v15968_v61 = vpack.c.bf16 %v6703_v57, %v6696_v47  ;;  %v16693_v37 = vld [vmem:[#allocation24_spill] sm:$0xff]  ;;  %v16694_v57 = vld [vmem:[#allocation25_spill] sm:$0xff]  ;;  %v16696_v47 = vld [vmem:[#allocation31_spill] sm:$0xff] }
 0x87a   : > { %v16697_v28 = vld [vmem:[#allocation36_spill] sm:$0xff] }
 0x87b   : > { %v6698_v31 = vand.u32 4294901760, %v6697_v34  ;;  %v16700_v34 = vld [vmem:[#allocation8_spill] sm:$0xff] }
 0x87c   : > { %12770 = vmatpush3.msra.mxu1 %v15953_v46 }
 0x87d   : > { %12772 = vmatmul.mubr.f32.vlgmr.msra.gmra.mrb[42].mxu1 %v15002_v41  ;;  %13688 = vmatprep.subr.bf16.mxu1 %v13687_v13  ;;  %v13691_v9 = vpack.c.bf16 %v6705_v14, %v6698_v31  ;;  %v16701_v14 = vld [vmem:[#allocation10_spill] sm:$0xff]  ;;  %v16702_v31 = vld [vmem:[#allocation11_spill] sm:$0xff] }
 0x87e   : > { %13690 = vmatpush3.bf16.msra.mxu1 %v13687_v13  ;;  %12774 = vmatprep.mubr.f32.mxu1 %v15011_v44  ;;  %v16699_v13 = vld [vmem:[#allocation4_spill] sm:$0xff] }
 0x87f   : > { %13692 = vmatprep.subr.bf16.mxu1 %v13691_v9 }
 0x881   : > { %12775 = vmatmul.mubr.f32.gmra.mrb[44].mxu1 %v15016_v45 }
 0x882   : > { %13694 = vmatpush3.bf16.msra.mxu1 %v13691_v9  ;;  %12777 = vmatprep.mubr.f32.mxu1 %v15025_v48  ;;  %v16704_v9 = vld [vmem:[#allocation14_spill] sm:$0xff] }
 0x883   : > { %12803 = vmatprep.subr.mxu1 %v6712_v17 }
 0x885   : > { %12778 = vmatmul.mubr.f32.gmra.mrb[46].mxu1 %v15031_v50 }
 0x886   : > { %12804 = vmatpush3.msra.mxu1 %v6712_v17  ;;  %12780 = vmatprep.mubr.f32.mxu1 %v15112_v36  ;;  %v16705_v17 = vld [vmem:[#allocation17_spill] sm:$0xff] }
 0x887   : > { %13696 = vmatprep.subr.bf16.mxu1 %v13695_v2 }
 0x889   : > { %12781 = vmatmul.mubr.f32.gmra.mrb[48].mxu1 %v16563_v29 }
 0x88a   : > { %12783 = vmatprep.mubr.f32.mxu1 %v16564_v51 }
 0x88d   : > { %12784 = vmatmul.mubr.f32.gmra.mrb[50].mxu1 %v16565_v49 }
 0x88e   : > { %12786 = vmatprep.mubr.f32.mxu1 %v16566_v56 }
 0x891   : > { %12787 = vmatmul.mubr.f32.gmra.mrb[52].mxu1 %v16567_v35 }
 0x892   : > { %12789 = vmatprep.mubr.f32.mxu1 %v15207_v0 }
 0x895   : > { %12790 = vmatmul.mubr.f32.gmra.mrb[54].mxu1 %v15212_v62 }
 0x896   : > { %12792 = vmatprep.mubr.f32.mxu1 %v15222_v11 }
 0x899   : > { %12793 = vmatmul.mubr.f32.gmra.mrb[56].mxu1 %v15224_v42 }
 0x89a   : > { %12805 = vmatprep.mubr.f32.mxu1 %v14912_v5 }
 0x89d   : > { %12806 = vmatmul.mubr.f32.vlgmr.msra.gmra.mrb[42].mxu1 %v14942_v15 }
 0x89e   : > { %13698 = vmatpush3.bf16.msra.mxu1 %v13695_v2  ;;  %12808 = vmatprep.mubr.f32.mxu1 %v14947_v18  ;;  %v16686_v2 = vld [vmem:[#allocation6_spill] sm:$0xff] }
 0x89f   : > { %13700 = vmatprep.subr.bf16.mxu1 %v13699_v30 }
 0x8a1   : > { %12809 = vmatmul.mubr.f32.gmra.mrb[44].mxu1 %v14949_v19 }
 0x8a2   : > { %13702 = vmatpush3.bf16.msra.mxu1 %v13699_v30  ;;  %12811 = vmatprep.mubr.f32.mxu1 %v14958_v23  ;;  %v16698_v30 = vld [vmem:[#allocation37_spill] sm:$0xff] }
 0x8a3   : > { %12837 = vmatprep.subr.mxu1 %v6709_v12 }
 0x8a5   : > { %12812 = vmatmul.mubr.f32.gmra.mrb[46].mxu1 %v14967_v27 }
 0x8a6   : > { %12838 = vmatpush3.msra.mxu1 %v6709_v12  ;;  %12814 = vmatprep.mubr.f32.mxu1 %v15052_v58  ;;  %v16690_v12 = vld [vmem:[#allocation16_spill] sm:$0xff] }
 0x8a7   : > { %13704 = vmatprep.subr.bf16.mxu1 %v15950_v1 }
 0x8a9   : > { %12815 = vmatmul.mubr.f32.gmra.mrb[48].mxu1 %v15056_v60 }
 0x8aa   : > { %12817 = vmatprep.mubr.f32.mxu1 %v15074_v3 }
 0x8ad   : > { %12818 = vmatmul.mubr.f32.gmra.mrb[50].mxu1 %v15081_v8 }
 0x8ae   : > { %12820 = vmatprep.mubr.f32.mxu1 %v15106_v24 }
 0x8b1   : > { %12821 = vmatmul.mubr.f32.gmra.mrb[52].mxu1 %v15114_v38 }
 0x8b2   : > { %12823 = vmatprep.mubr.f32.mxu1 %v15150_v59 }
 0x8b5   : > { %12824 = vmatmul.mubr.f32.gmra.mrb[54].mxu1 %v15159_v7 }
 0x8b6   : > { %12826 = vmatprep.mubr.f32.mxu1 %v15177_v43 }
 0x8b9   : > { %12827 = vmatmul.mubr.f32.gmra.mrb[56].mxu1 %v15185_v55 }
 0x8ba   : > { %12839 = vmatprep.mubr.f32.mxu1 %v14929_v10 }
 0x8bd   : > { %12840 = vmatmul.mubr.f32.vlgmr.msra.gmra.mrb[42].mxu1 %v14956_v22 }
 0x8be   : > { %13706 = vmatpush3.bf16.msra.mxu1 %v15950_v1  ;;  %12842 = vmatprep.mubr.f32.mxu1 %v16685_v16 }
 0x8bf   : > { %13708 = vmatprep.subr.bf16.mxu1 %v15961_v25 }
 0x8c1   : > { %12843 = vmatmul.mubr.f32.gmra.mrb[44].mxu1 %v16686_v2 }
 0x8c2   : > { %13710 = vmatpush3.bf16.msra.mxu1 %v15961_v25  ;;  %12845 = vmatprep.mubr.f32.mxu1 %v16687_v63 }
 0x8c3   : > { %12871 = vmatprep.subr.mxu1 %v15953_v46 }
 0x8c5   : > { %12846 = vmatmul.mubr.f32.gmra.mrb[46].mxu1 %v16688_v40 }
 0x8c6   : > { %12872 = vmatpush3.msra.mxu1 %v15953_v46  ;;  %12848 = vmatprep.mubr.f32.mxu1 %v16689_v21 }
 0x8c7   : > { %13712 = vmatprep.subr.bf16.mxu1 %v15959_v26 }
 0x8c9   : > { %12849 = vmatmul.mubr.f32.gmra.mrb[48].mxu1 %v16690_v12 }
 0x8ca   : > { %12851 = vmatprep.mubr.f32.mxu1 %v16691_v39 }
 0x8cd   : > { %12852 = vmatmul.mubr.f32.gmra.mrb[50].mxu1 %v16692_v6 }
 0x8ce   : > { %12854 = vmatprep.mubr.f32.mxu1 %v16693_v37 }
 0x8d1   : > { %12855 = vmatmul.mubr.f32.gmra.mrb[52].mxu1 %v16694_v57 }
 0x8d2   : > { %12857 = vmatprep.mubr.f32.mxu1 %v16695_v53 }
 0x8d5   : > { %12858 = vmatmul.mubr.f32.gmra.mrb[54].mxu1 %v16696_v47 }
 0x8d6   : > { %12860 = vmatprep.mubr.f32.mxu1 %v16697_v28 }
 0x8d9   : > { %12861 = vmatmul.mubr.f32.gmra.mrb[56].mxu1 %v16698_v30 }
 0x8da   : > { %12873 = vmatprep.mubr.f32.mxu1 %v16699_v13  ;;  %v16712_v13 = vld [vmem:[#allocation35_spill] sm:$0xff] }
 0x8dd   : > { %12874 = vmatmul.mubr.f32.vlgmr.msra.gmra.mrb[42].mxu1 %v16700_v34  ;;  %v16708_v34 = vld [vmem:[#allocation22_spill] sm:$0xff] }
 0x8de   : > { %13714 = vmatpush3.bf16.msra.mxu1 %v15959_v26  ;;  %12876 = vmatprep.mubr.f32.mxu1 %v16701_v14  ;;  %v16706_v26 = vld [vmem:[#allocation18_spill] sm:$0xff]  ;;  %v16707_v14 = vld [vmem:[#allocation21_spill] sm:$0xff] }
 0x8df   : > { %13716 = vmatprep.subr.bf16.mxu1 %v15968_v61 }
 0x8e1   : > { %12877 = vmatmul.mubr.f32.gmra.mrb[44].mxu1 %v16702_v31  ;;  %v16709_v31 = vld [vmem:[#allocation26_spill] sm:$0xff] }
 0x8e2   : > { %13718 = vmatpush3.bf16.msra.mxu1 %v15968_v61  ;;  %12879 = vmatprep.mubr.f32.mxu1 %v16703_v4  ;;  %v16710_v61 = vld [vmem:[#allocation28_spill] sm:$0xff]  ;;  %v16711_v4 = vld [vmem:[#allocation33_spill] sm:$0xff] }
 0x8e3   : > { %12905 = vmatprep.subr.mxu1 %v15964_v33 }
 0x8e5   : > { %12880 = vmatmul.mubr.f32.gmra.mrb[46].mxu1 %v16704_v9  ;;  %v16713_v9 = vld [vmem:[#allocation38_spill] sm:$0xff] }
 0x8e6   : > { %12906 = vmatpush3.msra.mxu1 %v15964_v33  ;;  %12882 = vmatprep.mubr.f32.mxu1 %v16705_v17  ;;  %v16714_v33 = vld [vmem:[#allocation39_spill] sm:$0xff] }
 0x8e7   : > { %13720 = vmatprep.subr.bf16.mxu1 %v15950_v1 }
 0x8e9   : > { %12883 = vmatmul.mubr.f32.gmra.mrb[48].mxu1 %v16706_v26 }
 0x8ea   : > { %12885 = vmatprep.mubr.f32.mxu1 %v16707_v14 }
 0x8ed   : > { %12886 = vmatmul.mubr.f32.gmra.mrb[50].mxu1 %v16708_v34 }
 0x8ee   : > { %12888 = vmatprep.mubr.f32.mxu1 %v16709_v31 }
 0x8f1   : > { %12889 = vmatmul.mubr.f32.gmra.mrb[52].mxu1 %v16710_v61 }
 0x8f2   : > { %12891 = vmatprep.mubr.f32.mxu1 %v16711_v4 }
 0x8f5   : > { %12892 = vmatmul.mubr.f32.gmra.mrb[54].mxu1 %v16712_v13 }
 0x8f6   : > { %12894 = vmatprep.mubr.f32.mxu1 %v16713_v9 }
 0x8f9   : > { %12895 = vmatmul.mubr.f32.gmra.mrb[56].mxu1 %v16714_v33 }
 0x8fa   : > { %12907 = vmatprep.mubr.f32.mxu1 %v14912_v5 }
 0x8fd   : > { %12908 = vmatmul.mubr.f32.vlgmr.msra.gmra.mrb[42].mxu1 %v14942_v15 }
 0x8fe   : > { %13722 = vmatpush3.bf16.msra.mxu1 %v15950_v1  ;;  %12910 = vmatprep.mubr.f32.mxu1 %v14947_v18  ;;  %v16715_v1 = vld [vmem:[#allocation7_spill] sm:$0xff] }
 0x8ff   : > { %13724 = vmatprep.subr.bf16.mxu1 %v15961_v25 }
 0x901   : > { %12911 = vmatmul.mubr.f32.gmra.mrb[44].mxu1 %v14949_v19 }
 0x902   : > { %13726 = vmatpush3.bf16.msra.mxu1 %v15961_v25  ;;  %12913 = vmatprep.mubr.f32.mxu1 %v14958_v23  ;;  %v8906_v25 = vld [vmem:[%s14910_s22 + $0x7] sm:$0x1] }
 0x903   : > { %12939 = vmatprep.subr.mxu1 %v15953_v46 }
 0x905   : > { %12914 = vmatmul.mubr.f32.gmra.mrb[46].mxu1 %v14967_v27 }
 0x906   : > { %12916 = vmatprep.mubr.f32.mxu1 %v15052_v58  ;;  %12940 = vmatpush3.msra.mxu1 %v15953_v46  ;;  %v16086_v46 = vld [vmem:[#allocation2 + $0x20] sm:$0xff] }
 0x907   : > { %8907 = vst [vmem:[#allocation2 + $0x20] sm:$0x1] %v8906_v25 }
 0x909   : > { %12917 = vmatmul.mubr.f32.gmra.mrb[48].mxu1 %v15056_v60 }
 0x90a   : > { %12919 = vmatprep.mubr.f32.mxu1 %v15074_v3 }
 0x90d   : > { %12920 = vmatmul.mubr.f32.gmra.mrb[50].mxu1 %v15081_v8 }
 0x90e   : > { %12922 = vmatprep.mubr.f32.mxu1 %v15106_v24 }
 0x911   : > { %12923 = vmatmul.mubr.f32.gmra.mrb[52].mxu1 %v15114_v38 }
 0x912   : > { %12925 = vmatprep.mubr.f32.mxu1 %v15150_v59 }
 0x915   : > { %12926 = vmatmul.mubr.f32.gmra.mrb[54].mxu1 %v15159_v7 }
 0x916   : > { %12928 = vmatprep.mubr.f32.mxu1 %v15177_v43 }
 0x919   : > { %12929 = vmatmul.mubr.f32.gmra.mrb[56].mxu1 %v15185_v55 }
 0x91a   : > { %12941 = vmatprep.mubr.f32.mxu1 %v14912_v5 }
 0x91d   : > { %12942 = vmatmul.mubr.f32.vlgmr.msra.gmra.mrb[42].mxu1 %v14942_v15 }
 0x91e   : > { %12944 = vmatprep.mubr.f32.mxu1 %v14947_v18 }
 0x921   : > { %12945 = vmatmul.mubr.f32.gmra.mrb[44].mxu1 %v14949_v19 }
 0x922   : > { %12947 = vmatprep.mubr.f32.mxu1 %v14958_v23 }
 0x925   : > { %12948 = vmatmul.mubr.f32.gmra.mrb[46].mxu1 %v14967_v27 }
 0x926   : > { %12950 = vmatprep.mubr.f32.mxu1 %v15052_v58 }
 0x929   : > { %12951 = vmatmul.mubr.f32.gmra.mrb[48].mxu1 %v15056_v60 }
 0x92a   : > { %12953 = vmatprep.mubr.f32.mxu1 %v15074_v3 }
 0x92d   : > { %12954 = vmatmul.mubr.f32.gmra.mrb[50].mxu1 %v15081_v8 }
 0x92e   : > { %12956 = vmatprep.mubr.f32.mxu1 %v15106_v24 }
 0x931   : > { %12957 = vmatmul.mubr.f32.gmra.mrb[52].mxu1 %v15114_v38 }
 0x932   : > { %12959 = vmatprep.mubr.f32.mxu1 %v15150_v59 }
 0x935   : > { %12960 = vmatmul.mubr.f32.gmra.mrb[54].mxu1 %v15159_v7 }
 0x936   : > { %12962 = vmatprep.mubr.f32.mxu1 %v15177_v43 }
 0x939   : > { %12963 = vmatmul.mubr.f32.gmra.mrb[56].mxu1 %v15185_v55 }
 0x93a   : > { %13179 = vmatprep.mubr.f32.mxu1 %v16715_v1 }
 0x9f0   : > { %v12943_v33 = vpop.f32.mrb[42].mxu1 }
 0x9f1   : > { %v7498_v9 = vpop.f32.mrb[43].mxu1  ;;  %v7593_v4 = vmul.f32 0.5, %v12943_v33 }
 0x9f2   : > { %v7592_v31 = vmul.f32 0.5, %v7498_v9 }
 0x9f3   : > { %14730 = vtanh.f32 %v7593_v4 }
 0x9f4   : > { %v12946_v13 = vpop.f32.mrb[44].mxu1  ;;  %14732 = vtanh.f32 %v7592_v31 }
 0x9f5   : > { %v7510_v61 = vpop.f32.mrb[45].mxu1  ;;  %v7595_v14 = vmul.f32 0.5, %v12946_v13 }
 0x9f6   : > { %v7594_v30 = vmul.f32 0.5, %v7510_v61 }
 0x9f8   : > { %v12949_v34 = vpop.f32.mrb[46].mxu1 }
 0x9f9   : > { %v7609_v26 = vmul.f32 0.5, %v12949_v34  ;;  %v7522_v17 = vpop.f32.mrb[47].mxu1 }
 0x9fa   : > { %v7608_v28 = vmul.f32 0.5, %v7522_v17 }
 0x9fb   : > { %14734 = vtanh.f32 %v7609_v26 }
 0x9fc   : > { %14736 = vtanh.f32 %v7608_v28  ;;  %v12952_v1 = vpop.f32.mrb[48].mxu1 }
 0x9fd   : > { %14738 = vtanh.f32 %v7595_v14  ;;  %v7611_v47 = vmul.f32 0.5, %v12952_v1  ;;  %v7534_v25 = vpop.f32.mrb[49].mxu1  ;;  %v14731_v13 = vpop.eup %14730 }
 0x9fe   : > { %14740 = vtanh.f32 %v7594_v30  ;;  %v7610_v53 = vmul.f32 0.5, %v7534_v25  ;;  %v14733_v34 = vpop.eup %14732  ;;  %v7601_v28 = vmul.f32 0.5, %v14731_v13 }
 0x9ff   : > { %14742 = vtanh.f32 %v7611_v47  ;;  %v7600_v1 = vmul.f32 0.5, %v14733_v34 }
 0xa00   : > { %14744 = vtanh.f32 %v7610_v53  ;;  %v12955_v33 = vpop.f32.mrb[50].mxu1  ;;  %v7605_v39 = vadd.f32 0.5, %v7601_v28 }
 0xa01   : > { %14746 = vtanh.f32 %v12955_v33  ;;  %v7546_v9 = vpop.f32.mrb[51].mxu1  ;;  %v7604_v63 = vadd.f32 0.5, %v7600_v1 }
 0xa02   : > { %14748 = vtanh.f32 %v7546_v9 }
 0xa04   : > { %v12958_v4 = vpop.f32.mrb[52].mxu1 }
 0xa05   : > { %v14735_v31 = vpop.eup %14734  ;;  %14750 = vtanh.f32 %v12958_v4  ;;  %v7558_v17 = vpop.f32.mrb[53].mxu1 }
 0xa06   : > { %v14737_v26 = vpop.eup %14736  ;;  %v7617_v61 = vmul.f32 0.5, %v14735_v31  ;;  %14752 = vtanh.f32 %v7558_v17 }
 0xa07   : > { %v14739_v14 = vpop.eup %14738  ;;  %v7616_v30 = vmul.f32 0.5, %v14737_v26 }
 0xa08   : > { %v14741_v25 = vpop.eup %14740  ;;  %v7621_v47 = vadd.f32 0.5, %v7617_v61  ;;  %v12961_v53 = vpop.f32.mrb[54].mxu1  ;;  %v7603_v12 = vmul.f32 0.5, %v14739_v14 }
 0xa09   : > { %v14743_v57 = vpop.eup %14742  ;;  %v7620_v33 = vadd.f32 0.5, %v7616_v30  ;;  %v7629_v37 = vmul.f32 0.5, %v12961_v53  ;;  %v7570_v9 = vpop.f32.mrb[55].mxu1  ;;  %v7602_v13 = vmul.f32 0.5, %v14741_v25 }
 0xa0a   : > { %v14745_v6 = vpop.eup %14744  ;;  %v7619_v21 = vmul.f32 0.5, %v14743_v57  ;;  %v7628_v4 = vmul.f32 0.5, %v7570_v9  ;;  %v7645_v34 = vmul.f32 %v7621_v47, %v15936_v32  ;;  %v7607_v57 = vadd.f32 0.5, %v7603_v12 }
 0xa0b   : > { %v14747_v40 = vpop.eup %14746  ;;  %v7618_v31 = vmul.f32 0.5, %v14745_v6  ;;  %14754 = vtanh.f32 %v7629_v37  ;;  %v7644_v30 = vmul.f32 %v7620_v33, %v15938_v54  ;;  %v7606_v6 = vadd.f32 0.5, %v7602_v13 }
 0xa0c   : > { %v14749_v17 = vpop.eup %14748  ;;  %v7623_v26 = vadd.f32 0.5, %v7619_v21  ;;  %v7649_v61 = vmul.f32 %v14747_v40, %v7605_v39  ;;  %14756 = vtanh.f32 %v7628_v4  ;;  %v12964_v2 = vpop.f32.mrb[56].mxu1 }
 0xa0d   : > { %v7622_v53 = vadd.f32 0.5, %v7618_v31  ;;  %v7648_v16 = vmul.f32 %v14749_v17, %v7604_v63  ;;  %v7631_v28 = vmul.f32 0.5, %v12964_v2  ;;  %v7582_v14 = vpop.f32.mrb[57].mxu1 }
 0xa0e   : > { %v16091_v9 = vadd.f32 %v7649_v61, %v7645_v34  ;;  %v7630_v1 = vmul.f32 0.5, %v7582_v14  ;;  %v7647_v40 = vmul.f32 %v7623_v26, %v15944_v20 }
 0xa0f   : > { %v14751_v25 = vpop.eup %14750  ;;  %v16093_v37 = vadd.f32 %v7648_v16, %v7644_v30  ;;  %14758 = vtanh.f32 %v7631_v28  ;;  %v7646_v54 = vmul.f32 %v7622_v53, %v15946_v52 }
 0xa10   : > { %v14753_v32 = vpop.eup %14752  ;;  %14760 = vtanh.f32 %v16091_v9  ;;  %v7651_v21 = vmul.f32 %v14751_v25, %v7607_v57 }
 0xa11   : > { %14762 = vtanh.f32 %v16093_v37  ;;  %v7650_v2 = vmul.f32 %v14753_v32, %v7606_v6 }
 0xa12   : > { %v16099_v63 = vadd.f32 %v7651_v21, %v7647_v40  ;;  %14764 = vtanh.f32 %v7630_v1 }
 0xa13   : > { %v16101_v12 = vadd.f32 %v7650_v2, %v7646_v54 }
 0xa14   : > { %14766 = vtanh.f32 %v16099_v63 }
 0xa15   : > { %v14755_v16 = vpop.eup %14754  ;;  %14768 = vtanh.f32 %v16101_v12 }
 0xa16   : > { %v14757_v39 = vpop.eup %14756  ;;  %v7637_v20 = vmul.f32 0.5, %v14755_v16  ;;  %v16108_v16 = vand.u32 4294901760, %v16086_v46 }
 0xa17   : > { %v7636_v47 = vmul.f32 0.5, %v14757_v39 }
 0xa18   : > { %v7641_v33 = vadd.f32 0.5, %v7637_v20 }
 0xa19   : > { %v14759_v4 = vpop.eup %14758  ;;  %v7640_v13 = vadd.f32 0.5, %v7636_v47 }
 0xa1a   : > { %v14761_v52 = vpop.eup %14760  ;;  %v7639_v31 = vmul.f32 0.5, %v14759_v4 }
 0xa1b   : > { %v14763_v17 = vpop.eup %14762  ;;  %v7661_v34 = vmul.f32 %v14761_v52, %v7641_v33  ;;  %v7943_v52 = vsub.f32 %v16086_v46, %v16108_v16 }
 0xa1c   : > { %v14765_v26 = vpop.eup %14764  ;;  %v7660_v61 = vmul.f32 %v14763_v17, %v7640_v13  ;;  %v7643_v30 = vadd.f32 0.5, %v7639_v31 }
 0xa1d   : > { %v7638_v53 = vmul.f32 0.5, %v14765_v26  ;;  %v7687_v28 = vand.u32 4294901760, %v7661_v34 }
 0xa1e   : > { %v14767_v14 = vpop.eup %14766  ;;  %v7684_v57 = vand.u32 4294901760, %v7660_v61 }
 0xa1f   : > { %v14769_v1 = vpop.eup %14768  ;;  %v7663_v25 = vmul.f32 %v14767_v14, %v7643_v30  ;;  %v7642_v6 = vadd.f32 0.5, %v7638_v53  ;;  %v7922_v32 = vsub.f32 %v7661_v34, %v7687_v28 }
 0xa20   : > { %v16105_v40 = vpack.c.bf16 %v7687_v28, %v7684_v57  ;;  %v7915_v21 = vsub.f32 %v7660_v61, %v7684_v57  ;;  %v16119_v57 = vand.u32 4294901760, %v7943_v52 }
 0xa21   : > { %v7662_v54 = vmul.f32 %v14769_v1, %v7642_v6  ;;  %v7693_v2 = vand.u32 4294901760, %v7663_v25  ;;  %v7923_v39 = vand.u32 4294901760, %v7922_v32 }
 0xa22   : > { %13728 = vmatprep.subr.bf16.mxu0 %v16105_v40  ;;  %v7916_v20 = vand.u32 4294901760, %v7915_v21  ;;  %v13743_v47 = vpack.c.bf16 %v7922_v32, %v7915_v21 }
 0xa23   : > { %13730 = vmatpush3.bf16.msra.mxu0 %v16105_v40  ;;  %v7690_v33 = vand.u32 4294901760, %v7662_v54  ;;  %v7924_v4 = vsub.f32 %v7922_v32, %v7923_v39  ;;  %v7936_v13 = vsub.f32 %v7663_v25, %v7693_v2 }
 0xa24   : > { %v7917_v31 = vsub.f32 %v7915_v21, %v7916_v20  ;;  %v16114_v17 = vpack.c.bf16 %v7923_v39, %v7916_v20  ;;  %v16716_v20 = vld [vmem:[#allocation5_spill] sm:$0xff] }
 0xa25   : > { %v16116_v34 = vpack.c.bf16 %v7693_v2, %v7690_v33  ;;  %v7925_v26 = vand.u32 4294901760, %v7924_v4  ;;  %v7929_v61 = vsub.f32 %v7662_v54, %v7690_v33  ;;  %v7937_v30 = vand.u32 4294901760, %v7936_v13  ;;  %v16718_v33 = vld [vmem:[#allocation9_spill] sm:$0xff]  ;;  %v16719_v4 = vld [vmem:[#allocation12_spill] sm:$0xff] }
 0xa26   : > { %v7918_v53 = vand.u32 4294901760, %v7917_v31  ;;  %v7945_v54 = vsub.f32 %v7943_v52, %v16119_v57  ;;  %v16722_v31 = vld [vmem:[#allocation19_spill] sm:$0xff] }
 0xa27   : > { %13732 = vmatprep.subr.bf16.mxu0 %v16116_v34  ;;  %v7930_v28 = vand.u32 4294901760, %v7929_v61  ;;  %v7938_v14 = vsub.f32 %v7936_v13, %v7937_v30  ;;  %v13747_v1 = vpack.c.bf16 %v7936_v13, %v7929_v61  ;;  %v16720_v13 = vld [vmem:[#allocation15_spill] sm:$0xff] }
 0xa28   : > { %13734 = vmatpush3.bf16.msra.mxu0 %v16116_v34  ;;  %v13735_v25 = vpack.c.bf16 %v7925_v26, %v7918_v53  ;;  %v7946_v39 = vand.u32 4294901760, %v7945_v54  ;;  %v16723_v26 = vld [vmem:[#allocation20_spill] sm:$0xff]  ;;  %v16726_v53 = vld [vmem:[#allocation30_spill] sm:$0xff]  ;;  %v16734_v54 = vld [vmem:[#allocation13_spill] sm:$0xff] }
 0xa29   : > { %12973 = vmatprep.subr.mxu0 %v16108_v16  ;;  %v7931_v46 = vsub.f32 %v7929_v61, %v7930_v28  ;;  %v7939_v6 = vand.u32 4294901760, %v7938_v14  ;;  %v16123_v32 = vpack.c.bf16 %v7937_v30, %v7930_v28  ;;  %v16724_v61 = vld [vmem:[#allocation24_spill] sm:$0xff]  ;;  %v16725_v30 = vld [vmem:[#allocation25_spill] sm:$0xff]  ;;  %v16727_v28 = vld [vmem:[#allocation31_spill] sm:$0xff] }
 0xa2a   : > { %v16728_v14 = vld [vmem:[#allocation36_spill] sm:$0xff] }
 0xa2b   : > { %v7932_v21 = vand.u32 4294901760, %v7931_v46  ;;  %v16731_v46 = vld [vmem:[#allocation8_spill] sm:$0xff] }
 0xa2c   : > { %12974 = vmatpush3.msra.mxu0 %v16108_v16 }
 0xa2d   : > { %12976 = vmatmul.mubr.f32.vlgmr.msra.gmra.mrb[48].mxu0 %v15002_v41  ;;  %13736 = vmatprep.subr.bf16.mxu0 %v13735_v25  ;;  %v13739_v2 = vpack.c.bf16 %v7939_v6, %v7932_v21  ;;  %v16732_v6 = vld [vmem:[#allocation10_spill] sm:$0xff]  ;;  %v16733_v21 = vld [vmem:[#allocation11_spill] sm:$0xff] }
 0xa2e   : > { %13738 = vmatpush3.bf16.msra.mxu0 %v13735_v25  ;;  %12978 = vmatprep.mubr.f32.mxu0 %v15011_v44  ;;  %v16730_v25 = vld [vmem:[#allocation4_spill] sm:$0xff] }
 0xa2f   : > { %13740 = vmatprep.subr.bf16.mxu0 %v13739_v2 }
 0xa31   : > { %12979 = vmatmul.mubr.f32.gmra.mrb[50].mxu0 %v15016_v45 }
 0xa32   : > { %13742 = vmatpush3.bf16.msra.mxu0 %v13739_v2  ;;  %12981 = vmatprep.mubr.f32.mxu0 %v15025_v48  ;;  %v16735_v2 = vld [vmem:[#allocation14_spill] sm:$0xff] }
 0xa33   : > { %13007 = vmatprep.subr.mxu0 %v7946_v39 }
 0xa35   : > { %12982 = vmatmul.mubr.f32.gmra.mrb[52].mxu0 %v15031_v50 }
 0xa36   : > { %13008 = vmatpush3.msra.mxu0 %v7946_v39  ;;  %12984 = vmatprep.mubr.f32.mxu0 %v15112_v36  ;;  %v16736_v39 = vld [vmem:[#allocation17_spill] sm:$0xff] }
 0xa37   : > { %13744 = vmatprep.subr.bf16.mxu0 %v13743_v47 }
 0xa39   : > { %12985 = vmatmul.mubr.f32.gmra.mrb[54].mxu0 %v16563_v29 }
 0xa3a   : > { %12987 = vmatprep.mubr.f32.mxu0 %v16564_v51 }
 0xa3d   : > { %12988 = vmatmul.mubr.f32.gmra.mrb[56].mxu0 %v16565_v49 }
 0xa3e   : > { %12990 = vmatprep.mubr.f32.mxu0 %v16566_v56 }
 0xa41   : > { %12991 = vmatmul.mubr.f32.gmra.mrb[58].mxu0 %v16567_v35 }
 0xa42   : > { %12993 = vmatprep.mubr.f32.mxu0 %v15207_v0 }
 0xa45   : > { %12994 = vmatmul.mubr.f32.gmra.mrb[60].mxu0 %v15212_v62 }
 0xa46   : > { %12996 = vmatprep.mubr.f32.mxu0 %v15222_v11 }
 0xa49   : > { %12997 = vmatmul.mubr.f32.gmra.mrb[62].mxu0 %v15224_v42 }
 0xa4a   : > { %13009 = vmatprep.mubr.f32.mxu0 %v14912_v5 }
 0xa4d   : > { %13010 = vmatmul.mubr.f32.vlgmr.msra.gmra.mrb[48].mxu0 %v14942_v15 }
 0xa4e   : > { %13746 = vmatpush3.bf16.msra.mxu0 %v13743_v47  ;;  %13012 = vmatprep.mubr.f32.mxu0 %v14947_v18  ;;  %v16717_v47 = vld [vmem:[#allocation6_spill] sm:$0xff] }
 0xa4f   : > { %13748 = vmatprep.subr.bf16.mxu0 %v13747_v1 }
 0xa51   : > { %13013 = vmatmul.mubr.f32.gmra.mrb[50].mxu0 %v14949_v19 }
 0xa52   : > { %13750 = vmatpush3.bf16.msra.mxu0 %v13747_v1  ;;  %13015 = vmatprep.mubr.f32.mxu0 %v14958_v23  ;;  %v16729_v1 = vld [vmem:[#allocation37_spill] sm:$0xff] }
 0xa53   : > { %13041 = vmatprep.subr.mxu0 %v7943_v52 }
 0xa55   : > { %13016 = vmatmul.mubr.f32.gmra.mrb[52].mxu0 %v14967_v27 }
 0xa56   : > { %13042 = vmatpush3.msra.mxu0 %v7943_v52  ;;  %13018 = vmatprep.mubr.f32.mxu0 %v15052_v58  ;;  %v16721_v52 = vld [vmem:[#allocation16_spill] sm:$0xff] }
 0xa57   : > { %13752 = vmatprep.subr.bf16.mxu0 %v16105_v40 }
 0xa59   : > { %13019 = vmatmul.mubr.f32.gmra.mrb[54].mxu0 %v15056_v60 }
 0xa5a   : > { %13021 = vmatprep.mubr.f32.mxu0 %v15074_v3 }
 0xa5d   : > { %13022 = vmatmul.mubr.f32.gmra.mrb[56].mxu0 %v15081_v8 }
 0xa5e   : > { %13024 = vmatprep.mubr.f32.mxu0 %v15106_v24 }
 0xa61   : > { %13025 = vmatmul.mubr.f32.gmra.mrb[58].mxu0 %v15114_v38 }
 0xa62   : > { %13027 = vmatprep.mubr.f32.mxu0 %v15150_v59 }
 0xa65   : > { %13028 = vmatmul.mubr.f32.gmra.mrb[60].mxu0 %v15159_v7 }
 0xa66   : > { %13030 = vmatprep.mubr.f32.mxu0 %v15177_v43 }
 0xa69   : > { %13031 = vmatmul.mubr.f32.gmra.mrb[62].mxu0 %v15185_v55 }
 0xa6a   : > { %13043 = vmatprep.mubr.f32.mxu0 %v14929_v10 }
 0xa6d   : > { %13044 = vmatmul.mubr.f32.vlgmr.msra.gmra.mrb[48].mxu0 %v14956_v22 }
 0xa6e   : > { %13754 = vmatpush3.bf16.msra.mxu0 %v16105_v40  ;;  %13046 = vmatprep.mubr.f32.mxu0 %v16716_v20 }
 0xa6f   : > { %13756 = vmatprep.subr.bf16.mxu0 %v16116_v34 }
 0xa71   : > { %13047 = vmatmul.mubr.f32.gmra.mrb[50].mxu0 %v16717_v47 }
 0xa72   : > { %13758 = vmatpush3.bf16.msra.mxu0 %v16116_v34  ;;  %13049 = vmatprep.mubr.f32.mxu0 %v16718_v33 }
 0xa73   : > { %13075 = vmatprep.subr.mxu0 %v16108_v16 }
 0xa75   : > { %13050 = vmatmul.mubr.f32.gmra.mrb[52].mxu0 %v16719_v4 }
 0xa76   : > { %13076 = vmatpush3.msra.mxu0 %v16108_v16  ;;  %13052 = vmatprep.mubr.f32.mxu0 %v16720_v13 }
 0xa77   : > { %13760 = vmatprep.subr.bf16.mxu0 %v16114_v17 }
 0xa79   : > { %13053 = vmatmul.mubr.f32.gmra.mrb[54].mxu0 %v16721_v52 }
 0xa7a   : > { %13055 = vmatprep.mubr.f32.mxu0 %v16722_v31 }
 0xa7d   : > { %13056 = vmatmul.mubr.f32.gmra.mrb[56].mxu0 %v16723_v26 }
 0xa7e   : > { %13058 = vmatprep.mubr.f32.mxu0 %v16724_v61 }
 0xa81   : > { %13059 = vmatmul.mubr.f32.gmra.mrb[58].mxu0 %v16725_v30 }
 0xa82   : > { %13061 = vmatprep.mubr.f32.mxu0 %v16726_v53 }
 0xa85   : > { %13062 = vmatmul.mubr.f32.gmra.mrb[60].mxu0 %v16727_v28 }
 0xa86   : > { %13064 = vmatprep.mubr.f32.mxu0 %v16728_v14 }
 0xa89   : > { %13065 = vmatmul.mubr.f32.gmra.mrb[62].mxu0 %v16729_v1 }
 0xa8a   : > { %13077 = vmatprep.mubr.f32.mxu0 %v16730_v25  ;;  %v16743_v25 = vld [vmem:[#allocation35_spill] sm:$0xff] }
 0xa8d   : > { %13078 = vmatmul.mubr.f32.vlgmr.msra.gmra.mrb[48].mxu0 %v16731_v46  ;;  %v16739_v46 = vld [vmem:[#allocation22_spill] sm:$0xff] }
 0xa8e   : > { %13762 = vmatpush3.bf16.msra.mxu0 %v16114_v17  ;;  %13080 = vmatprep.mubr.f32.mxu0 %v16732_v6  ;;  %v16737_v17 = vld [vmem:[#allocation18_spill] sm:$0xff]  ;;  %v16738_v6 = vld [vmem:[#allocation21_spill] sm:$0xff] }
 0xa8f   : > { %13764 = vmatprep.subr.bf16.mxu0 %v16123_v32 }
 0xa91   : > { %13081 = vmatmul.mubr.f32.gmra.mrb[50].mxu0 %v16733_v21  ;;  %v16740_v21 = vld [vmem:[#allocation26_spill] sm:$0xff] }
 0xa92   : > { %13766 = vmatpush3.bf16.msra.mxu0 %v16123_v32  ;;  %13083 = vmatprep.mubr.f32.mxu0 %v16734_v54  ;;  %v16741_v32 = vld [vmem:[#allocation28_spill] sm:$0xff]  ;;  %v16742_v54 = vld [vmem:[#allocation33_spill] sm:$0xff] }
 0xa93   : > { %13109 = vmatprep.subr.mxu0 %v16119_v57 }
 0xa95   : > { %13084 = vmatmul.mubr.f32.gmra.mrb[52].mxu0 %v16735_v2  ;;  %v16744_v2 = vld [vmem:[#allocation38_spill] sm:$0xff] }
 0xa96   : > { %13110 = vmatpush3.msra.mxu0 %v16119_v57  ;;  %13086 = vmatprep.mubr.f32.mxu0 %v16736_v39  ;;  %v16745_v57 = vld [vmem:[#allocation39_spill] sm:$0xff] }
 0xa97   : > { %13768 = vmatprep.subr.bf16.mxu0 %v16105_v40 }
 0xa99   : > { %13087 = vmatmul.mubr.f32.gmra.mrb[54].mxu0 %v16737_v17 }
 0xa9a   : > { %13089 = vmatprep.mubr.f32.mxu0 %v16738_v6 }
 0xa9d   : > { %13090 = vmatmul.mubr.f32.gmra.mrb[56].mxu0 %v16739_v46 }
 0xa9e   : > { %13092 = vmatprep.mubr.f32.mxu0 %v16740_v21 }
 0xaa1   : > { %13093 = vmatmul.mubr.f32.gmra.mrb[58].mxu0 %v16741_v32 }
 0xaa2   : > { %13095 = vmatprep.mubr.f32.mxu0 %v16742_v54 }
 0xaa5   : > { %13096 = vmatmul.mubr.f32.gmra.mrb[60].mxu0 %v16743_v25 }
 0xaa6   : > { %13098 = vmatprep.mubr.f32.mxu0 %v16744_v2 }
 0xaa9   : > { %13099 = vmatmul.mubr.f32.gmra.mrb[62].mxu0 %v16745_v57 }
 0xaaa   : > { %13111 = vmatprep.mubr.f32.mxu0 %v14912_v5 }
 0xaad   : > { %13112 = vmatmul.mubr.f32.vlgmr.msra.gmra.mrb[48].mxu0 %v14942_v15 }
 0xaae   : > { %13770 = vmatpush3.bf16.msra.mxu0 %v16105_v40  ;;  %13114 = vmatprep.mubr.f32.mxu0 %v14947_v18 }
 0xaaf   : > { %13772 = vmatprep.subr.bf16.mxu0 %v16116_v34 }
 0xab1   : > { %13115 = vmatmul.mubr.f32.gmra.mrb[50].mxu0 %v14949_v19 }
 0xab2   : > { %13774 = vmatpush3.bf16.msra.mxu0 %v16116_v34  ;;  %13117 = vmatprep.mubr.f32.mxu0 %v14958_v23 }
 0xab3   : > { %13143 = vmatprep.subr.mxu0 %v16108_v16 }
 0xab5   : > { %13118 = vmatmul.mubr.f32.gmra.mrb[52].mxu0 %v14967_v27 }
 0xab6   : > { %13120 = vmatprep.mubr.f32.mxu0 %v15052_v58  ;;  %13144 = vmatpush3.msra.mxu0 %v16108_v16 }
 0xab9   : > { %13121 = vmatmul.mubr.f32.gmra.mrb[54].mxu0 %v15056_v60 }
 0xaba   : > { %13123 = vmatprep.mubr.f32.mxu0 %v15074_v3 }
 0xabd   : > { %13124 = vmatmul.mubr.f32.gmra.mrb[56].mxu0 %v15081_v8 }
 0xabe   : > { %13126 = vmatprep.mubr.f32.mxu0 %v15106_v24 }
 0xac1   : > { %13127 = vmatmul.mubr.f32.gmra.mrb[58].mxu0 %v15114_v38 }
 0xac2   : > { %13129 = vmatprep.mubr.f32.mxu0 %v15150_v59 }
 0xac5   : > { %13130 = vmatmul.mubr.f32.gmra.mrb[60].mxu0 %v15159_v7 }
 0xac6   : > { %13132 = vmatprep.mubr.f32.mxu0 %v15177_v43 }
 0xac9   : > { %13133 = vmatmul.mubr.f32.gmra.mrb[62].mxu0 %v15185_v55 }
 0xaca   : > { %13145 = vmatprep.mubr.f32.mxu0 %v14912_v5 }
 0xacd   : > { %13146 = vmatmul.mubr.f32.vlgmr.msra.gmra.mrb[48].mxu0 %v14942_v15 }
 0xace   : > { %13148 = vmatprep.mubr.f32.mxu0 %v14947_v18 }
 0xad1   : > { %13149 = vmatmul.mubr.f32.gmra.mrb[50].mxu0 %v14949_v19 }
 0xad2   : > { %13151 = vmatprep.mubr.f32.mxu0 %v14958_v23 }
 0xad5   : > { %13152 = vmatmul.mubr.f32.gmra.mrb[52].mxu0 %v14967_v27 }
 0xad6   : > { %13154 = vmatprep.mubr.f32.mxu0 %v15052_v58 }
 0xad9   : > { %13155 = vmatmul.mubr.f32.gmra.mrb[54].mxu0 %v15056_v60 }
 0xada   : > { %13157 = vmatprep.mubr.f32.mxu0 %v15074_v3 }
 0xadd   : > { %13158 = vmatmul.mubr.f32.gmra.mrb[56].mxu0 %v15081_v8 }
 0xade   : > { %13160 = vmatprep.mubr.f32.mxu0 %v15106_v24 }
 0xae1   : > { %13161 = vmatmul.mubr.f32.gmra.mrb[58].mxu0 %v15114_v38 }
 0xae2   : > { %13163 = vmatprep.mubr.f32.mxu0 %v15150_v59 }
 0xae5   : > { %13164 = vmatmul.mubr.f32.gmra.mrb[60].mxu0 %v15159_v7 }
 0xae6   : > { %13166 = vmatprep.mubr.f32.mxu0 %v15177_v43 }
 0xae9   : > { %13167 = vmatmul.mubr.f32.gmra.mrb[62].mxu0 %v15185_v55 }
 0xba0   : > { %v13147_v40 = vpop.f32.mrb[48].mxu0 }
 0xba1   : > { %v8732_v16 = vpop.f32.mrb[49].mxu0  ;;  %v8827_v57 = vmul.f32 0.5, %v13147_v40 }
 0xba2   : > { %v8826_v25 = vmul.f32 0.5, %v8732_v16 }
 0xba3   : > { %14770 = vtanh.f32 %v8827_v57 }
 0xba4   : > { %v13150_v34 = vpop.f32.mrb[50].mxu0  ;;  %14772 = vtanh.f32 %v8826_v25 }
 0xba5   : > { %v8744_v2 = vpop.f32.mrb[51].mxu0  ;;  %v8829_v32 = vmul.f32 0.5, %v13150_v34 }
 0xba6   : > { %v8828_v6 = vmul.f32 0.5, %v8744_v2 }
 0xba8   : > { %v13153_v54 = vpop.f32.mrb[52].mxu0 }
 0xba9   : > { %v8843_v21 = vmul.f32 0.5, %v13153_v54  ;;  %v8756_v46 = vpop.f32.mrb[53].mxu0 }
 0xbaa   : > { %v8842_v17 = vmul.f32 0.5, %v8756_v46 }
 0xbab   : > { %14774 = vtanh.f32 %v8843_v21 }
 0xbac   : > { %14776 = vtanh.f32 %v8842_v17  ;;  %v13156_v39 = vpop.f32.mrb[54].mxu0 }
 0xbad   : > { %14778 = vtanh.f32 %v8829_v32  ;;  %v8845_v1 = vmul.f32 0.5, %v13156_v39  ;;  %v8768_v14 = vpop.f32.mrb[55].mxu0  ;;  %v14771_v57 = vpop.eup %14770 }
 0xbae   : > { %14780 = vtanh.f32 %v8828_v6  ;;  %v8844_v28 = vmul.f32 0.5, %v8768_v14  ;;  %v14773_v54 = vpop.eup %14772  ;;  %v8835_v2 = vmul.f32 0.5, %v14771_v57 }
 0xbaf   : > { %14782 = vtanh.f32 %v8845_v1  ;;  %v8834_v32 = vmul.f32 0.5, %v14773_v54 }
 0xbb0   : > { %14784 = vtanh.f32 %v8844_v28  ;;  %v13159_v40 = vpop.f32.mrb[56].mxu0  ;;  %v8839_v26 = vadd.f32 0.5, %v8835_v2 }
 0xbb1   : > { %14786 = vtanh.f32 %v13159_v40  ;;  %v8780_v16 = vpop.f32.mrb[57].mxu0  ;;  %v8838_v4 = vadd.f32 0.5, %v8834_v32 }
 0xbb2   : > { %14788 = vtanh.f32 %v8780_v16 }
 0xbb4   : > { %v13162_v34 = vpop.f32.mrb[58].mxu0 }
 0xbb5   : > { %v14775_v25 = vpop.eup %14774  ;;  %14790 = vtanh.f32 %v13162_v34  ;;  %v8792_v46 = vpop.f32.mrb[59].mxu0 }
 0xbb6   : > { %v14777_v21 = vpop.eup %14776  ;;  %v8851_v17 = vmul.f32 0.5, %v14775_v25  ;;  %14792 = vtanh.f32 %v8792_v46 }
 0xbb7   : > { %v14779_v39 = vpop.eup %14778  ;;  %v8850_v6 = vmul.f32 0.5, %v14777_v21 }
 0xbb8   : > { %v14781_v14 = vpop.eup %14780  ;;  %v8855_v1 = vadd.f32 0.5, %v8851_v17  ;;  %v13165_v28 = vpop.f32.mrb[60].mxu0  ;;  %v8837_v31 = vmul.f32 0.5, %v14779_v39 }
 0xbb9   : > { %v14783_v53 = vpop.eup %14782  ;;  %v8854_v40 = vadd.f32 0.5, %v8850_v6  ;;  %v8863_v30 = vmul.f32 0.5, %v13165_v28  ;;  %v8804_v16 = vpop.f32.mrb[61].mxu0  ;;  %v8836_v57 = vmul.f32 0.5, %v14781_v14 }
 0xbba   : > { %v14785_v61 = vpop.eup %14784  ;;  %v8853_v52 = vmul.f32 0.5, %v14783_v53  ;;  %v8862_v34 = vmul.f32 0.5, %v8804_v16  ;;  %v8879_v54 = vmul.f32 %v8855_v1, %v16091_v9  ;;  %v8841_v53 = vadd.f32 0.5, %v8837_v31 }
 0xbbb   : > { %v14787_v13 = vpop.eup %14786  ;;  %v8852_v25 = vmul.f32 0.5, %v14785_v61  ;;  %14794 = vtanh.f32 %v8863_v30  ;;  %v8878_v6 = vmul.f32 %v8854_v40, %v16093_v37  ;;  %v8840_v61 = vadd.f32 0.5, %v8836_v57 }
 0xbbc   : > { %v14789_v46 = vpop.eup %14788  ;;  %v8857_v21 = vadd.f32 0.5, %v8853_v52  ;;  %v8883_v17 = vmul.f32 %v14787_v13, %v8839_v26  ;;  %14796 = vtanh.f32 %v8862_v34  ;;  %v13168_v33 = vpop.f32.mrb[62].mxu0 }
 0xbbd   : > { %v8856_v28 = vadd.f32 0.5, %v8852_v25  ;;  %v8882_v47 = vmul.f32 %v14789_v46, %v8838_v4  ;;  %v8865_v2 = vmul.f32 0.5, %v13168_v33  ;;  %v8816_v39 = vpop.f32.mrb[63].mxu0 }
 0xbbe   : > { %v16242_v16 = vadd.f32 %v8883_v17, %v8879_v54  ;;  %v8864_v32 = vmul.f32 0.5, %v8816_v39  ;;  %v8881_v13 = vmul.f32 %v8857_v21, %v16099_v63 }
 0xbbf   : > { %v14791_v14 = vpop.eup %14790  ;;  %v16244_v30 = vadd.f32 %v8882_v47, %v8878_v6  ;;  %14798 = vtanh.f32 %v8865_v2  ;;  %v8880_v37 = vmul.f32 %v8856_v28, %v16101_v12 }
 0xbc0   : > { %v14793_v9 = vpop.eup %14792  ;;  %14800 = vtanh.f32 %v16242_v16  ;;  %v8885_v52 = vmul.f32 %v14791_v14, %v8841_v53 }
 0xbc1   : > { %14802 = vtanh.f32 %v16244_v30  ;;  %v8884_v33 = vmul.f32 %v14793_v9, %v8840_v61 }
 0xbc2   : > { %v16250_v4 = vadd.f32 %v8885_v52, %v8881_v13  ;;  %14804 = vtanh.f32 %v8864_v32  ;;  %v8912_v32 = vld [vmem:[#allocation2 + $0x20] sm:$0xff] }
 0xbc3   : > { %v16252_v31 = vadd.f32 %v8884_v33, %v8880_v37 }
 0xbc4   : > { %14806 = vtanh.f32 %v16250_v4 }
 0xbc5   : > { %v14795_v47 = vpop.eup %14794  ;;  %14808 = vtanh.f32 %v16252_v31 }
 0xbc6   : > { %v14797_v26 = vpop.eup %14796  ;;  %v8871_v63 = vmul.f32 0.5, %v14795_v47 }
 0xbc7   : > { %v8870_v1 = vmul.f32 0.5, %v14797_v26  ;;  %v16258_v26 = vand.u32 4294901760, %v8912_v32 }
 0xbc8   : > { %v8875_v40 = vadd.f32 0.5, %v8871_v63 }
 0xbc9   : > { %v14799_v34 = vpop.eup %14798  ;;  %v8874_v57 = vadd.f32 0.5, %v8870_v1 }
 0xbca   : > { %v14801_v12 = vpop.eup %14800  ;;  %v8873_v25 = vmul.f32 0.5, %v14799_v34 }
 0xbcb   : > { %v14803_v46 = vpop.eup %14802  ;;  %v8895_v54 = vmul.f32 %v14801_v12, %v8875_v40 }
 0xbcc   : > { %v14805_v21 = vpop.eup %14804  ;;  %v8894_v17 = vmul.f32 %v14803_v46, %v8874_v57  ;;  %v8877_v6 = vadd.f32 0.5, %v8873_v25  ;;  %v9177_v25 = vsub.f32 %v8912_v32, %v16258_v26 }
 0xbcd   : > { %v8872_v28 = vmul.f32 0.5, %v14805_v21  ;;  %v8921_v2 = vand.u32 4294901760, %v8895_v54 }
 0xbce   : > { %v14807_v39 = vpop.eup %14806  ;;  %v8918_v53 = vand.u32 4294901760, %v8894_v17 }
 0xbcf   : > { %v14809_v14 = vpop.eup %14808  ;;  %v8897_v61 = vmul.f32 %v14807_v39, %v8877_v6  ;;  %v8876_v9 = vadd.f32 0.5, %v8872_v28  ;;  %v9156_v13 = vsub.f32 %v8895_v54, %v8921_v2 }
 0xbd0   : > { %v16256_v52 = vpack.c.bf16 %v8921_v2, %v8918_v53  ;;  %v9149_v37 = vsub.f32 %v8894_v17, %v8918_v53 }
 0xbd1   : > { %v8896_v33 = vmul.f32 %v14809_v14, %v8876_v9  ;;  %v8927_v47 = vand.u32 4294901760, %v8897_v61  ;;  %v9157_v63 = vand.u32 4294901760, %v9156_v13  ;;  %v16268_v14 = vand.u32 4294901760, %v9177_v25 }
 0xbd2   : > { %13776 = vmatprep.subr.bf16.mxu1 %v16256_v52  ;;  %v9150_v1 = vand.u32 4294901760, %v9149_v37  ;;  %v13791_v40 = vpack.c.bf16 %v9156_v13, %v9149_v37 }
 0xbd3   : > { %13778 = vmatpush3.bf16.msra.mxu1 %v16256_v52  ;;  %v8924_v34 = vand.u32 4294901760, %v8896_v33  ;;  %v9158_v57 = vsub.f32 %v9156_v13, %v9157_v63  ;;  %v9170_v12 = vsub.f32 %v8897_v61, %v8927_v47 }
 0xbd4   : > { %v9151_v46 = vsub.f32 %v9149_v37, %v9150_v1  ;;  %v16263_v54 = vpack.c.bf16 %v9157_v63, %v9150_v1 }
 0xbd5   : > { %v16265_v21 = vpack.c.bf16 %v8927_v47, %v8924_v34  ;;  %v9159_v17 = vand.u32 4294901760, %v9158_v57  ;;  %v9163_v6 = vsub.f32 %v8896_v33, %v8924_v34  ;;  %v9171_v28 = vand.u32 4294901760, %v9170_v12  ;;  %v16765_v34 = vld [vmem:[#allocation17_spill] sm:$0xff]  ;;  %v16766_v57 = vld [vmem:[#allocation18_spill] sm:$0xff] }
 0xbd6   : > { %v9152_v2 = vand.u32 4294901760, %v9151_v46  ;;  %v9179_v33 = vsub.f32 %v9177_v25, %v16268_v14  ;;  %v16769_v46 = vld [vmem:[#allocation26_spill] sm:$0xff] }
 0xbd7   : > { %13780 = vmatprep.subr.bf16.mxu1 %v16265_v21  ;;  %v9164_v39 = vand.u32 4294901760, %v9163_v6  ;;  %v9172_v53 = vsub.f32 %v9170_v12, %v9171_v28  ;;  %v13795_v9 = vpack.c.bf16 %v9170_v12, %v9163_v6  ;;  %v16767_v12 = vld [vmem:[#allocation21_spill] sm:$0xff] }
 0xbd8   : > { %13782 = vmatpush3.bf16.msra.mxu1 %v16265_v21  ;;  %v13783_v61 = vpack.c.bf16 %v9159_v17, %v9152_v2  ;;  %v9180_v1 = vand.u32 4294901760, %v9179_v33  ;;  %v16771_v17 = vld [vmem:[#allocation33_spill] sm:$0xff]  ;;  %v16774_v2 = vld [vmem:[#allocation39_spill] sm:$0xff] }
 0xbd9   : > { %13177 = vmatprep.subr.mxu1 %v16258_v26  ;;  %v9165_v32 = vsub.f32 %v9163_v6, %v9164_v39  ;;  %v9173_v13 = vand.u32 4294901760, %v9172_v53  ;;  %v16272_v37 = vpack.c.bf16 %v9171_v28, %v9164_v39  ;;  %v16772_v6 = vld [vmem:[#allocation35_spill] sm:$0xff]  ;;  %v16773_v28 = vld [vmem:[#allocation38_spill] sm:$0xff] }
 0xbdb   : > { %v9166_v47 = vand.u32 4294901760, %v9165_v32 }
 0xbdc   : > { %13178 = vmatpush3.msra.mxu1 %v16258_v26 }
 0xbdd   : > { %13180 = vmatmul.mubr.f32.vlgmr.msra.gmra.mrb[58].mxu1 %v15002_v41  ;;  %13784 = vmatprep.subr.bf16.mxu1 %v13783_v61  ;;  %v13787_v63 = vpack.c.bf16 %v9173_v13, %v9166_v47  ;;  %v16746_v41 = vld [vmem:[#allocation6_spill] sm:$0xff] }
 0xbde   : > { %13786 = vmatpush3.bf16.msra.mxu1 %v13783_v61  ;;  %13182 = vmatprep.mubr.f32.mxu1 %v15011_v44  ;;  %v16747_v44 = vld [vmem:[#allocation9_spill] sm:$0xff] }
 0xbdf   : > { %13788 = vmatprep.subr.bf16.mxu1 %v13787_v63 }
 0xbe1   : > { %13183 = vmatmul.mubr.f32.gmra.mrb[60].mxu1 %v15016_v45  ;;  %v16748_v45 = vld [vmem:[#allocation12_spill] sm:$0xff] }
 0xbe2   : > { %13790 = vmatpush3.bf16.msra.mxu1 %v13787_v63  ;;  %13185 = vmatprep.mubr.f32.mxu1 %v15025_v48  ;;  %v16751_v48 = vld [vmem:[#allocation19_spill] sm:$0xff] }
 0xbe3   : > { %13211 = vmatprep.subr.mxu1 %v9180_v1 }
 0xbe5   : > { %13186 = vmatmul.mubr.f32.gmra.mrb[62].mxu1 %v15031_v50  ;;  %v16752_v50 = vld [vmem:[#allocation20_spill] sm:$0xff] }
 0xbe6   : > { %13212 = vmatpush3.msra.mxu1 %v9180_v1  ;;  %13188 = vmatprep.mubr.f32.mxu1 %v15112_v36  ;;  %v16753_v36 = vld [vmem:[#allocation24_spill] sm:$0xff] }
 0xbe7   : > { %13792 = vmatprep.subr.bf16.mxu1 %v13791_v40 }
 0xbe9   : > { %13189 = vmatmul.mubr.f32.gmra.mrb[64].mxu1 %v16563_v29  ;;  %v16758_v29 = vld [vmem:[#allocation37_spill] sm:$0xff] }
 0xbea   : > { %13191 = vmatprep.mubr.f32.mxu1 %v16564_v51  ;;  %v16759_v51 = vld [vmem:[#allocation4_spill] sm:$0xff] }
 0xbed   : > { %13192 = vmatmul.mubr.f32.gmra.mrb[66].mxu1 %v16565_v49  ;;  %v16760_v49 = vld [vmem:[#allocation8_spill] sm:$0xff] }
 0xbee   : > { %13194 = vmatprep.mubr.f32.mxu1 %v16566_v56  ;;  %v16761_v56 = vld [vmem:[#allocation10_spill] sm:$0xff] }
 0xbf1   : > { %13195 = vmatmul.mubr.f32.gmra.mrb[68].mxu1 %v16567_v35  ;;  %v16762_v35 = vld [vmem:[#allocation11_spill] sm:$0xff] }
 0xbf2   : > { %13197 = vmatprep.mubr.f32.mxu1 %v15207_v0  ;;  %v16756_v0 = vld [vmem:[#allocation31_spill] sm:$0xff] }
 0xbf5   : > { %13198 = vmatmul.mubr.f32.gmra.mrb[70].mxu1 %v15212_v62  ;;  %v16755_v62 = vld [vmem:[#allocation30_spill] sm:$0xff] }
 0xbf6   : > { %13200 = vmatprep.mubr.f32.mxu1 %v15222_v11  ;;  %v16757_v11 = vld [vmem:[#allocation36_spill] sm:$0xff] }
 0xbf9   : > { %13201 = vmatmul.mubr.f32.gmra.mrb[72].mxu1 %v15224_v42  ;;  %v16754_v42 = vld [vmem:[#allocation25_spill] sm:$0xff] }
 0xbfa   : > { %13213 = vmatprep.mubr.f32.mxu1 %v14912_v5 }
 0xbfd   : > { %13214 = vmatmul.mubr.f32.vlgmr.msra.gmra.mrb[58].mxu1 %v14942_v15 }
 0xbfe   : > { %13794 = vmatpush3.bf16.msra.mxu1 %v13791_v40  ;;  %13216 = vmatprep.mubr.f32.mxu1 %v14947_v18  ;;  %v16764_v40 = vld [vmem:[#allocation14_spill] sm:$0xff] }
 0xbff   : > { %13796 = vmatprep.subr.bf16.mxu1 %v13795_v9 }
 0xc01   : > { %13217 = vmatmul.mubr.f32.gmra.mrb[60].mxu1 %v14949_v19 }
 0xc02   : > { %13798 = vmatpush3.bf16.msra.mxu1 %v13795_v9  ;;  %13219 = vmatprep.mubr.f32.mxu1 %v14958_v23 }
 0xc03   : > { %13245 = vmatprep.subr.mxu1 %v9177_v25 }
 0xc05   : > { %13220 = vmatmul.mubr.f32.gmra.mrb[62].mxu1 %v14967_v27 }
 0xc06   : > { %13246 = vmatpush3.msra.mxu1 %v9177_v25  ;;  %13222 = vmatprep.mubr.f32.mxu1 %v15052_v58  ;;  %v16768_v25 = vld [vmem:[#allocation22_spill] sm:$0xff] }
 0xc07   : > { %13800 = vmatprep.subr.bf16.mxu1 %v16256_v52 }
 0xc09   : > { %13223 = vmatmul.mubr.f32.gmra.mrb[64].mxu1 %v15056_v60 }
 0xc0a   : > { %13225 = vmatprep.mubr.f32.mxu1 %v15074_v3 }
 0xc0d   : > { %13226 = vmatmul.mubr.f32.gmra.mrb[66].mxu1 %v15081_v8 }
 0xc0e   : > { %13228 = vmatprep.mubr.f32.mxu1 %v15106_v24 }
 0xc11   : > { %13229 = vmatmul.mubr.f32.gmra.mrb[68].mxu1 %v15114_v38 }
 0xc12   : > { %13231 = vmatprep.mubr.f32.mxu1 %v15150_v59 }
 0xc15   : > { %13232 = vmatmul.mubr.f32.gmra.mrb[70].mxu1 %v15159_v7 }
 0xc16   : > { %13234 = vmatprep.mubr.f32.mxu1 %v15177_v43 }
 0xc19   : > { %13235 = vmatmul.mubr.f32.gmra.mrb[72].mxu1 %v15185_v55 }
 0xc1a   : > { %13247 = vmatprep.mubr.f32.mxu1 %v14929_v10  ;;  %v16749_v10 = vld [vmem:[#allocation15_spill] sm:$0xff] }
 0xc1d   : > { %13248 = vmatmul.mubr.f32.vlgmr.msra.gmra.mrb[58].mxu1 %v14956_v22  ;;  %v16750_v22 = vld [vmem:[#allocation16_spill] sm:$0xff] }
 0xc1e   : > { %13802 = vmatpush3.bf16.msra.mxu1 %v16256_v52  ;;  %13250 = vmatprep.mubr.f32.mxu1 %v16716_v20  ;;  %v16763_v20 = vld [vmem:[#allocation13_spill] sm:$0xff] }
 0xc1f   : > { %13804 = vmatprep.subr.bf16.mxu1 %v16265_v21 }
 0xc21   : > { %13251 = vmatmul.mubr.f32.gmra.mrb[60].mxu1 %v16746_v41 }
 0xc22   : > { %13806 = vmatpush3.bf16.msra.mxu1 %v16265_v21  ;;  %13253 = vmatprep.mubr.f32.mxu1 %v16747_v44 }
 0xc23   : > { %13279 = vmatprep.subr.mxu1 %v16258_v26 }
 0xc25   : > { %13254 = vmatmul.mubr.f32.gmra.mrb[62].mxu1 %v16748_v45 }
 0xc26   : > { %13280 = vmatpush3.msra.mxu1 %v16258_v26  ;;  %13256 = vmatprep.mubr.f32.mxu1 %v16749_v10 }
 0xc27   : > { %13808 = vmatprep.subr.bf16.mxu1 %v16263_v54 }
 0xc29   : > { %13257 = vmatmul.mubr.f32.gmra.mrb[64].mxu1 %v16750_v22 }
 0xc2a   : > { %13259 = vmatprep.mubr.f32.mxu1 %v16751_v48 }
 0xc2d   : > { %13260 = vmatmul.mubr.f32.gmra.mrb[66].mxu1 %v16752_v50 }
 0xc2e   : > { %13262 = vmatprep.mubr.f32.mxu1 %v16753_v36 }
 0xc31   : > { %13263 = vmatmul.mubr.f32.gmra.mrb[68].mxu1 %v16754_v42 }
 0xc32   : > { %13265 = vmatprep.mubr.f32.mxu1 %v16755_v62 }
 0xc35   : > { %13266 = vmatmul.mubr.f32.gmra.mrb[70].mxu1 %v16756_v0 }
 0xc36   : > { %13268 = vmatprep.mubr.f32.mxu1 %v16757_v11 }
 0xc39   : > { %13269 = vmatmul.mubr.f32.gmra.mrb[72].mxu1 %v16758_v29 }
 0xc3a   : > { %13281 = vmatprep.mubr.f32.mxu1 %v16759_v51 }
 0xc3d   : > { %13282 = vmatmul.mubr.f32.vlgmr.msra.gmra.mrb[58].mxu1 %v16760_v49 }
 0xc3e   : > { %13810 = vmatpush3.bf16.msra.mxu1 %v16263_v54  ;;  %13284 = vmatprep.mubr.f32.mxu1 %v16761_v56  ;;  %v16770_v54 = vld [vmem:[#allocation28_spill] sm:$0xff] }
 0xc3f   : > { %13812 = vmatprep.subr.bf16.mxu1 %v16272_v37 }
 0xc41   : > { %13285 = vmatmul.mubr.f32.gmra.mrb[60].mxu1 %v16762_v35 }
 0xc42   : > { %13814 = vmatpush3.bf16.msra.mxu1 %v16272_v37  ;;  %13287 = vmatprep.mubr.f32.mxu1 %v16763_v20 }
 0xc43   : > { %13313 = vmatprep.subr.mxu1 %v16268_v14 }
 0xc45   : > { %13288 = vmatmul.mubr.f32.gmra.mrb[62].mxu1 %v16764_v40 }
 0xc46   : > { %13314 = vmatpush3.msra.mxu1 %v16268_v14  ;;  %13290 = vmatprep.mubr.f32.mxu1 %v16765_v34 }
 0xc47   : > { %13816 = vmatprep.subr.bf16.mxu1 %v16256_v52 }
 0xc49   : > { %13291 = vmatmul.mubr.f32.gmra.mrb[64].mxu1 %v16766_v57 }
 0xc4a   : > { %13293 = vmatprep.mubr.f32.mxu1 %v16767_v12 }
 0xc4d   : > { %13294 = vmatmul.mubr.f32.gmra.mrb[66].mxu1 %v16768_v25 }
 0xc4e   : > { %13296 = vmatprep.mubr.f32.mxu1 %v16769_v46 }
 0xc51   : > { %13297 = vmatmul.mubr.f32.gmra.mrb[68].mxu1 %v16770_v54 }
 0xc52   : > { %13299 = vmatprep.mubr.f32.mxu1 %v16771_v17 }
 0xc55   : > { %13300 = vmatmul.mubr.f32.gmra.mrb[70].mxu1 %v16772_v6 }
 0xc56   : > { %13302 = vmatprep.mubr.f32.mxu1 %v16773_v28 }
 0xc59   : > { %13303 = vmatmul.mubr.f32.gmra.mrb[72].mxu1 %v16774_v2 }
 0xc5a   : > { %13315 = vmatprep.mubr.f32.mxu1 %v14912_v5 }
 0xc5d   : > { %13316 = vmatmul.mubr.f32.vlgmr.msra.gmra.mrb[58].mxu1 %v14942_v15 }
 0xc5e   : > { %13818 = vmatpush3.bf16.msra.mxu1 %v16256_v52  ;;  %13318 = vmatprep.mubr.f32.mxu1 %v14947_v18 }
 0xc5f   : > { %13820 = vmatprep.subr.bf16.mxu1 %v16265_v21 }
 0xc61   : > { %13319 = vmatmul.mubr.f32.gmra.mrb[60].mxu1 %v14949_v19 }
 0xc62   : > { %13822 = vmatpush3.bf16.msra.mxu1 %v16265_v21  ;;  %13321 = vmatprep.mubr.f32.mxu1 %v14958_v23 }
 0xc63   : > { %13347 = vmatprep.subr.mxu1 %v16258_v26 }
 0xc65   : > { %13322 = vmatmul.mubr.f32.gmra.mrb[62].mxu1 %v14967_v27 }
 0xc66   : > { %13324 = vmatprep.mubr.f32.mxu1 %v15052_v58  ;;  %13348 = vmatpush3.msra.mxu1 %v16258_v26 }
 0xc69   : > { %13325 = vmatmul.mubr.f32.gmra.mrb[64].mxu1 %v15056_v60 }
 0xc6a   : > { %13327 = vmatprep.mubr.f32.mxu1 %v15074_v3 }
 0xc6d   : > { %13328 = vmatmul.mubr.f32.gmra.mrb[66].mxu1 %v15081_v8 }
 0xc6e   : > { %13330 = vmatprep.mubr.f32.mxu1 %v15106_v24 }
 0xc71   : > { %13331 = vmatmul.mubr.f32.gmra.mrb[68].mxu1 %v15114_v38 }
 0xc72   : > { %13333 = vmatprep.mubr.f32.mxu1 %v15150_v59 }
 0xc75   : > { %13334 = vmatmul.mubr.f32.gmra.mrb[70].mxu1 %v15159_v7 }
 0xc76   : > { %13336 = vmatprep.mubr.f32.mxu1 %v15177_v43 }
 0xc79   : > { %13337 = vmatmul.mubr.f32.gmra.mrb[72].mxu1 %v15185_v55 }
 0xc7a   : > { %13349 = vmatprep.mubr.f32.mxu1 %v14912_v5  ;;  %v16775_v5 = vmov 0.0|0.0  }
 0xc7b   : > { %13823 = vmatprep.subr.bf16.mxu0 %v16775_v5 }
 0xc7d   : > { %13350 = vmatmul.mubr.f32.vlgmr.msra.gmra.mrb[58].mxu1 %v14942_v15  ;;  %v16776_v15 = vmov 0.0  }
 0xc7e   : > { %13352 = vmatprep.mubr.f32.mxu1 %v14947_v18  ;;  %13381 = vmatprep.mubr.msk.f32.mxu0 %vm14861_vm1, %v16776_v15  ;;  %v10145_v18 = vld [vmem:[%s16445_s3] sm:$0xff] }
 0xc81   : > { %13353 = vmatmul.mubr.f32.gmra.mrb[60].mxu1 %v14949_v19  ;;  %v14862_v19 = vmov 0  }
 0xc82   : > { %13355 = vmatprep.mubr.f32.mxu1 %v14958_v23  ;;  %14529 = vset.pattern.permute.xlu0 %v14862_v19 }
 0xc83   : > { %10148 = vperm.xlu0 %14529, %v10145_v18  }
 0xc85   : > { %13356 = vmatmul.mubr.f32.gmra.mrb[62].mxu1 %v14967_v27 }
 0xc86   : > { %13358 = vmatprep.mubr.f32.mxu1 %v15052_v58 }
 0xc89   : > { %13359 = vmatmul.mubr.f32.gmra.mrb[64].mxu1 %v15056_v60 }
 0xc8a   : > { %13361 = vmatprep.mubr.f32.mxu1 %v15074_v3 }
 0xc8d   : > { %13362 = vmatmul.mubr.f32.gmra.mrb[66].mxu1 %v15081_v8 }
 0xc8e   : > { %13364 = vmatprep.mubr.f32.mxu1 %v15106_v24 }
 0xc91   : > { %13365 = vmatmul.mubr.f32.gmra.mrb[68].mxu1 %v15114_v38 }
 0xc92   : > { %13367 = vmatprep.mubr.f32.mxu1 %v15150_v59 }
 0xc95   : > { %13368 = vmatmul.mubr.f32.gmra.mrb[70].mxu1 %v15159_v7 }
 0xc96   : > { %13370 = vmatprep.mubr.f32.mxu1 %v15177_v43 }
 0xc99   : > { %13371 = vmatmul.mubr.f32.gmra.mrb[72].mxu1 %v15185_v55 }
 0xd50   : > { %v13351_v23 = vpop.f32.mrb[58].mxu1 }
 0xd51   : > { %v9966_v27 = vpop.f32.mrb[59].mxu1  ;;  %v10061_v60 = vmul.f32 0.5, %v13351_v23 }
 0xd52   : > { %v10060_v8 = vmul.f32 0.5, %v9966_v27 }
 0xd53   : > { %14810 = vtanh.f32 %v10061_v60 }
 0xd54   : > { %v13354_v58 = vpop.f32.mrb[60].mxu1  ;;  %14812 = vtanh.f32 %v10060_v8 }
 0xd55   : > { %v9978_v3 = vpop.f32.mrb[61].mxu1  ;;  %v10063_v38 = vmul.f32 0.5, %v13354_v58 }
 0xd56   : > { %v10062_v43 = vmul.f32 0.5, %v9978_v3 }
 0xd58   : > { %v13357_v24 = vpop.f32.mrb[62].mxu1 }
 0xd59   : > { %v10077_v59 = vmul.f32 0.5, %v13357_v24  ;;  %v9990_v7 = vpop.f32.mrb[63].mxu1 }
 0xd5a   : > { %v10076_v55 = vmul.f32 0.5, %v9990_v7 }
 0xd5b   : > { %14814 = vtanh.f32 %v10077_v59 }
 0xd5c   : > { %14816 = vtanh.f32 %v10076_v55  ;;  %v13360_v52 = vpop.f32.mrb[64].mxu1 }
 0xd5d   : > { %14818 = vtanh.f32 %v10063_v38  ;;  %v10079_v26 = vmul.f32 0.5, %v13360_v52  ;;  %v10002_v21 = vpop.f32.mrb[65].mxu1  ;;  %v14811_v9 = vpop.eup %14810 }
 0xd5e   : > { %14820 = vtanh.f32 %v10062_v43  ;;  %v10078_v39 = vmul.f32 0.5, %v10002_v21  ;;  %v14813_v61 = vpop.eup %14812  ;;  %v10069_v33 = vmul.f32 0.5, %v14811_v9 }
 0xd5f   : > { %14822 = vtanh.f32 %v10079_v26  ;;  %v10068_v41 = vmul.f32 0.5, %v14813_v61 }
 0xd60   : > { %14824 = vtanh.f32 %v10078_v39  ;;  %v13363_v53 = vpop.f32.mrb[66].mxu1  ;;  %v10073_v0 = vadd.f32 0.5, %v10069_v33 }
 0xd61   : > { %14826 = vtanh.f32 %v13363_v53  ;;  %v10014_v14 = vpop.f32.mrb[67].mxu1  ;;  %v10072_v56 = vadd.f32 0.5, %v10068_v41 }
 0xd62   : > { %14828 = vtanh.f32 %v10014_v14 }
 0xd64   : > { %v13366_v32 = vpop.f32.mrb[68].mxu1 }
 0xd65   : > { %v14815_v13 = vpop.eup %14814  ;;  %14830 = vtanh.f32 %v13366_v32  ;;  %v10026_v37 = vpop.f32.mrb[69].mxu1 }
 0xd66   : > { %v14817_v47 = vpop.eup %14816  ;;  %v10085_v63 = vmul.f32 0.5, %v14815_v13  ;;  %14832 = vtanh.f32 %v10026_v37 }
 0xd67   : > { %v14819_v1 = vpop.eup %14818  ;;  %v10084_v44 = vmul.f32 0.5, %v14817_v47 }
 0xd68   : > { %v14821_v45 = vpop.eup %14820  ;;  %v10089_v10 = vadd.f32 0.5, %v10085_v63  ;;  %v13369_v22 = vpop.f32.mrb[70].mxu1  ;;  %v10071_v11 = vmul.f32 0.5, %v14819_v1 }
 0xd69   : > { %v14823_v48 = vpop.eup %14822  ;;  %v10088_v50 = vadd.f32 0.5, %v10084_v44  ;;  %v10097_v36 = vmul.f32 0.5, %v13369_v22  ;;  %v10038_v42 = vpop.f32.mrb[71].mxu1  ;;  %v10070_v35 = vmul.f32 0.5, %v14821_v45 }
 0xd6a   : > { %v14825_v62 = vpop.eup %14824  ;;  %v10087_v29 = vmul.f32 0.5, %v14823_v48  ;;  %v10096_v51 = vmul.f32 0.5, %v10038_v42  ;;  %v10113_v34 = vmul.f32 %v10089_v10, %v16242_v16  ;;  %v10075_v2 = vadd.f32 0.5, %v10071_v11 }
 0xd6b   : > { %v14827_v49 = vpop.eup %14826  ;;  %v10086_v20 = vmul.f32 0.5, %v14825_v62  ;;  %14834 = vtanh.f32 %v10097_v36  ;;  %v10112_v46 = vmul.f32 %v10088_v50, %v16244_v30  ;;  %v10074_v27 = vadd.f32 0.5, %v10070_v35  ;;  %v10144_v30 = vld [vmem:[%s16444_s2] sm:$0xff] }
 0xd6c   : > { %v14829_v40 = vpop.eup %14828  ;;  %v10091_v57 = vadd.f32 0.5, %v10087_v29  ;;  %v10117_v12 = vmul.f32 %v14827_v49, %v10073_v0  ;;  %14836 = vtanh.f32 %v10096_v51  ;;  %v13372_v25 = vpop.f32.mrb[72].mxu1  ;;  %v10153_v7 = vsel %vm10151_vm2, %v10144_v30, 0 }
 0xd6d   : > { %v10090_v54 = vadd.f32 0.5, %v10086_v20  ;;  %v10116_v17 = vmul.f32 %v14829_v40, %v10072_v56  ;;  %v10099_v6 = vmul.f32 0.5, %v13372_v25  ;;  %v10050_v28 = vpop.f32.mrb[73].mxu1  ;;  %v16402_v52 = vand.u32 4294901760, %v10153_v7 }
 0xd6e   : > { %v10121_v18 = vadd.f32 %v10117_v12, %v10113_v34  ;;  %v10098_v19 = vmul.f32 0.5, %v10050_v28  ;;  %v10115_v16 = vmul.f32 %v10091_v57, %v16250_v4 }
 0xd6f   : > { %v14831_v23 = vpop.eup %14830  ;;  %v10120_v58 = vadd.f32 %v10116_v17, %v10112_v46  ;;  %14838 = vtanh.f32 %v10099_v6  ;;  %v10114_v8 = vmul.f32 %v10090_v54, %v16252_v31  ;;  %v16405_v31 = vsub.f32 %v10153_v7, %v16402_v52 }
 0xd70   : > { %v14833_v60 = vpop.eup %14832  ;;  %14840 = vtanh.f32 %v10121_v18  ;;  %v10119_v3 = vmul.f32 %v14831_v23, %v10075_v2 }
 0xd71   : > { %14842 = vtanh.f32 %v10120_v58  ;;  %v10118_v24 = vmul.f32 %v14833_v60, %v10074_v27  ;;  %v10226_v44 = vand.u32 4294901760, %v16405_v31  ;;  %v10149_v60 = vpop.permute.xlu0 %10148 }
 0xd72   : > { %v10123_v38 = vadd.f32 %v10119_v3, %v10115_v16  ;;  %14844 = vtanh.f32 %v10098_v19 }
 0xd73   : > { %v10122_v59 = vadd.f32 %v10118_v24, %v10114_v8  ;;  %v10227_v11 = vsub.f32 %v16405_v31, %v10226_v44 }
 0xd74   : > { %14846 = vtanh.f32 %v10123_v38 }
 0xd75   : > { %v14835_v43 = vpop.eup %14834  ;;  %14848 = vtanh.f32 %v10122_v59  ;;  %v10228_v46 = vand.u32 4294901760, %v10227_v11 }
 0xd76   : > { %v14837_v55 = vpop.eup %14836  ;;  %v10105_v4 = vmul.f32 0.5, %v14835_v43 }
 0xd77   : > { %v10104_v26 = vmul.f32 0.5, %v14837_v55 }
 0xd78   : > { %v10109_v21 = vadd.f32 0.5, %v10105_v4 }
 0xd79   : > { %v14839_v39 = vpop.eup %14838  ;;  %v10108_v53 = vadd.f32 0.5, %v10104_v26 }
 0xd7a   : > { %v14841_v14 = vpop.eup %14840  ;;  %v10107_v9 = vmul.f32 0.5, %v14839_v39 }
 0xd7b   : > { %v14843_v61 = vpop.eup %14842  ;;  %v10129_v32 = vmul.f32 %v14841_v14, %v10109_v21 }
 0xd7c   : > { %v14845_v13 = vpop.eup %14844  ;;  %v10128_v37 = vmul.f32 %v14843_v61, %v10108_v53  ;;  %v10111_v47 = vadd.f32 0.5, %v10107_v9 }
 0xd7d   : > { %v10106_v33 = vmul.f32 0.5, %v14845_v13  ;;  %v10159_v63 = vand.u32 4294901760, %v10129_v32 }
 0xd7e   : > { %v14847_v1 = vpop.eup %14846  ;;  %v10156_v41 = vand.u32 4294901760, %v10128_v37 }
 0xd7f   : > { %v14849_v45 = vpop.eup %14848  ;;  %v10131_v10 = vmul.f32 %v14847_v1, %v10111_v47  ;;  %v10110_v22 = vadd.f32 0.5, %v10106_v33  ;;  %v10243_v48 = vsub.f32 %v10129_v32, %v10159_v63 }
 0xd80   : > { %v13824_v50 = vpack.c.bf16 %v10159_v63, %v10156_v41  ;;  %v10236_v36 = vsub.f32 %v10128_v37, %v10156_v41 }
 0xd81   : > { %v10130_v42 = vmul.f32 %v14849_v45, %v10110_v22  ;;  %v10165_v62 = vand.u32 4294901760, %v10131_v10  ;;  %v10244_v0 = vand.u32 4294901760, %v10243_v48 }
 0xd82   : > { %13825 = vmatpush3.bf16.msra.mxu0 %v13824_v50  ;;  %v10237_v29 = vand.u32 4294901760, %v10236_v36  ;;  %v13836_v51 = vpack.c.bf16 %v10243_v48, %v10236_v36 }
 0xd83   : > { %13826 = vmatprep.subr.bf16.mxu0 %v16775_v5  ;;  %v10162_v49 = vand.u32 4294901760, %v10130_v42  ;;  %v10257_v56 = vsub.f32 %v10131_v10, %v10165_v62  ;;  %v10245_v35 = vsub.f32 %v10243_v48, %v10244_v0 }
 0xd84   : > { %v10238_v20 = vsub.f32 %v10236_v36, %v10237_v29  ;;  %v13848_v40 = vpack.c.bf16 %v10244_v0, %v10237_v29 }
 0xd85   : > { %v13827_v34 = vpack.c.bf16 %v10165_v62, %v10162_v49  ;;  %v10250_v57 = vsub.f32 %v10130_v42, %v10162_v49  ;;  %v10246_v12 = vand.u32 4294901760, %v10245_v35  ;;  %v10258_v25 = vand.u32 4294901760, %v10257_v56 }
 0xd86   : > { %v10239_v54 = vand.u32 4294901760, %v10238_v20 }
 0xd87   : > { %13828 = vmatpush3.bf16.msra.mxu0 %v13827_v34  ;;  %v10251_v17 = vand.u32 4294901760, %v10250_v57  ;;  %v10259_v6 = vsub.f32 %v10257_v56, %v10258_v25  ;;  %v13839_v28 = vpack.c.bf16 %v10257_v56, %v10250_v57 }
 0xd88   : > { %13829 = vmatprep.subr.bf16.mxu0 %v16775_v5  ;;  %v13830_v2 = vpack.c.bf16 %v10246_v12, %v10239_v54 }
 0xd89   : > { %v10252_v18 = vsub.f32 %v10250_v57, %v10251_v17  ;;  %v10260_v19 = vand.u32 4294901760, %v10259_v6  ;;  %v13851_v23 = vpack.c.bf16 %v10258_v25, %v10251_v17 }
 0xd8a   : > { %13382 = vmatmul.mubr.f32.vlgmr.msra.gmra.mrb[64].mxu0 %v10228_v46 }
 0xd8b   : > { %13831 = vmatpush3.bf16.msra.mxu0 %v13830_v2  ;;  %v10253_v27 = vand.u32 4294901760, %v10252_v18  ;;  %13392 = vmatprep.mubr.msk.f32.mxu0 %vm14861_vm1, %v16776_v15 }
 0xd8c   : > { %13832 = vmatprep.subr.bf16.mxu0 %v16775_v5 }
 0xd8d   : > { %v13833_v58 = vpack.c.bf16 %v10260_v19, %v10253_v27 }
 0xd8f   : > { %13834 = vmatpush3.bf16.msra.mxu0 %v13833_v58 }
 0xd90   : > { %13835 = vmatprep.subr.bf16.mxu0 %v16775_v5 }
 0xd92   : > { %13393 = vmatmul.mubr.f32.vlgmr.msra.gmra.mrb[64].mxu0 %v16402_v52 }
 0xd93   : > { %13837 = vmatpush3.bf16.msra.mxu0 %v13836_v51  ;;  %13403 = vmatprep.mubr.msk.f32.mxu0 %vm14861_vm1, %v16776_v15 }
 0xd94   : > { %13838 = vmatprep.subr.bf16.mxu0 %v16775_v5 }
 0xd97   : > { %13840 = vmatpush3.bf16.msra.mxu0 %v13839_v28 }
 0xd98   : > { %13841 = vmatprep.subr.bf16.mxu0 %v16775_v5 }
 0xd9a   : > { %13404 = vmatmul.mubr.f32.vlgmr.msra.gmra.mrb[64].mxu0 %v16405_v31 }
 0xd9b   : > { %13843 = vmatpush3.bf16.msra.mxu0 %v13824_v50  ;;  %13414 = vmatprep.mubr.msk.f32.mxu0 %vm14861_vm1, %v16776_v15 }
 0xd9c   : > { %13844 = vmatprep.subr.bf16.mxu0 %v16775_v5 }
 0xd9f   : > { %13846 = vmatpush3.bf16.msra.mxu0 %v13827_v34 }
 0xda0   : > { %13847 = vmatprep.subr.bf16.mxu0 %v16775_v5 }
 0xda2   : > { %13415 = vmatmul.mubr.f32.vlgmr.msra.gmra.mrb[64].mxu0 %v10226_v44 }
 0xda3   : > { %13849 = vmatpush3.bf16.msra.mxu0 %v13848_v40  ;;  %13425 = vmatprep.mubr.msk.f32.mxu0 %vm14861_vm1, %v16776_v15 }
 0xda4   : > { %13850 = vmatprep.subr.bf16.mxu0 %v16775_v5 }
 0xda7   : > { %13852 = vmatpush3.bf16.msra.mxu0 %v13851_v23 }
 0xda8   : > { %13853 = vmatprep.subr.bf16.mxu0 %v16775_v5 }
 0xdaa   : > { %13426 = vmatmul.mubr.f32.vlgmr.msra.gmra.mrb[64].mxu0 %v16402_v52 }
 0xdab   : > { %13855 = vmatpush3.bf16.msra.mxu0 %v13824_v50  ;;  %13436 = vmatprep.mubr.msk.f32.mxu0 %vm14861_vm1, %v16776_v15 }
 0xdac   : > { %13856 = vmatprep.subr.bf16.mxu0 %v16775_v5 }
 0xdaf   : > { %13858 = vmatpush3.bf16.msra.mxu0 %v13827_v34 }
 0xdb2   : > { %13437 = vmatmul.mubr.f32.vlgmr.msra.gmra.mrb[64].mxu0 %v16402_v52 }
 0xe85   : > { %v10636_v16 = vpop.f32.mrb[64].mxu0 }
 0xe86   : > { %v13875_v3 = vadd.f32 %v10636_v16, %v10149_v60  ;;  %v13438_v30 = vpop.f32.mrb[65].mxu0 }
 0xe88   : > { %10640 = vst [vmem:[%s192_s10] sm:$0xff] %v13875_v3 }
 0xe89 PF: > { %s14_s15 = sadd.s32 1, %s14856_s15  }
 0xe8a   : > { %p11_p4 = scmp.ge.s32.totalorder %s14_s15, 4  }
 0xe8c   :  { %13 = sbr.rel (!%p11_p4) target bundleno = 1 (0x1), region = 66 }

</bundles_post_ra>
